<compile_context>
chip_gen: v5e
topology: v5e:2x2
jax: 0.10.0
libtpu: 0.0.40
codegen_flags: <defaults>
</compile_context>

<pallas_src>
import functools

import jax
import jax.numpy as jnp
from jax.experimental import pallas as pl
from jax.experimental.pallas import tpu as pltpu


def _window_msa_kernel(x_ref, wqkv_ref, bqkv_ref, wproj_ref, bproj_ref,
                       bm_ref, out_ref, *, num_heads, nw):
    # x_ref:    (WB, N, C)   input dtype
    # wqkv_ref: (C, 3C)      bf16, q columns pre-scaled by the qk scale
    # bqkv_ref: (1, 3C)      f32, q part pre-scaled
    # wproj_ref:(C, C)       bf16
    # bproj_ref:(1, C)       f32
    # bm_ref:   (nW, H, N, N) f32, relative-position bias + window mask
    # out_ref:  (WB, N, C)
    WB, N, C = x_ref.shape
    H = num_heads
    hd = C // H
    M = WB * N

    # Big qkv projection for all WB windows at once: (M, C) @ (C, 3C).
    xb = x_ref[...].reshape(M, C).astype(jnp.bfloat16)
    qkv = jnp.dot(xb, wqkv_ref[...],
                  preferred_element_type=jnp.float32) + bqkv_ref[0]      # (M, 3C) f32

    # TODO(synk): for large WB*H (real Swin configs) switch the unrolled Python
    # loops below to lax.fori_loop to bound compile time, and pad N (e.g. 49->56)
    # in the wrapper so the (N, N) tiles are sublane-aligned.
    head_outs = []
    for h in range(H):
        # One lane slice per head (hoisted out of the window loop).
        qh = qkv[:, h * hd:(h + 1) * hd].astype(jnp.bfloat16)            # (M, hd)
        kh = qkv[:, C + h * hd:C + (h + 1) * hd].astype(jnp.bfloat16)    # (M, hd)
        vh = qkv[:, 2 * C + h * hd:2 * C + (h + 1) * hd].astype(jnp.bfloat16)
        win_outs = []
        for w in range(WB):
            r = w * N                                                    # sublane-aligned
            s = jnp.dot(qh[r:r + N], kh[r:r + N].T,
                        preferred_element_type=jnp.float32)              # (N, N) f32
            s = s + bm_ref[w % nw, h, :, :]                              # bias + window mask
            s_max = jnp.max(s, axis=-1, keepdims=True)
            p = jnp.exp(s - s_max)
            denom = jnp.sum(p, axis=-1, keepdims=True)
            p = p * pl.reciprocal(denom, approx=True)
            # attn_drop / proj_drop are identity (rate 0.0 / eval mode)
            win_outs.append(jnp.dot(p.astype(jnp.bfloat16), vh[r:r + N],
                                    preferred_element_type=jnp.float32))  # (N, hd)
        head_outs.append(jnp.concatenate(win_outs, axis=0))              # (M, hd)

    # Single merge per grid step, then one big projection matmul (M, C) @ (C, C).
    o = jnp.concatenate(head_outs, axis=-1).astype(jnp.bfloat16)         # (M, C)
    y = jnp.dot(o, wproj_ref[...],
                preferred_element_type=jnp.float32) + bproj_ref[0]        # (M, C) f32
    out_ref[...] = y.reshape(WB, N, C).astype(out_ref.dtype)


def _relative_position_bias(table, window_size, num_heads):
    """Glue (plain JAX): gather the (H, N, N) relative position bias."""
    Wh, Ww = window_size
    N = Wh * Ww

    def double_step_seq(step1, len1, step2, len2):
        seq1 = jnp.arange(0, step1 * len1, step1)
        seq2 = jnp.arange(0, step2 * len2, step2)
        return (seq1[:, None] + seq2[None, :]).reshape(1, -1)

    rel_index_coords = double_step_seq(2 * Ww - 1, Wh, 1, Ww)            # (1, N)
    rel_position_index = rel_index_coords + rel_index_coords.T           # (N, N)
    rel_position_index = jnp.flip(rel_position_index, axis=1)

    bias = table[rel_position_index.reshape(-1)]                         # (N*N, H)
    bias = bias.reshape(N, N, num_heads).transpose(2, 0, 1)              # (H, N, N)
    return bias


def _choose_window_block(B_, nW, N, min_rows=128):
    """Windows per grid step: a multiple of nW dividing B_ with WB*N >= min_rows
    when possible (keeps the window -> mask mapping block-invariant)."""
    assert B_ % nW == 0, "num_windows*B must be a multiple of the mask's nW"
    wb = nW
    while B_ % (2 * wb) == 0 and wb * N < min_rows:
        wb *= 2
    return wb


def window_msa(x, mask, params, *, window_size, num_heads, qk_scale=None):
    """x: (B_, N, C), mask: (nW, N, N) or None. Returns (B_, N, C)."""
    B_, N, C = x.shape
    if mask is None:
        mask = jnp.zeros((1, N, N), jnp.float32)
    nW = mask.shape[0]
    hd = C // num_heads
    scale = qk_scale if qk_scale is not None else hd ** (-0.5)

    # ---- wrapper-side parameter prep (plain JAX glue) ----
    bias = _relative_position_bias(params["rel_pos_table"], window_size,
                                   num_heads)                            # (H, N, N)
    biasmask = (bias[None, :, :, :] +
                mask[:, None, :, :]).astype(jnp.float32)                 # (nW, H, N, N)

    # Fold the qk scale into the q columns of the qkv projection.
    col_scale = jnp.concatenate([jnp.full((C,), scale, jnp.float32),
                                 jnp.ones((2 * C,), jnp.float32)])
    wqkv = (params["qkv_w"].T.astype(jnp.float32) *
            col_scale[None, :]).astype(jnp.bfloat16)                     # (C, 3C) bf16
    bqkv = (params["qkv_b"].astype(jnp.float32) * col_scale).reshape(1, 3 * C)
    wproj = params["proj_w"].T.astype(jnp.bfloat16)                      # (C, C) bf16
    bproj = params["proj_b"].astype(jnp.float32).reshape(1, C)

    WB = _choose_window_block(B_, nW, N)
    grid = (B_ // WB,)

    flops = B_ * (2 * N * C * 3 * C                   # qkv projection
                  + num_heads * 4 * N * N * hd        # scores + attn @ v
                  + 2 * N * C * C)                    # output projection
    transcendentals = B_ * num_heads * N * N          # exp in softmax
    bytes_accessed = (B_ * N * C * x.dtype.itemsize * 2
                      + wqkv.size * 2 + wproj.size * 2
                      + bqkv.size * 4 + bproj.size * 4
                      + biasmask.size * 4)
    cost = pl.CostEstimate(flops=int(flops),
                           transcendentals=int(transcendentals),
                           bytes_accessed=int(bytes_accessed))

    kernel = functools.partial(_window_msa_kernel, num_heads=num_heads, nw=nW)
    vmem = pltpu.MemorySpace.VMEM

    return pl.pallas_call(
        kernel,
        out_shape=jax.ShapeDtypeStruct((B_, N, C), x.dtype),
        grid_spec=pltpu.PrefetchScalarGridSpec(
            num_scalar_prefetch=0,
            grid=grid,
            in_specs=[
                pl.BlockSpec((WB, N, C), lambda g: (g, 0, 0),
                             memory_space=vmem),                          # x block
                pl.BlockSpec((C, 3 * C), lambda g: (0, 0),
                             memory_space=vmem),                          # wqkv (bf16)
                pl.BlockSpec((1, 3 * C), lambda g: (0, 0),
                             memory_space=vmem),                          # bqkv
                pl.BlockSpec((C, C), lambda g: (0, 0),
                             memory_space=vmem),                          # wproj (bf16)
                pl.BlockSpec((1, C), lambda g: (0, 0),
                             memory_space=vmem),                          # bproj
                pl.BlockSpec((nW, num_heads, N, N), lambda g: (0, 0, 0, 0),
                             memory_space=vmem),                          # bias + mask
            ],
            out_specs=pl.BlockSpec((WB, N, C), lambda g: (g, 0, 0),
                                   memory_space=vmem),
        ),
        compiler_params=pltpu.CompilerParams(
            dimension_semantics=("parallel",),       # shards blocks across v7x's 2 TCs
            vmem_limit_bytes=32 * 1024 * 1024),
        cost_estimate=cost,
    )(x, wqkv, bqkv, wproj, bproj, biasmask)


def window_msa_ref(x, mask, params, *, window_size, num_heads, qk_scale=None):
    """Pure-JAX f32 reference mirroring the PyTorch forward (for verification)."""
    B_, N, C = x.shape
    nW = mask.shape[0]
    hd = C // num_heads
    scale = qk_scale if qk_scale is not None else hd ** (-0.5)

    qkv = x @ params["qkv_w"].T + params["qkv_b"]                        # (B_, N, 3C)
    qkv = qkv.reshape(B_, N, 3, num_heads, hd).transpose(2, 0, 3, 1, 4)
    q, k, v = qkv[0], qkv[1], qkv[2]                                     # (B_, H, N, hd)
    q = q * scale
    attn = jnp.einsum("bhnd,bhmd->bhnm", q, k)                           # (B_, H, N, N)
    bias = _relative_position_bias(params["rel_pos_table"], window_size,
                                   num_heads)
    attn = attn + bias[None]
    attn = attn.reshape(B_ // nW, nW, num_heads, N, N) + mask[None, :, None]
    attn = attn.reshape(B_, num_heads, N, N)
    attn = jax.nn.softmax(attn, axis=-1)
    out = jnp.einsum("bhnm,bhmd->bhnd", attn, v)
    out = out.transpose(0, 2, 1, 3).reshape(B_, N, C)
    return out @ params["proj_w"].T + params["proj_b"]


if __name__ == "__main__":
    # Small deterministic config: embed_dims=32, num_heads=4, window=(4,4).
    embed_dims = 32
    num_heads = 4
    window_size = (4, 4)
    Wh, Ww = window_size
    N = Wh * Ww            # 16 tokens per window
    batch = 4
    nW = 4                 # windows per image
    B_ = batch * nW        # 16 windows total -> 2 grid blocks of 8 windows (128 rows each)

    key = jax.random.PRNGKey(0)
    ks = jax.random.split(key, 8)

    params = {
        "qkv_w": jax.random.normal(ks[0], (3 * embed_dims, embed_dims),
                                   jnp.float32) * 0.05,
        "qkv_b": jax.random.normal(ks[1], (3 * embed_dims,), jnp.float32) * 0.02,
        "proj_w": jax.random.normal(ks[2], (embed_dims, embed_dims),
                                    jnp.float32) * 0.05,
        "proj_b": jax.random.normal(ks[3], (embed_dims,), jnp.float32) * 0.02,
        # trunc_normal(std=0.02) init approximated with plain normal*0.02
        "rel_pos_table": jax.random.normal(
            ks[4], ((2 * Wh - 1) * (2 * Ww - 1), num_heads), jnp.float32) * 0.02,
    }

    x = jax.random.normal(ks[5], (B_, N, embed_dims), jnp.float32)
    # mask values in (-inf, 0]; use large negative for masked entries
    mask_bits = jax.random.bernoulli(ks[6], 0.2, (nW, N, N))
    mask = jnp.where(mask_bits, -100.0, 0.0).astype(jnp.float32)

    out = window_msa(x, mask, params, window_size=window_size,
                     num_heads=num_heads)
    out = jax.block_until_ready(out)

    ref = window_msa_ref(x, mask, params, window_size=window_size,
                         num_heads=num_heads)
    assert out.shape == (B_, N, embed_dims)
    max_err = float(jnp.max(jnp.abs(out - ref)))
    # bf16 MXU inputs with f32 accumulation vs f32 reference: loose-ish tolerance.
    assert jnp.allclose(out, ref, atol=2e-2, rtol=2e-2), max_err

    print("KERNEL_OK")
</pallas_src>

<mosaic_0001>
module attributes {stable_mosaic.version = 11 : i64} {
  func.func @_window_msa_kernel(%arg0: i32, %arg1: memref<8x16x32xf32, #tpu.memory_space<vmem>>, %arg2: memref<32x96xbf16, #tpu.memory_space<vmem>>, %arg3: memref<1x96xf32, #tpu.memory_space<vmem>>, %arg4: memref<32x32xbf16, #tpu.memory_space<vmem>>, %arg5: memref<1x32xf32, #tpu.memory_space<vmem>>, %arg6: memref<4x4x16x16xf32, #tpu.memory_space<vmem>>, %arg7: memref<8x16x32xf32, #tpu.memory_space<vmem>>) attributes {dimension_semantics = [#tpu.dimension_semantics<parallel>], iteration_bounds = array<i64: 2>, scalar_prefetch = 0 : i64, scratch_operands = 0 : i64, tpu.core_type = #tpu.core_type<tc>, window_params = [{transform_indices = @transform_0, window_bounds = array<i64: 8, 16, 32>}, {pipeline_mode = #tpu.pipeline_mode<synchronous>, transform_indices = @transform_1, window_bounds = array<i64: 32, 96>}, {pipeline_mode = #tpu.pipeline_mode<synchronous>, transform_indices = @transform_2, window_bounds = array<i64: 1, 96>}, {pipeline_mode = #tpu.pipeline_mode<synchronous>, transform_indices = @transform_3, window_bounds = array<i64: 32, 32>}, {pipeline_mode = #tpu.pipeline_mode<synchronous>, transform_indices = @transform_4, window_bounds = array<i64: 1, 32>}, {pipeline_mode = #tpu.pipeline_mode<synchronous>, transform_indices = @transform_5, window_bounds = array<i64: 4, 4, 16, 16>}, {transform_indices = @transform_6, window_bounds = array<i64: 8, 16, 32>}]} {
    %c0 = arith.constant 0 : index
    %c0_0 = arith.constant 0 : index
    %c0_1 = arith.constant 0 : index
    %0 = vector.load %arg1[%c0, %c0_0, %c0_1] : memref<8x16x32xf32, #tpu.memory_space<vmem>>, vector<8x16x32xf32>
    %1 = vector.shape_cast %0 : vector<8x16x32xf32> to vector<128x32xf32>
    %2 = arith.truncf %1 : vector<128x32xf32> to vector<128x32xbf16>
    %c0_2 = arith.constant 0 : index
    %c0_3 = arith.constant 0 : index
    %3 = vector.load %arg2[%c0_2, %c0_3] : memref<32x96xbf16, #tpu.memory_space<vmem>>, vector<32x96xbf16>
    %cst = arith.constant dense<0.000000e+00> : vector<128x96xf32>
    %4 = tpu.matmul %2, %3, %cst {dimension_numbers = #tpu.dot_dimension_numbers<[1], [0], [0], [1], [0, 0, 1, 1], [], []>} : vector<128x32xbf16>, vector<32x96xbf16>, vector<128x96xf32> -> vector<128x96xf32>
    %c0_4 = arith.constant 0 : index
    %c0_5 = arith.constant 0 : index
    %5 = vector.load %arg3[%c0_4, %c0_5] : memref<1x96xf32, #tpu.memory_space<vmem>>, vector<1x96xf32>
    %6 = vector.shape_cast %5 : vector<1x96xf32> to vector<96xf32>
    %7 = vector.shape_cast %6 : vector<96xf32> to vector<1x96xf32>
    %8 = vector.broadcast %7 : vector<1x96xf32> to vector<128x96xf32>
    %9 = arith.addf %4, %8 : vector<128x96xf32>
    %10 = vector.extract_strided_slice %9 {offsets = [0, 0], sizes = [128, 8], strides = [1, 1]} : vector<128x96xf32> to vector<128x8xf32>
    %11 = arith.truncf %10 : vector<128x8xf32> to vector<128x8xbf16>
    %12 = vector.extract_strided_slice %9 {offsets = [0, 32], sizes = [128, 8], strides = [1, 1]} : vector<128x96xf32> to vector<128x8xf32>
    %13 = arith.truncf %12 : vector<128x8xf32> to vector<128x8xbf16>
    %14 = vector.extract_strided_slice %9 {offsets = [0, 64], sizes = [128, 8], strides = [1, 1]} : vector<128x96xf32> to vector<128x8xf32>
    %15 = arith.truncf %14 : vector<128x8xf32> to vector<128x8xbf16>
    %16 = vector.extract_strided_slice %11 {offsets = [0, 0], sizes = [16, 8], strides = [1, 1]} : vector<128x8xbf16> to vector<16x8xbf16>
    %17 = vector.extract_strided_slice %13 {offsets = [0, 0], sizes = [16, 8], strides = [1, 1]} : vector<128x8xbf16> to vector<16x8xbf16>
    %18 = tpu.transpose %17, [1, 0] : vector<16x8xbf16> -> vector<8x16xbf16>
    %cst_6 = arith.constant dense<0.000000e+00> : vector<16x16xf32>
    %19 = tpu.matmul %16, %18, %cst_6 {dimension_numbers = #tpu.dot_dimension_numbers<[1], [0], [0], [1], [0, 0, 1, 1], [], []>} : vector<16x8xbf16>, vector<8x16xbf16>, vector<16x16xf32> -> vector<16x16xf32>
    %c0_7 = arith.constant 0 : index
    %c0_8 = arith.constant 0 : index
    %c0_9 = arith.constant 0 : index
    %c0_10 = arith.constant 0 : index
    %20 = vector.load %arg6[%c0_7, %c0_8, %c0_9, %c0_10] : memref<4x4x16x16xf32, #tpu.memory_space<vmem>>, vector<1x1x16x16xf32>
    %21 = vector.shape_cast %20 : vector<1x1x16x16xf32> to vector<16x16xf32>
    %22 = arith.addf %19, %21 : vector<16x16xf32>
    %cst_11 = arith.constant dense<0xFF800000> : vector<16xf32>
    %23 = vector.multi_reduction <maximumf>, %22, %cst_11 [1] : vector<16x16xf32> to vector<16xf32>
    %24 = vector.shape_cast %23 : vector<16xf32> to vector<16x1xf32>
    %25 = vector.broadcast %24 : vector<16x1xf32> to vector<16x16xf32>
    %26 = arith.subf %22, %25 : vector<16x16xf32>
    %27 = math.exp %26 : vector<16x16xf32>
    %cst_12 = arith.constant dense<0.000000e+00> : vector<16xf32>
    %28 = vector.multi_reduction <add>, %27, %cst_12 [1] : vector<16x16xf32> to vector<16xf32>
    %29 = vector.shape_cast %28 : vector<16xf32> to vector<16x1xf32>
    %30 = tpu.reciprocal %29 {approx = true} : vector<16x1xf32> -> vector<16x1xf32>
    %31 = vector.broadcast %30 : vector<16x1xf32> to vector<16x16xf32>
    %32 = arith.mulf %27, %31 : vector<16x16xf32>
    %33 = arith.truncf %32 : vector<16x16xf32> to vector<16x16xbf16>
    %34 = vector.extract_strided_slice %15 {offsets = [0, 0], sizes = [16, 8], strides = [1, 1]} : vector<128x8xbf16> to vector<16x8xbf16>
    %cst_13 = arith.constant dense<0.000000e+00> : vector<16x8xf32>
    %35 = tpu.matmul %33, %34, %cst_13 {dimension_numbers = #tpu.dot_dimension_numbers<[1], [0], [0], [1], [0, 0, 1, 1], [], []>} : vector<16x16xbf16>, vector<16x8xbf16>, vector<16x8xf32> -> vector<16x8xf32>
    %36 = vector.extract_strided_slice %11 {offsets = [16, 0], sizes = [16, 8], strides = [1, 1]} : vector<128x8xbf16> to vector<16x8xbf16>
    %37 = vector.extract_strided_slice %13 {offsets = [16, 0], sizes = [16, 8], strides = [1, 1]} : vector<128x8xbf16> to vector<16x8xbf16>
    %38 = tpu.transpose %37, [1, 0] : vector<16x8xbf16> -> vector<8x16xbf16>
    %cst_14 = arith.constant dense<0.000000e+00> : vector<16x16xf32>
    %39 = tpu.matmul %36, %38, %cst_14 {dimension_numbers = #tpu.dot_dimension_numbers<[1], [0], [0], [1], [0, 0, 1, 1], [], []>} : vector<16x8xbf16>, vector<8x16xbf16>, vector<16x16xf32> -> vector<16x16xf32>
    %c1 = arith.constant 1 : index
    %c0_15 = arith.constant 0 : index
    %c0_16 = arith.constant 0 : index
    %c0_17 = arith.constant 0 : index
    %40 = vector.load %arg6[%c1, %c0_15, %c0_16, %c0_17] : memref<4x4x16x16xf32, #tpu.memory_space<vmem>>, vector<1x1x16x16xf32>
    %41 = vector.shape_cast %40 : vector<1x1x16x16xf32> to vector<16x16xf32>
    %42 = arith.addf %39, %41 : vector<16x16xf32>
    %cst_18 = arith.constant dense<0xFF800000> : vector<16xf32>
    %43 = vector.multi_reduction <maximumf>, %42, %cst_18 [1] : vector<16x16xf32> to vector<16xf32>
    %44 = vector.shape_cast %43 : vector<16xf32> to vector<16x1xf32>
    %45 = vector.broadcast %44 : vector<16x1xf32> to vector<16x16xf32>
    %46 = arith.subf %42, %45 : vector<16x16xf32>
    %47 = math.exp %46 : vector<16x16xf32>
    %cst_19 = arith.constant dense<0.000000e+00> : vector<16xf32>
    %48 = vector.multi_reduction <add>, %47, %cst_19 [1] : vector<16x16xf32> to vector<16xf32>
    %49 = vector.shape_cast %48 : vector<16xf32> to vector<16x1xf32>
    %50 = tpu.reciprocal %49 {approx = true} : vector<16x1xf32> -> vector<16x1xf32>
    %51 = vector.broadcast %50 : vector<16x1xf32> to vector<16x16xf32>
    %52 = arith.mulf %47, %51 : vector<16x16xf32>
    %53 = arith.truncf %52 : vector<16x16xf32> to vector<16x16xbf16>
    %54 = vector.extract_strided_slice %15 {offsets = [16, 0], sizes = [16, 8], strides = [1, 1]} : vector<128x8xbf16> to vector<16x8xbf16>
    %cst_20 = arith.constant dense<0.000000e+00> : vector<16x8xf32>
    %55 = tpu.matmul %53, %54, %cst_20 {dimension_numbers = #tpu.dot_dimension_numbers<[1], [0], [0], [1], [0, 0, 1, 1], [], []>} : vector<16x16xbf16>, vector<16x8xbf16>, vector<16x8xf32> -> vector<16x8xf32>
    %56 = vector.extract_strided_slice %11 {offsets = [32, 0], sizes = [16, 8], strides = [1, 1]} : vector<128x8xbf16> to vector<16x8xbf16>
    %57 = vector.extract_strided_slice %13 {offsets = [32, 0], sizes = [16, 8], strides = [1, 1]} : vector<128x8xbf16> to vector<16x8xbf16>
    %58 = tpu.transpose %57, [1, 0] : vector<16x8xbf16> -> vector<8x16xbf16>
    %cst_21 = arith.constant dense<0.000000e+00> : vector<16x16xf32>
    %59 = tpu.matmul %56, %58, %cst_21 {dimension_numbers = #tpu.dot_dimension_numbers<[1], [0], [0], [1], [0, 0, 1, 1], [], []>} : vector<16x8xbf16>, vector<8x16xbf16>, vector<16x16xf32> -> vector<16x16xf32>
    %c2 = arith.constant 2 : index
    %c0_22 = arith.constant 0 : index
    %c0_23 = arith.constant 0 : index
    %c0_24 = arith.constant 0 : index
    %60 = vector.load %arg6[%c2, %c0_22, %c0_23, %c0_24] : memref<4x4x16x16xf32, #tpu.memory_space<vmem>>, vector<1x1x16x16xf32>
    %61 = vector.shape_cast %60 : vector<1x1x16x16xf32> to vector<16x16xf32>
    %62 = arith.addf %59, %61 : vector<16x16xf32>
    %cst_25 = arith.constant dense<0xFF800000> : vector<16xf32>
    %63 = vector.multi_reduction <maximumf>, %62, %cst_25 [1] : vector<16x16xf32> to vector<16xf32>
    %64 = vector.shape_cast %63 : vector<16xf32> to vector<16x1xf32>
    %65 = vector.broadcast %64 : vector<16x1xf32> to vector<16x16xf32>
    %66 = arith.subf %62, %65 : vector<16x16xf32>
    %67 = math.exp %66 : vector<16x16xf32>
    %cst_26 = arith.constant dense<0.000000e+00> : vector<16xf32>
    %68 = vector.multi_reduction <add>, %67, %cst_26 [1] : vector<16x16xf32> to vector<16xf32>
    %69 = vector.shape_cast %68 : vector<16xf32> to vector<16x1xf32>
    %70 = tpu.reciprocal %69 {approx = true} : vector<16x1xf32> -> vector<16x1xf32>
    %71 = vector.broadcast %70 : vector<16x1xf32> to vector<16x16xf32>
    %72 = arith.mulf %67, %71 : vector<16x16xf32>
    %73 = arith.truncf %72 : vector<16x16xf32> to vector<16x16xbf16>
    %74 = vector.extract_strided_slice %15 {offsets = [32, 0], sizes = [16, 8], strides = [1, 1]} : vector<128x8xbf16> to vector<16x8xbf16>
    %cst_27 = arith.constant dense<0.000000e+00> : vector<16x8xf32>
    %75 = tpu.matmul %73, %74, %cst_27 {dimension_numbers = #tpu.dot_dimension_numbers<[1], [0], [0], [1], [0, 0, 1, 1], [], []>} : vector<16x16xbf16>, vector<16x8xbf16>, vector<16x8xf32> -> vector<16x8xf32>
    %76 = vector.extract_strided_slice %11 {offsets = [48, 0], sizes = [16, 8], strides = [1, 1]} : vector<128x8xbf16> to vector<16x8xbf16>
    %77 = vector.extract_strided_slice %13 {offsets = [48, 0], sizes = [16, 8], strides = [1, 1]} : vector<128x8xbf16> to vector<16x8xbf16>
    %78 = tpu.transpose %77, [1, 0] : vector<16x8xbf16> -> vector<8x16xbf16>
    %cst_28 = arith.constant dense<0.000000e+00> : vector<16x16xf32>
    %79 = tpu.matmul %76, %78, %cst_28 {dimension_numbers = #tpu.dot_dimension_numbers<[1], [0], [0], [1], [0, 0, 1, 1], [], []>} : vector<16x8xbf16>, vector<8x16xbf16>, vector<16x16xf32> -> vector<16x16xf32>
    %c3 = arith.constant 3 : index
    %c0_29 = arith.constant 0 : index
    %c0_30 = arith.constant 0 : index
    %c0_31 = arith.constant 0 : index
    %80 = vector.load %arg6[%c3, %c0_29, %c0_30, %c0_31] : memref<4x4x16x16xf32, #tpu.memory_space<vmem>>, vector<1x1x16x16xf32>
    %81 = vector.shape_cast %80 : vector<1x1x16x16xf32> to vector<16x16xf32>
    %82 = arith.addf %79, %81 : vector<16x16xf32>
    %cst_32 = arith.constant dense<0xFF800000> : vector<16xf32>
    %83 = vector.multi_reduction <maximumf>, %82, %cst_32 [1] : vector<16x16xf32> to vector<16xf32>
    %84 = vector.shape_cast %83 : vector<16xf32> to vector<16x1xf32>
    %85 = vector.broadcast %84 : vector<16x1xf32> to vector<16x16xf32>
    %86 = arith.subf %82, %85 : vector<16x16xf32>
    %87 = math.exp %86 : vector<16x16xf32>
    %cst_33 = arith.constant dense<0.000000e+00> : vector<16xf32>
    %88 = vector.multi_reduction <add>, %87, %cst_33 [1] : vector<16x16xf32> to vector<16xf32>
    %89 = vector.shape_cast %88 : vector<16xf32> to vector<16x1xf32>
    %90 = tpu.reciprocal %89 {approx = true} : vector<16x1xf32> -> vector<16x1xf32>
    %91 = vector.broadcast %90 : vector<16x1xf32> to vector<16x16xf32>
    %92 = arith.mulf %87, %91 : vector<16x16xf32>
    %93 = arith.truncf %92 : vector<16x16xf32> to vector<16x16xbf16>
    %94 = vector.extract_strided_slice %15 {offsets = [48, 0], sizes = [16, 8], strides = [1, 1]} : vector<128x8xbf16> to vector<16x8xbf16>
    %cst_34 = arith.constant dense<0.000000e+00> : vector<16x8xf32>
    %95 = tpu.matmul %93, %94, %cst_34 {dimension_numbers = #tpu.dot_dimension_numbers<[1], [0], [0], [1], [0, 0, 1, 1], [], []>} : vector<16x16xbf16>, vector<16x8xbf16>, vector<16x8xf32> -> vector<16x8xf32>
    %96 = vector.extract_strided_slice %11 {offsets = [64, 0], sizes = [16, 8], strides = [1, 1]} : vector<128x8xbf16> to vector<16x8xbf16>
    %97 = vector.extract_strided_slice %13 {offsets = [64, 0], sizes = [16, 8], strides = [1, 1]} : vector<128x8xbf16> to vector<16x8xbf16>
    %98 = tpu.transpose %97, [1, 0] : vector<16x8xbf16> -> vector<8x16xbf16>
    %cst_35 = arith.constant dense<0.000000e+00> : vector<16x16xf32>
    %99 = tpu.matmul %96, %98, %cst_35 {dimension_numbers = #tpu.dot_dimension_numbers<[1], [0], [0], [1], [0, 0, 1, 1], [], []>} : vector<16x8xbf16>, vector<8x16xbf16>, vector<16x16xf32> -> vector<16x16xf32>
    %c0_36 = arith.constant 0 : index
    %c0_37 = arith.constant 0 : index
    %c0_38 = arith.constant 0 : index
    %c0_39 = arith.constant 0 : index
    %100 = vector.load %arg6[%c0_36, %c0_37, %c0_38, %c0_39] : memref<4x4x16x16xf32, #tpu.memory_space<vmem>>, vector<1x1x16x16xf32>
    %101 = vector.shape_cast %100 : vector<1x1x16x16xf32> to vector<16x16xf32>
    %102 = arith.addf %99, %101 : vector<16x16xf32>
    %cst_40 = arith.constant dense<0xFF800000> : vector<16xf32>
    %103 = vector.multi_reduction <maximumf>, %102, %cst_40 [1] : vector<16x16xf32> to vector<16xf32>
    %104 = vector.shape_cast %103 : vector<16xf32> to vector<16x1xf32>
    %105 = vector.broadcast %104 : vector<16x1xf32> to vector<16x16xf32>
    %106 = arith.subf %102, %105 : vector<16x16xf32>
    %107 = math.exp %106 : vector<16x16xf32>
    %cst_41 = arith.constant dense<0.000000e+00> : vector<16xf32>
    %108 = vector.multi_reduction <add>, %107, %cst_41 [1] : vector<16x16xf32> to vector<16xf32>
    %109 = vector.shape_cast %108 : vector<16xf32> to vector<16x1xf32>
    %110 = tpu.reciprocal %109 {approx = true} : vector<16x1xf32> -> vector<16x1xf32>
    %111 = vector.broadcast %110 : vector<16x1xf32> to vector<16x16xf32>
    %112 = arith.mulf %107, %111 : vector<16x16xf32>
    %113 = arith.truncf %112 : vector<16x16xf32> to vector<16x16xbf16>
    %114 = vector.extract_strided_slice %15 {offsets = [64, 0], sizes = [16, 8], strides = [1, 1]} : vector<128x8xbf16> to vector<16x8xbf16>
    %cst_42 = arith.constant dense<0.000000e+00> : vector<16x8xf32>
    %115 = tpu.matmul %113, %114, %cst_42 {dimension_numbers = #tpu.dot_dimension_numbers<[1], [0], [0], [1], [0, 0, 1, 1], [], []>} : vector<16x16xbf16>, vector<16x8xbf16>, vector<16x8xf32> -> vector<16x8xf32>
    %116 = vector.extract_strided_slice %11 {offsets = [80, 0], sizes = [16, 8], strides = [1, 1]} : vector<128x8xbf16> to vector<16x8xbf16>
    %117 = vector.extract_strided_slice %13 {offsets = [80, 0], sizes = [16, 8], strides = [1, 1]} : vector<128x8xbf16> to vector<16x8xbf16>
    %118 = tpu.transpose %117, [1, 0] : vector<16x8xbf16> -> vector<8x16xbf16>
    %cst_43 = arith.constant dense<0.000000e+00> : vector<16x16xf32>
    %119 = tpu.matmul %116, %118, %cst_43 {dimension_numbers = #tpu.dot_dimension_numbers<[1], [0], [0], [1], [0, 0, 1, 1], [], []>} : vector<16x8xbf16>, vector<8x16xbf16>, vector<16x16xf32> -> vector<16x16xf32>
    %c1_44 = arith.constant 1 : index
    %c0_45 = arith.constant 0 : index
    %c0_46 = arith.constant 0 : index
    %c0_47 = arith.constant 0 : index
    %120 = vector.load %arg6[%c1_44, %c0_45, %c0_46, %c0_47] : memref<4x4x16x16xf32, #tpu.memory_space<vmem>>, vector<1x1x16x16xf32>
    %121 = vector.shape_cast %120 : vector<1x1x16x16xf32> to vector<16x16xf32>
    %122 = arith.addf %119, %121 : vector<16x16xf32>
    %cst_48 = arith.constant dense<0xFF800000> : vector<16xf32>
    %123 = vector.multi_reduction <maximumf>, %122, %cst_48 [1] : vector<16x16xf32> to vector<16xf32>
    %124 = vector.shape_cast %123 : vector<16xf32> to vector<16x1xf32>
    %125 = vector.broadcast %124 : vector<16x1xf32> to vector<16x16xf32>
    %126 = arith.subf %122, %125 : vector<16x16xf32>
    %127 = math.exp %126 : vector<16x16xf32>
    %cst_49 = arith.constant dense<0.000000e+00> : vector<16xf32>
    %128 = vector.multi_reduction <add>, %127, %cst_49 [1] : vector<16x16xf32> to vector<16xf32>
    %129 = vector.shape_cast %128 : vector<16xf32> to vector<16x1xf32>
    %130 = tpu.reciprocal %129 {approx = true} : vector<16x1xf32> -> vector<16x1xf32>
    %131 = vector.broadcast %130 : vector<16x1xf32> to vector<16x16xf32>
    %132 = arith.mulf %127, %131 : vector<16x16xf32>
    %133 = arith.truncf %132 : vector<16x16xf32> to vector<16x16xbf16>
    %134 = vector.extract_strided_slice %15 {offsets = [80, 0], sizes = [16, 8], strides = [1, 1]} : vector<128x8xbf16> to vector<16x8xbf16>
    %cst_50 = arith.constant dense<0.000000e+00> : vector<16x8xf32>
    %135 = tpu.matmul %133, %134, %cst_50 {dimension_numbers = #tpu.dot_dimension_numbers<[1], [0], [0], [1], [0, 0, 1, 1], [], []>} : vector<16x16xbf16>, vector<16x8xbf16>, vector<16x8xf32> -> vector<16x8xf32>
    %136 = vector.extract_strided_slice %11 {offsets = [96, 0], sizes = [16, 8], strides = [1, 1]} : vector<128x8xbf16> to vector<16x8xbf16>
    %137 = vector.extract_strided_slice %13 {offsets = [96, 0], sizes = [16, 8], strides = [1, 1]} : vector<128x8xbf16> to vector<16x8xbf16>
    %138 = tpu.transpose %137, [1, 0] : vector<16x8xbf16> -> vector<8x16xbf16>
    %cst_51 = arith.constant dense<0.000000e+00> : vector<16x16xf32>
    %139 = tpu.matmul %136, %138, %cst_51 {dimension_numbers = #tpu.dot_dimension_numbers<[1], [0], [0], [1], [0, 0, 1, 1], [], []>} : vector<16x8xbf16>, vector<8x16xbf16>, vector<16x16xf32> -> vector<16x16xf32>
    %c2_52 = arith.constant 2 : index
    %c0_53 = arith.constant 0 : index
    %c0_54 = arith.constant 0 : index
    %c0_55 = arith.constant 0 : index
    %140 = vector.load %arg6[%c2_52, %c0_53, %c0_54, %c0_55] : memref<4x4x16x16xf32, #tpu.memory_space<vmem>>, vector<1x1x16x16xf32>
    %141 = vector.shape_cast %140 : vector<1x1x16x16xf32> to vector<16x16xf32>
    %142 = arith.addf %139, %141 : vector<16x16xf32>
    %cst_56 = arith.constant dense<0xFF800000> : vector<16xf32>
    %143 = vector.multi_reduction <maximumf>, %142, %cst_56 [1] : vector<16x16xf32> to vector<16xf32>
    %144 = vector.shape_cast %143 : vector<16xf32> to vector<16x1xf32>
    %145 = vector.broadcast %144 : vector<16x1xf32> to vector<16x16xf32>
    %146 = arith.subf %142, %145 : vector<16x16xf32>
    %147 = math.exp %146 : vector<16x16xf32>
    %cst_57 = arith.constant dense<0.000000e+00> : vector<16xf32>
    %148 = vector.multi_reduction <add>, %147, %cst_57 [1] : vector<16x16xf32> to vector<16xf32>
    %149 = vector.shape_cast %148 : vector<16xf32> to vector<16x1xf32>
    %150 = tpu.reciprocal %149 {approx = true} : vector<16x1xf32> -> vector<16x1xf32>
    %151 = vector.broadcast %150 : vector<16x1xf32> to vector<16x16xf32>
    %152 = arith.mulf %147, %151 : vector<16x16xf32>
    %153 = arith.truncf %152 : vector<16x16xf32> to vector<16x16xbf16>
    %154 = vector.extract_strided_slice %15 {offsets = [96, 0], sizes = [16, 8], strides = [1, 1]} : vector<128x8xbf16> to vector<16x8xbf16>
    %cst_58 = arith.constant dense<0.000000e+00> : vector<16x8xf32>
    %155 = tpu.matmul %153, %154, %cst_58 {dimension_numbers = #tpu.dot_dimension_numbers<[1], [0], [0], [1], [0, 0, 1, 1], [], []>} : vector<16x16xbf16>, vector<16x8xbf16>, vector<16x8xf32> -> vector<16x8xf32>
    %156 = vector.extract_strided_slice %11 {offsets = [112, 0], sizes = [16, 8], strides = [1, 1]} : vector<128x8xbf16> to vector<16x8xbf16>
    %157 = vector.extract_strided_slice %13 {offsets = [112, 0], sizes = [16, 8], strides = [1, 1]} : vector<128x8xbf16> to vector<16x8xbf16>
    %158 = tpu.transpose %157, [1, 0] : vector<16x8xbf16> -> vector<8x16xbf16>
    %cst_59 = arith.constant dense<0.000000e+00> : vector<16x16xf32>
    %159 = tpu.matmul %156, %158, %cst_59 {dimension_numbers = #tpu.dot_dimension_numbers<[1], [0], [0], [1], [0, 0, 1, 1], [], []>} : vector<16x8xbf16>, vector<8x16xbf16>, vector<16x16xf32> -> vector<16x16xf32>
    %c3_60 = arith.constant 3 : index
    %c0_61 = arith.constant 0 : index
    %c0_62 = arith.constant 0 : index
    %c0_63 = arith.constant 0 : index
    %160 = vector.load %arg6[%c3_60, %c0_61, %c0_62, %c0_63] : memref<4x4x16x16xf32, #tpu.memory_space<vmem>>, vector<1x1x16x16xf32>
    %161 = vector.shape_cast %160 : vector<1x1x16x16xf32> to vector<16x16xf32>
    %162 = arith.addf %159, %161 : vector<16x16xf32>
    %cst_64 = arith.constant dense<0xFF800000> : vector<16xf32>
    %163 = vector.multi_reduction <maximumf>, %162, %cst_64 [1] : vector<16x16xf32> to vector<16xf32>
    %164 = vector.shape_cast %163 : vector<16xf32> to vector<16x1xf32>
    %165 = vector.broadcast %164 : vector<16x1xf32> to vector<16x16xf32>
    %166 = arith.subf %162, %165 : vector<16x16xf32>
    %167 = math.exp %166 : vector<16x16xf32>
    %cst_65 = arith.constant dense<0.000000e+00> : vector<16xf32>
    %168 = vector.multi_reduction <add>, %167, %cst_65 [1] : vector<16x16xf32> to vector<16xf32>
    %169 = vector.shape_cast %168 : vector<16xf32> to vector<16x1xf32>
    %170 = tpu.reciprocal %169 {approx = true} : vector<16x1xf32> -> vector<16x1xf32>
    %171 = vector.broadcast %170 : vector<16x1xf32> to vector<16x16xf32>
    %172 = arith.mulf %167, %171 : vector<16x16xf32>
    %173 = arith.truncf %172 : vector<16x16xf32> to vector<16x16xbf16>
    %174 = vector.extract_strided_slice %15 {offsets = [112, 0], sizes = [16, 8], strides = [1, 1]} : vector<128x8xbf16> to vector<16x8xbf16>
    %cst_66 = arith.constant dense<0.000000e+00> : vector<16x8xf32>
    %175 = tpu.matmul %173, %174, %cst_66 {dimension_numbers = #tpu.dot_dimension_numbers<[1], [0], [0], [1], [0, 0, 1, 1], [], []>} : vector<16x16xbf16>, vector<16x8xbf16>, vector<16x8xf32> -> vector<16x8xf32>
    %176 = tpu.concatenate %35, %55, %75, %95, %115, %135, %155, %175 in 0 : vector<16x8xf32>, vector<16x8xf32>, vector<16x8xf32>, vector<16x8xf32>, vector<16x8xf32>, vector<16x8xf32>, vector<16x8xf32>, vector<16x8xf32> -> vector<128x8xf32>
    %177 = vector.extract_strided_slice %9 {offsets = [0, 8], sizes = [128, 8], strides = [1, 1]} : vector<128x96xf32> to vector<128x8xf32>
    %178 = arith.truncf %177 : vector<128x8xf32> to vector<128x8xbf16>
    %179 = vector.extract_strided_slice %9 {offsets = [0, 40], sizes = [128, 8], strides = [1, 1]} : vector<128x96xf32> to vector<128x8xf32>
    %180 = arith.truncf %179 : vector<128x8xf32> to vector<128x8xbf16>
    %181 = vector.extract_strided_slice %9 {offsets = [0, 72], sizes = [128, 8], strides = [1, 1]} : vector<128x96xf32> to vector<128x8xf32>
    %182 = arith.truncf %181 : vector<128x8xf32> to vector<128x8xbf16>
    %183 = vector.extract_strided_slice %178 {offsets = [0, 0], sizes = [16, 8], strides = [1, 1]} : vector<128x8xbf16> to vector<16x8xbf16>
    %184 = vector.extract_strided_slice %180 {offsets = [0, 0], sizes = [16, 8], strides = [1, 1]} : vector<128x8xbf16> to vector<16x8xbf16>
    %185 = tpu.transpose %184, [1, 0] : vector<16x8xbf16> -> vector<8x16xbf16>
    %cst_67 = arith.constant dense<0.000000e+00> : vector<16x16xf32>
    %186 = tpu.matmul %183, %185, %cst_67 {dimension_numbers = #tpu.dot_dimension_numbers<[1], [0], [0], [1], [0, 0, 1, 1], [], []>} : vector<16x8xbf16>, vector<8x16xbf16>, vector<16x16xf32> -> vector<16x16xf32>
    %c0_68 = arith.constant 0 : index
    %c1_69 = arith.constant 1 : index
    %c0_70 = arith.constant 0 : index
    %c0_71 = arith.constant 0 : index
    %187 = vector.load %arg6[%c0_68, %c1_69, %c0_70, %c0_71] : memref<4x4x16x16xf32, #tpu.memory_space<vmem>>, vector<1x1x16x16xf32>
    %188 = vector.shape_cast %187 : vector<1x1x16x16xf32> to vector<16x16xf32>
    %189 = arith.addf %186, %188 : vector<16x16xf32>
    %cst_72 = arith.constant dense<0xFF800000> : vector<16xf32>
    %190 = vector.multi_reduction <maximumf>, %189, %cst_72 [1] : vector<16x16xf32> to vector<16xf32>
    %191 = vector.shape_cast %190 : vector<16xf32> to vector<16x1xf32>
    %192 = vector.broadcast %191 : vector<16x1xf32> to vector<16x16xf32>
    %193 = arith.subf %189, %192 : vector<16x16xf32>
    %194 = math.exp %193 : vector<16x16xf32>
    %cst_73 = arith.constant dense<0.000000e+00> : vector<16xf32>
    %195 = vector.multi_reduction <add>, %194, %cst_73 [1] : vector<16x16xf32> to vector<16xf32>
    %196 = vector.shape_cast %195 : vector<16xf32> to vector<16x1xf32>
    %197 = tpu.reciprocal %196 {approx = true} : vector<16x1xf32> -> vector<16x1xf32>
    %198 = vector.broadcast %197 : vector<16x1xf32> to vector<16x16xf32>
    %199 = arith.mulf %194, %198 : vector<16x16xf32>
    %200 = arith.truncf %199 : vector<16x16xf32> to vector<16x16xbf16>
    %201 = vector.extract_strided_slice %182 {offsets = [0, 0], sizes = [16, 8], strides = [1, 1]} : vector<128x8xbf16> to vector<16x8xbf16>
    %cst_74 = arith.constant dense<0.000000e+00> : vector<16x8xf32>
    %202 = tpu.matmul %200, %201, %cst_74 {dimension_numbers = #tpu.dot_dimension_numbers<[1], [0], [0], [1], [0, 0, 1, 1], [], []>} : vector<16x16xbf16>, vector<16x8xbf16>, vector<16x8xf32> -> vector<16x8xf32>
    %203 = vector.extract_strided_slice %178 {offsets = [16, 0], sizes = [16, 8], strides = [1, 1]} : vector<128x8xbf16> to vector<16x8xbf16>
    %204 = vector.extract_strided_slice %180 {offsets = [16, 0], sizes = [16, 8], strides = [1, 1]} : vector<128x8xbf16> to vector<16x8xbf16>
    %205 = tpu.transpose %204, [1, 0] : vector<16x8xbf16> -> vector<8x16xbf16>
    %cst_75 = arith.constant dense<0.000000e+00> : vector<16x16xf32>
    %206 = tpu.matmul %203, %205, %cst_75 {dimension_numbers = #tpu.dot_dimension_numbers<[1], [0], [0], [1], [0, 0, 1, 1], [], []>} : vector<16x8xbf16>, vector<8x16xbf16>, vector<16x16xf32> -> vector<16x16xf32>
    %c1_76 = arith.constant 1 : index
    %c1_77 = arith.constant 1 : index
    %c0_78 = arith.constant 0 : index
    %c0_79 = arith.constant 0 : index
    %207 = vector.load %arg6[%c1_76, %c1_77, %c0_78, %c0_79] : memref<4x4x16x16xf32, #tpu.memory_space<vmem>>, vector<1x1x16x16xf32>
    %208 = vector.shape_cast %207 : vector<1x1x16x16xf32> to vector<16x16xf32>
    %209 = arith.addf %206, %208 : vector<16x16xf32>
    %cst_80 = arith.constant dense<0xFF800000> : vector<16xf32>
    %210 = vector.multi_reduction <maximumf>, %209, %cst_80 [1] : vector<16x16xf32> to vector<16xf32>
    %211 = vector.shape_cast %210 : vector<16xf32> to vector<16x1xf32>
    %212 = vector.broadcast %211 : vector<16x1xf32> to vector<16x16xf32>
    %213 = arith.subf %209, %212 : vector<16x16xf32>
    %214 = math.exp %213 : vector<16x16xf32>
    %cst_81 = arith.constant dense<0.000000e+00> : vector<16xf32>
    %215 = vector.multi_reduction <add>, %214, %cst_81 [1] : vector<16x16xf32> to vector<16xf32>
    %216 = vector.shape_cast %215 : vector<16xf32> to vector<16x1xf32>
    %217 = tpu.reciprocal %216 {approx = true} : vector<16x1xf32> -> vector<16x1xf32>
    %218 = vector.broadcast %217 : vector<16x1xf32> to vector<16x16xf32>
    %219 = arith.mulf %214, %218 : vector<16x16xf32>
    %220 = arith.truncf %219 : vector<16x16xf32> to vector<16x16xbf16>
    %221 = vector.extract_strided_slice %182 {offsets = [16, 0], sizes = [16, 8], strides = [1, 1]} : vector<128x8xbf16> to vector<16x8xbf16>
    %cst_82 = arith.constant dense<0.000000e+00> : vector<16x8xf32>
    %222 = tpu.matmul %220, %221, %cst_82 {dimension_numbers = #tpu.dot_dimension_numbers<[1], [0], [0], [1], [0, 0, 1, 1], [], []>} : vector<16x16xbf16>, vector<16x8xbf16>, vector<16x8xf32> -> vector<16x8xf32>
    %223 = vector.extract_strided_slice %178 {offsets = [32, 0], sizes = [16, 8], strides = [1, 1]} : vector<128x8xbf16> to vector<16x8xbf16>
    %224 = vector.extract_strided_slice %180 {offsets = [32, 0], sizes = [16, 8], strides = [1, 1]} : vector<128x8xbf16> to vector<16x8xbf16>
    %225 = tpu.transpose %224, [1, 0] : vector<16x8xbf16> -> vector<8x16xbf16>
    %cst_83 = arith.constant dense<0.000000e+00> : vector<16x16xf32>
    %226 = tpu.matmul %223, %225, %cst_83 {dimension_numbers = #tpu.dot_dimension_numbers<[1], [0], [0], [1], [0, 0, 1, 1], [], []>} : vector<16x8xbf16>, vector<8x16xbf16>, vector<16x16xf32> -> vector<16x16xf32>
    %c2_84 = arith.constant 2 : index
    %c1_85 = arith.constant 1 : index
    %c0_86 = arith.constant 0 : index
    %c0_87 = arith.constant 0 : index
    %227 = vector.load %arg6[%c2_84, %c1_85, %c0_86, %c0_87] : memref<4x4x16x16xf32, #tpu.memory_space<vmem>>, vector<1x1x16x16xf32>
    %228 = vector.shape_cast %227 : vector<1x1x16x16xf32> to vector<16x16xf32>
    %229 = arith.addf %226, %228 : vector<16x16xf32>
    %cst_88 = arith.constant dense<0xFF800000> : vector<16xf32>
    %230 = vector.multi_reduction <maximumf>, %229, %cst_88 [1] : vector<16x16xf32> to vector<16xf32>
    %231 = vector.shape_cast %230 : vector<16xf32> to vector<16x1xf32>
    %232 = vector.broadcast %231 : vector<16x1xf32> to vector<16x16xf32>
    %233 = arith.subf %229, %232 : vector<16x16xf32>
    %234 = math.exp %233 : vector<16x16xf32>
    %cst_89 = arith.constant dense<0.000000e+00> : vector<16xf32>
    %235 = vector.multi_reduction <add>, %234, %cst_89 [1] : vector<16x16xf32> to vector<16xf32>
    %236 = vector.shape_cast %235 : vector<16xf32> to vector<16x1xf32>
    %237 = tpu.reciprocal %236 {approx = true} : vector<16x1xf32> -> vector<16x1xf32>
    %238 = vector.broadcast %237 : vector<16x1xf32> to vector<16x16xf32>
    %239 = arith.mulf %234, %238 : vector<16x16xf32>
    %240 = arith.truncf %239 : vector<16x16xf32> to vector<16x16xbf16>
    %241 = vector.extract_strided_slice %182 {offsets = [32, 0], sizes = [16, 8], strides = [1, 1]} : vector<128x8xbf16> to vector<16x8xbf16>
    %cst_90 = arith.constant dense<0.000000e+00> : vector<16x8xf32>
    %242 = tpu.matmul %240, %241, %cst_90 {dimension_numbers = #tpu.dot_dimension_numbers<[1], [0], [0], [1], [0, 0, 1, 1], [], []>} : vector<16x16xbf16>, vector<16x8xbf16>, vector<16x8xf32> -> vector<16x8xf32>
    %243 = vector.extract_strided_slice %178 {offsets = [48, 0], sizes = [16, 8], strides = [1, 1]} : vector<128x8xbf16> to vector<16x8xbf16>
    %244 = vector.extract_strided_slice %180 {offsets = [48, 0], sizes = [16, 8], strides = [1, 1]} : vector<128x8xbf16> to vector<16x8xbf16>
    %245 = tpu.transpose %244, [1, 0] : vector<16x8xbf16> -> vector<8x16xbf16>
    %cst_91 = arith.constant dense<0.000000e+00> : vector<16x16xf32>
    %246 = tpu.matmul %243, %245, %cst_91 {dimension_numbers = #tpu.dot_dimension_numbers<[1], [0], [0], [1], [0, 0, 1, 1], [], []>} : vector<16x8xbf16>, vector<8x16xbf16>, vector<16x16xf32> -> vector<16x16xf32>
    %c3_92 = arith.constant 3 : index
    %c1_93 = arith.constant 1 : index
    %c0_94 = arith.constant 0 : index
    %c0_95 = arith.constant 0 : index
    %247 = vector.load %arg6[%c3_92, %c1_93, %c0_94, %c0_95] : memref<4x4x16x16xf32, #tpu.memory_space<vmem>>, vector<1x1x16x16xf32>
    %248 = vector.shape_cast %247 : vector<1x1x16x16xf32> to vector<16x16xf32>
    %249 = arith.addf %246, %248 : vector<16x16xf32>
    %cst_96 = arith.constant dense<0xFF800000> : vector<16xf32>
    %250 = vector.multi_reduction <maximumf>, %249, %cst_96 [1] : vector<16x16xf32> to vector<16xf32>
    %251 = vector.shape_cast %250 : vector<16xf32> to vector<16x1xf32>
    %252 = vector.broadcast %251 : vector<16x1xf32> to vector<16x16xf32>
    %253 = arith.subf %249, %252 : vector<16x16xf32>
    %254 = math.exp %253 : vector<16x16xf32>
    %cst_97 = arith.constant dense<0.000000e+00> : vector<16xf32>
    %255 = vector.multi_reduction <add>, %254, %cst_97 [1] : vector<16x16xf32> to vector<16xf32>
    %256 = vector.shape_cast %255 : vector<16xf32> to vector<16x1xf32>
    %257 = tpu.reciprocal %256 {approx = true} : vector<16x1xf32> -> vector<16x1xf32>
    %258 = vector.broadcast %257 : vector<16x1xf32> to vector<16x16xf32>
    %259 = arith.mulf %254, %258 : vector<16x16xf32>
    %260 = arith.truncf %259 : vector<16x16xf32> to vector<16x16xbf16>
    %261 = vector.extract_strided_slice %182 {offsets = [48, 0], sizes = [16, 8], strides = [1, 1]} : vector<128x8xbf16> to vector<16x8xbf16>
    %cst_98 = arith.constant dense<0.000000e+00> : vector<16x8xf32>
    %262 = tpu.matmul %260, %261, %cst_98 {dimension_numbers = #tpu.dot_dimension_numbers<[1], [0], [0], [1], [0, 0, 1, 1], [], []>} : vector<16x16xbf16>, vector<16x8xbf16>, vector<16x8xf32> -> vector<16x8xf32>
    %263 = vector.extract_strided_slice %178 {offsets = [64, 0], sizes = [16, 8], strides = [1, 1]} : vector<128x8xbf16> to vector<16x8xbf16>
    %264 = vector.extract_strided_slice %180 {offsets = [64, 0], sizes = [16, 8], strides = [1, 1]} : vector<128x8xbf16> to vector<16x8xbf16>
    %265 = tpu.transpose %264, [1, 0] : vector<16x8xbf16> -> vector<8x16xbf16>
    %cst_99 = arith.constant dense<0.000000e+00> : vector<16x16xf32>
    %266 = tpu.matmul %263, %265, %cst_99 {dimension_numbers = #tpu.dot_dimension_numbers<[1], [0], [0], [1], [0, 0, 1, 1], [], []>} : vector<16x8xbf16>, vector<8x16xbf16>, vector<16x16xf32> -> vector<16x16xf32>
    %c0_100 = arith.constant 0 : index
    %c1_101 = arith.constant 1 : index
    %c0_102 = arith.constant 0 : index
    %c0_103 = arith.constant 0 : index
    %267 = vector.load %arg6[%c0_100, %c1_101, %c0_102, %c0_103] : memref<4x4x16x16xf32, #tpu.memory_space<vmem>>, vector<1x1x16x16xf32>
    %268 = vector.shape_cast %267 : vector<1x1x16x16xf32> to vector<16x16xf32>
    %269 = arith.addf %266, %268 : vector<16x16xf32>
    %cst_104 = arith.constant dense<0xFF800000> : vector<16xf32>
    %270 = vector.multi_reduction <maximumf>, %269, %cst_104 [1] : vector<16x16xf32> to vector<16xf32>
    %271 = vector.shape_cast %270 : vector<16xf32> to vector<16x1xf32>
    %272 = vector.broadcast %271 : vector<16x1xf32> to vector<16x16xf32>
    %273 = arith.subf %269, %272 : vector<16x16xf32>
    %274 = math.exp %273 : vector<16x16xf32>
    %cst_105 = arith.constant dense<0.000000e+00> : vector<16xf32>
    %275 = vector.multi_reduction <add>, %274, %cst_105 [1] : vector<16x16xf32> to vector<16xf32>
    %276 = vector.shape_cast %275 : vector<16xf32> to vector<16x1xf32>
    %277 = tpu.reciprocal %276 {approx = true} : vector<16x1xf32> -> vector<16x1xf32>
    %278 = vector.broadcast %277 : vector<16x1xf32> to vector<16x16xf32>
    %279 = arith.mulf %274, %278 : vector<16x16xf32>
    %280 = arith.truncf %279 : vector<16x16xf32> to vector<16x16xbf16>
    %281 = vector.extract_strided_slice %182 {offsets = [64, 0], sizes = [16, 8], strides = [1, 1]} : vector<128x8xbf16> to vector<16x8xbf16>
    %cst_106 = arith.constant dense<0.000000e+00> : vector<16x8xf32>
    %282 = tpu.matmul %280, %281, %cst_106 {dimension_numbers = #tpu.dot_dimension_numbers<[1], [0], [0], [1], [0, 0, 1, 1], [], []>} : vector<16x16xbf16>, vector<16x8xbf16>, vector<16x8xf32> -> vector<16x8xf32>
    %283 = vector.extract_strided_slice %178 {offsets = [80, 0], sizes = [16, 8], strides = [1, 1]} : vector<128x8xbf16> to vector<16x8xbf16>
    %284 = vector.extract_strided_slice %180 {offsets = [80, 0], sizes = [16, 8], strides = [1, 1]} : vector<128x8xbf16> to vector<16x8xbf16>
    %285 = tpu.transpose %284, [1, 0] : vector<16x8xbf16> -> vector<8x16xbf16>
    %cst_107 = arith.constant dense<0.000000e+00> : vector<16x16xf32>
    %286 = tpu.matmul %283, %285, %cst_107 {dimension_numbers = #tpu.dot_dimension_numbers<[1], [0], [0], [1], [0, 0, 1, 1], [], []>} : vector<16x8xbf16>, vector<8x16xbf16>, vector<16x16xf32> -> vector<16x16xf32>
    %c1_108 = arith.constant 1 : index
    %c1_109 = arith.constant 1 : index
    %c0_110 = arith.constant 0 : index
    %c0_111 = arith.constant 0 : index
    %287 = vector.load %arg6[%c1_108, %c1_109, %c0_110, %c0_111] : memref<4x4x16x16xf32, #tpu.memory_space<vmem>>, vector<1x1x16x16xf32>
    %288 = vector.shape_cast %287 : vector<1x1x16x16xf32> to vector<16x16xf32>
    %289 = arith.addf %286, %288 : vector<16x16xf32>
    %cst_112 = arith.constant dense<0xFF800000> : vector<16xf32>
    %290 = vector.multi_reduction <maximumf>, %289, %cst_112 [1] : vector<16x16xf32> to vector<16xf32>
    %291 = vector.shape_cast %290 : vector<16xf32> to vector<16x1xf32>
    %292 = vector.broadcast %291 : vector<16x1xf32> to vector<16x16xf32>
    %293 = arith.subf %289, %292 : vector<16x16xf32>
    %294 = math.exp %293 : vector<16x16xf32>
    %cst_113 = arith.constant dense<0.000000e+00> : vector<16xf32>
    %295 = vector.multi_reduction <add>, %294, %cst_113 [1] : vector<16x16xf32> to vector<16xf32>
    %296 = vector.shape_cast %295 : vector<16xf32> to vector<16x1xf32>
    %297 = tpu.reciprocal %296 {approx = true} : vector<16x1xf32> -> vector<16x1xf32>
    %298 = vector.broadcast %297 : vector<16x1xf32> to vector<16x16xf32>
    %299 = arith.mulf %294, %298 : vector<16x16xf32>
    %300 = arith.truncf %299 : vector<16x16xf32> to vector<16x16xbf16>
    %301 = vector.extract_strided_slice %182 {offsets = [80, 0], sizes = [16, 8], strides = [1, 1]} : vector<128x8xbf16> to vector<16x8xbf16>
    %cst_114 = arith.constant dense<0.000000e+00> : vector<16x8xf32>
    %302 = tpu.matmul %300, %301, %cst_114 {dimension_numbers = #tpu.dot_dimension_numbers<[1], [0], [0], [1], [0, 0, 1, 1], [], []>} : vector<16x16xbf16>, vector<16x8xbf16>, vector<16x8xf32> -> vector<16x8xf32>
    %303 = vector.extract_strided_slice %178 {offsets = [96, 0], sizes = [16, 8], strides = [1, 1]} : vector<128x8xbf16> to vector<16x8xbf16>
    %304 = vector.extract_strided_slice %180 {offsets = [96, 0], sizes = [16, 8], strides = [1, 1]} : vector<128x8xbf16> to vector<16x8xbf16>
    %305 = tpu.transpose %304, [1, 0] : vector<16x8xbf16> -> vector<8x16xbf16>
    %cst_115 = arith.constant dense<0.000000e+00> : vector<16x16xf32>
    %306 = tpu.matmul %303, %305, %cst_115 {dimension_numbers = #tpu.dot_dimension_numbers<[1], [0], [0], [1], [0, 0, 1, 1], [], []>} : vector<16x8xbf16>, vector<8x16xbf16>, vector<16x16xf32> -> vector<16x16xf32>
    %c2_116 = arith.constant 2 : index
    %c1_117 = arith.constant 1 : index
    %c0_118 = arith.constant 0 : index
    %c0_119 = arith.constant 0 : index
    %307 = vector.load %arg6[%c2_116, %c1_117, %c0_118, %c0_119] : memref<4x4x16x16xf32, #tpu.memory_space<vmem>>, vector<1x1x16x16xf32>
    %308 = vector.shape_cast %307 : vector<1x1x16x16xf32> to vector<16x16xf32>
    %309 = arith.addf %306, %308 : vector<16x16xf32>
    %cst_120 = arith.constant dense<0xFF800000> : vector<16xf32>
    %310 = vector.multi_reduction <maximumf>, %309, %cst_120 [1] : vector<16x16xf32> to vector<16xf32>
    %311 = vector.shape_cast %310 : vector<16xf32> to vector<16x1xf32>
    %312 = vector.broadcast %311 : vector<16x1xf32> to vector<16x16xf32>
    %313 = arith.subf %309, %312 : vector<16x16xf32>
    %314 = math.exp %313 : vector<16x16xf32>
    %cst_121 = arith.constant dense<0.000000e+00> : vector<16xf32>
    %315 = vector.multi_reduction <add>, %314, %cst_121 [1] : vector<16x16xf32> to vector<16xf32>
    %316 = vector.shape_cast %315 : vector<16xf32> to vector<16x1xf32>
    %317 = tpu.reciprocal %316 {approx = true} : vector<16x1xf32> -> vector<16x1xf32>
    %318 = vector.broadcast %317 : vector<16x1xf32> to vector<16x16xf32>
    %319 = arith.mulf %314, %318 : vector<16x16xf32>
    %320 = arith.truncf %319 : vector<16x16xf32> to vector<16x16xbf16>
    %321 = vector.extract_strided_slice %182 {offsets = [96, 0], sizes = [16, 8], strides = [1, 1]} : vector<128x8xbf16> to vector<16x8xbf16>
    %cst_122 = arith.constant dense<0.000000e+00> : vector<16x8xf32>
    %322 = tpu.matmul %320, %321, %cst_122 {dimension_numbers = #tpu.dot_dimension_numbers<[1], [0], [0], [1], [0, 0, 1, 1], [], []>} : vector<16x16xbf16>, vector<16x8xbf16>, vector<16x8xf32> -> vector<16x8xf32>
    %323 = vector.extract_strided_slice %178 {offsets = [112, 0], sizes = [16, 8], strides = [1, 1]} : vector<128x8xbf16> to vector<16x8xbf16>
    %324 = vector.extract_strided_slice %180 {offsets = [112, 0], sizes = [16, 8], strides = [1, 1]} : vector<128x8xbf16> to vector<16x8xbf16>
    %325 = tpu.transpose %324, [1, 0] : vector<16x8xbf16> -> vector<8x16xbf16>
    %cst_123 = arith.constant dense<0.000000e+00> : vector<16x16xf32>
    %326 = tpu.matmul %323, %325, %cst_123 {dimension_numbers = #tpu.dot_dimension_numbers<[1], [0], [0], [1], [0, 0, 1, 1], [], []>} : vector<16x8xbf16>, vector<8x16xbf16>, vector<16x16xf32> -> vector<16x16xf32>
    %c3_124 = arith.constant 3 : index
    %c1_125 = arith.constant 1 : index
    %c0_126 = arith.constant 0 : index
    %c0_127 = arith.constant 0 : index
    %327 = vector.load %arg6[%c3_124, %c1_125, %c0_126, %c0_127] : memref<4x4x16x16xf32, #tpu.memory_space<vmem>>, vector<1x1x16x16xf32>
    %328 = vector.shape_cast %327 : vector<1x1x16x16xf32> to vector<16x16xf32>
    %329 = arith.addf %326, %328 : vector<16x16xf32>
    %cst_128 = arith.constant dense<0xFF800000> : vector<16xf32>
    %330 = vector.multi_reduction <maximumf>, %329, %cst_128 [1] : vector<16x16xf32> to vector<16xf32>
    %331 = vector.shape_cast %330 : vector<16xf32> to vector<16x1xf32>
    %332 = vector.broadcast %331 : vector<16x1xf32> to vector<16x16xf32>
    %333 = arith.subf %329, %332 : vector<16x16xf32>
    %334 = math.exp %333 : vector<16x16xf32>
    %cst_129 = arith.constant dense<0.000000e+00> : vector<16xf32>
    %335 = vector.multi_reduction <add>, %334, %cst_129 [1] : vector<16x16xf32> to vector<16xf32>
    %336 = vector.shape_cast %335 : vector<16xf32> to vector<16x1xf32>
    %337 = tpu.reciprocal %336 {approx = true} : vector<16x1xf32> -> vector<16x1xf32>
    %338 = vector.broadcast %337 : vector<16x1xf32> to vector<16x16xf32>
    %339 = arith.mulf %334, %338 : vector<16x16xf32>
    %340 = arith.truncf %339 : vector<16x16xf32> to vector<16x16xbf16>
    %341 = vector.extract_strided_slice %182 {offsets = [112, 0], sizes = [16, 8], strides = [1, 1]} : vector<128x8xbf16> to vector<16x8xbf16>
    %cst_130 = arith.constant dense<0.000000e+00> : vector<16x8xf32>
    %342 = tpu.matmul %340, %341, %cst_130 {dimension_numbers = #tpu.dot_dimension_numbers<[1], [0], [0], [1], [0, 0, 1, 1], [], []>} : vector<16x16xbf16>, vector<16x8xbf16>, vector<16x8xf32> -> vector<16x8xf32>
    %343 = tpu.concatenate %202, %222, %242, %262, %282, %302, %322, %342 in 0 : vector<16x8xf32>, vector<16x8xf32>, vector<16x8xf32>, vector<16x8xf32>, vector<16x8xf32>, vector<16x8xf32>, vector<16x8xf32>, vector<16x8xf32> -> vector<128x8xf32>
    %344 = vector.extract_strided_slice %9 {offsets = [0, 16], sizes = [128, 8], strides = [1, 1]} : vector<128x96xf32> to vector<128x8xf32>
    %345 = arith.truncf %344 : vector<128x8xf32> to vector<128x8xbf16>
    %346 = vector.extract_strided_slice %9 {offsets = [0, 48], sizes = [128, 8], strides = [1, 1]} : vector<128x96xf32> to vector<128x8xf32>
    %347 = arith.truncf %346 : vector<128x8xf32> to vector<128x8xbf16>
    %348 = vector.extract_strided_slice %9 {offsets = [0, 80], sizes = [128, 8], strides = [1, 1]} : vector<128x96xf32> to vector<128x8xf32>
    %349 = arith.truncf %348 : vector<128x8xf32> to vector<128x8xbf16>
    %350 = vector.extract_strided_slice %345 {offsets = [0, 0], sizes = [16, 8], strides = [1, 1]} : vector<128x8xbf16> to vector<16x8xbf16>
    %351 = vector.extract_strided_slice %347 {offsets = [0, 0], sizes = [16, 8], strides = [1, 1]} : vector<128x8xbf16> to vector<16x8xbf16>
    %352 = tpu.transpose %351, [1, 0] : vector<16x8xbf16> -> vector<8x16xbf16>
    %cst_131 = arith.constant dense<0.000000e+00> : vector<16x16xf32>
    %353 = tpu.matmul %350, %352, %cst_131 {dimension_numbers = #tpu.dot_dimension_numbers<[1], [0], [0], [1], [0, 0, 1, 1], [], []>} : vector<16x8xbf16>, vector<8x16xbf16>, vector<16x16xf32> -> vector<16x16xf32>
    %c0_132 = arith.constant 0 : index
    %c2_133 = arith.constant 2 : index
    %c0_134 = arith.constant 0 : index
    %c0_135 = arith.constant 0 : index
    %354 = vector.load %arg6[%c0_132, %c2_133, %c0_134, %c0_135] : memref<4x4x16x16xf32, #tpu.memory_space<vmem>>, vector<1x1x16x16xf32>
    %355 = vector.shape_cast %354 : vector<1x1x16x16xf32> to vector<16x16xf32>
    %356 = arith.addf %353, %355 : vector<16x16xf32>
    %cst_136 = arith.constant dense<0xFF800000> : vector<16xf32>
    %357 = vector.multi_reduction <maximumf>, %356, %cst_136 [1] : vector<16x16xf32> to vector<16xf32>
    %358 = vector.shape_cast %357 : vector<16xf32> to vector<16x1xf32>
    %359 = vector.broadcast %358 : vector<16x1xf32> to vector<16x16xf32>
    %360 = arith.subf %356, %359 : vector<16x16xf32>
    %361 = math.exp %360 : vector<16x16xf32>
    %cst_137 = arith.constant dense<0.000000e+00> : vector<16xf32>
    %362 = vector.multi_reduction <add>, %361, %cst_137 [1] : vector<16x16xf32> to vector<16xf32>
    %363 = vector.shape_cast %362 : vector<16xf32> to vector<16x1xf32>
    %364 = tpu.reciprocal %363 {approx = true} : vector<16x1xf32> -> vector<16x1xf32>
    %365 = vector.broadcast %364 : vector<16x1xf32> to vector<16x16xf32>
    %366 = arith.mulf %361, %365 : vector<16x16xf32>
    %367 = arith.truncf %366 : vector<16x16xf32> to vector<16x16xbf16>
    %368 = vector.extract_strided_slice %349 {offsets = [0, 0], sizes = [16, 8], strides = [1, 1]} : vector<128x8xbf16> to vector<16x8xbf16>
    %cst_138 = arith.constant dense<0.000000e+00> : vector<16x8xf32>
    %369 = tpu.matmul %367, %368, %cst_138 {dimension_numbers = #tpu.dot_dimension_numbers<[1], [0], [0], [1], [0, 0, 1, 1], [], []>} : vector<16x16xbf16>, vector<16x8xbf16>, vector<16x8xf32> -> vector<16x8xf32>
    %370 = vector.extract_strided_slice %345 {offsets = [16, 0], sizes = [16, 8], strides = [1, 1]} : vector<128x8xbf16> to vector<16x8xbf16>
    %371 = vector.extract_strided_slice %347 {offsets = [16, 0], sizes = [16, 8], strides = [1, 1]} : vector<128x8xbf16> to vector<16x8xbf16>
    %372 = tpu.transpose %371, [1, 0] : vector<16x8xbf16> -> vector<8x16xbf16>
    %cst_139 = arith.constant dense<0.000000e+00> : vector<16x16xf32>
    %373 = tpu.matmul %370, %372, %cst_139 {dimension_numbers = #tpu.dot_dimension_numbers<[1], [0], [0], [1], [0, 0, 1, 1], [], []>} : vector<16x8xbf16>, vector<8x16xbf16>, vector<16x16xf32> -> vector<16x16xf32>
    %c1_140 = arith.constant 1 : index
    %c2_141 = arith.constant 2 : index
    %c0_142 = arith.constant 0 : index
    %c0_143 = arith.constant 0 : index
    %374 = vector.load %arg6[%c1_140, %c2_141, %c0_142, %c0_143] : memref<4x4x16x16xf32, #tpu.memory_space<vmem>>, vector<1x1x16x16xf32>
    %375 = vector.shape_cast %374 : vector<1x1x16x16xf32> to vector<16x16xf32>
    %376 = arith.addf %373, %375 : vector<16x16xf32>
    %cst_144 = arith.constant dense<0xFF800000> : vector<16xf32>
    %377 = vector.multi_reduction <maximumf>, %376, %cst_144 [1] : vector<16x16xf32> to vector<16xf32>
    %378 = vector.shape_cast %377 : vector<16xf32> to vector<16x1xf32>
    %379 = vector.broadcast %378 : vector<16x1xf32> to vector<16x16xf32>
    %380 = arith.subf %376, %379 : vector<16x16xf32>
    %381 = math.exp %380 : vector<16x16xf32>
    %cst_145 = arith.constant dense<0.000000e+00> : vector<16xf32>
    %382 = vector.multi_reduction <add>, %381, %cst_145 [1] : vector<16x16xf32> to vector<16xf32>
    %383 = vector.shape_cast %382 : vector<16xf32> to vector<16x1xf32>
    %384 = tpu.reciprocal %383 {approx = true} : vector<16x1xf32> -> vector<16x1xf32>
    %385 = vector.broadcast %384 : vector<16x1xf32> to vector<16x16xf32>
    %386 = arith.mulf %381, %385 : vector<16x16xf32>
    %387 = arith.truncf %386 : vector<16x16xf32> to vector<16x16xbf16>
    %388 = vector.extract_strided_slice %349 {offsets = [16, 0], sizes = [16, 8], strides = [1, 1]} : vector<128x8xbf16> to vector<16x8xbf16>
    %cst_146 = arith.constant dense<0.000000e+00> : vector<16x8xf32>
    %389 = tpu.matmul %387, %388, %cst_146 {dimension_numbers = #tpu.dot_dimension_numbers<[1], [0], [0], [1], [0, 0, 1, 1], [], []>} : vector<16x16xbf16>, vector<16x8xbf16>, vector<16x8xf32> -> vector<16x8xf32>
    %390 = vector.extract_strided_slice %345 {offsets = [32, 0], sizes = [16, 8], strides = [1, 1]} : vector<128x8xbf16> to vector<16x8xbf16>
    %391 = vector.extract_strided_slice %347 {offsets = [32, 0], sizes = [16, 8], strides = [1, 1]} : vector<128x8xbf16> to vector<16x8xbf16>
    %392 = tpu.transpose %391, [1, 0] : vector<16x8xbf16> -> vector<8x16xbf16>
    %cst_147 = arith.constant dense<0.000000e+00> : vector<16x16xf32>
    %393 = tpu.matmul %390, %392, %cst_147 {dimension_numbers = #tpu.dot_dimension_numbers<[1], [0], [0], [1], [0, 0, 1, 1], [], []>} : vector<16x8xbf16>, vector<8x16xbf16>, vector<16x16xf32> -> vector<16x16xf32>
    %c2_148 = arith.constant 2 : index
    %c2_149 = arith.constant 2 : index
    %c0_150 = arith.constant 0 : index
    %c0_151 = arith.constant 0 : index
    %394 = vector.load %arg6[%c2_148, %c2_149, %c0_150, %c0_151] : memref<4x4x16x16xf32, #tpu.memory_space<vmem>>, vector<1x1x16x16xf32>
    %395 = vector.shape_cast %394 : vector<1x1x16x16xf32> to vector<16x16xf32>
    %396 = arith.addf %393, %395 : vector<16x16xf32>
    %cst_152 = arith.constant dense<0xFF800000> : vector<16xf32>
    %397 = vector.multi_reduction <maximumf>, %396, %cst_152 [1] : vector<16x16xf32> to vector<16xf32>
    %398 = vector.shape_cast %397 : vector<16xf32> to vector<16x1xf32>
    %399 = vector.broadcast %398 : vector<16x1xf32> to vector<16x16xf32>
    %400 = arith.subf %396, %399 : vector<16x16xf32>
    %401 = math.exp %400 : vector<16x16xf32>
    %cst_153 = arith.constant dense<0.000000e+00> : vector<16xf32>
    %402 = vector.multi_reduction <add>, %401, %cst_153 [1] : vector<16x16xf32> to vector<16xf32>
    %403 = vector.shape_cast %402 : vector<16xf32> to vector<16x1xf32>
    %404 = tpu.reciprocal %403 {approx = true} : vector<16x1xf32> -> vector<16x1xf32>
    %405 = vector.broadcast %404 : vector<16x1xf32> to vector<16x16xf32>
    %406 = arith.mulf %401, %405 : vector<16x16xf32>
    %407 = arith.truncf %406 : vector<16x16xf32> to vector<16x16xbf16>
    %408 = vector.extract_strided_slice %349 {offsets = [32, 0], sizes = [16, 8], strides = [1, 1]} : vector<128x8xbf16> to vector<16x8xbf16>
    %cst_154 = arith.constant dense<0.000000e+00> : vector<16x8xf32>
    %409 = tpu.matmul %407, %408, %cst_154 {dimension_numbers = #tpu.dot_dimension_numbers<[1], [0], [0], [1], [0, 0, 1, 1], [], []>} : vector<16x16xbf16>, vector<16x8xbf16>, vector<16x8xf32> -> vector<16x8xf32>
    %410 = vector.extract_strided_slice %345 {offsets = [48, 0], sizes = [16, 8], strides = [1, 1]} : vector<128x8xbf16> to vector<16x8xbf16>
    %411 = vector.extract_strided_slice %347 {offsets = [48, 0], sizes = [16, 8], strides = [1, 1]} : vector<128x8xbf16> to vector<16x8xbf16>
    %412 = tpu.transpose %411, [1, 0] : vector<16x8xbf16> -> vector<8x16xbf16>
    %cst_155 = arith.constant dense<0.000000e+00> : vector<16x16xf32>
    %413 = tpu.matmul %410, %412, %cst_155 {dimension_numbers = #tpu.dot_dimension_numbers<[1], [0], [0], [1], [0, 0, 1, 1], [], []>} : vector<16x8xbf16>, vector<8x16xbf16>, vector<16x16xf32> -> vector<16x16xf32>
    %c3_156 = arith.constant 3 : index
    %c2_157 = arith.constant 2 : index
    %c0_158 = arith.constant 0 : index
    %c0_159 = arith.constant 0 : index
    %414 = vector.load %arg6[%c3_156, %c2_157, %c0_158, %c0_159] : memref<4x4x16x16xf32, #tpu.memory_space<vmem>>, vector<1x1x16x16xf32>
    %415 = vector.shape_cast %414 : vector<1x1x16x16xf32> to vector<16x16xf32>
    %416 = arith.addf %413, %415 : vector<16x16xf32>
    %cst_160 = arith.constant dense<0xFF800000> : vector<16xf32>
    %417 = vector.multi_reduction <maximumf>, %416, %cst_160 [1] : vector<16x16xf32> to vector<16xf32>
    %418 = vector.shape_cast %417 : vector<16xf32> to vector<16x1xf32>
    %419 = vector.broadcast %418 : vector<16x1xf32> to vector<16x16xf32>
    %420 = arith.subf %416, %419 : vector<16x16xf32>
    %421 = math.exp %420 : vector<16x16xf32>
    %cst_161 = arith.constant dense<0.000000e+00> : vector<16xf32>
    %422 = vector.multi_reduction <add>, %421, %cst_161 [1] : vector<16x16xf32> to vector<16xf32>
    %423 = vector.shape_cast %422 : vector<16xf32> to vector<16x1xf32>
    %424 = tpu.reciprocal %423 {approx = true} : vector<16x1xf32> -> vector<16x1xf32>
    %425 = vector.broadcast %424 : vector<16x1xf32> to vector<16x16xf32>
    %426 = arith.mulf %421, %425 : vector<16x16xf32>
    %427 = arith.truncf %426 : vector<16x16xf32> to vector<16x16xbf16>
    %428 = vector.extract_strided_slice %349 {offsets = [48, 0], sizes = [16, 8], strides = [1, 1]} : vector<128x8xbf16> to vector<16x8xbf16>
    %cst_162 = arith.constant dense<0.000000e+00> : vector<16x8xf32>
    %429 = tpu.matmul %427, %428, %cst_162 {dimension_numbers = #tpu.dot_dimension_numbers<[1], [0], [0], [1], [0, 0, 1, 1], [], []>} : vector<16x16xbf16>, vector<16x8xbf16>, vector<16x8xf32> -> vector<16x8xf32>
    %430 = vector.extract_strided_slice %345 {offsets = [64, 0], sizes = [16, 8], strides = [1, 1]} : vector<128x8xbf16> to vector<16x8xbf16>
    %431 = vector.extract_strided_slice %347 {offsets = [64, 0], sizes = [16, 8], strides = [1, 1]} : vector<128x8xbf16> to vector<16x8xbf16>
    %432 = tpu.transpose %431, [1, 0] : vector<16x8xbf16> -> vector<8x16xbf16>
    %cst_163 = arith.constant dense<0.000000e+00> : vector<16x16xf32>
    %433 = tpu.matmul %430, %432, %cst_163 {dimension_numbers = #tpu.dot_dimension_numbers<[1], [0], [0], [1], [0, 0, 1, 1], [], []>} : vector<16x8xbf16>, vector<8x16xbf16>, vector<16x16xf32> -> vector<16x16xf32>
    %c0_164 = arith.constant 0 : index
    %c2_165 = arith.constant 2 : index
    %c0_166 = arith.constant 0 : index
    %c0_167 = arith.constant 0 : index
    %434 = vector.load %arg6[%c0_164, %c2_165, %c0_166, %c0_167] : memref<4x4x16x16xf32, #tpu.memory_space<vmem>>, vector<1x1x16x16xf32>
    %435 = vector.shape_cast %434 : vector<1x1x16x16xf32> to vector<16x16xf32>
    %436 = arith.addf %433, %435 : vector<16x16xf32>
    %cst_168 = arith.constant dense<0xFF800000> : vector<16xf32>
    %437 = vector.multi_reduction <maximumf>, %436, %cst_168 [1] : vector<16x16xf32> to vector<16xf32>
    %438 = vector.shape_cast %437 : vector<16xf32> to vector<16x1xf32>
    %439 = vector.broadcast %438 : vector<16x1xf32> to vector<16x16xf32>
    %440 = arith.subf %436, %439 : vector<16x16xf32>
    %441 = math.exp %440 : vector<16x16xf32>
    %cst_169 = arith.constant dense<0.000000e+00> : vector<16xf32>
    %442 = vector.multi_reduction <add>, %441, %cst_169 [1] : vector<16x16xf32> to vector<16xf32>
    %443 = vector.shape_cast %442 : vector<16xf32> to vector<16x1xf32>
    %444 = tpu.reciprocal %443 {approx = true} : vector<16x1xf32> -> vector<16x1xf32>
    %445 = vector.broadcast %444 : vector<16x1xf32> to vector<16x16xf32>
    %446 = arith.mulf %441, %445 : vector<16x16xf32>
    %447 = arith.truncf %446 : vector<16x16xf32> to vector<16x16xbf16>
    %448 = vector.extract_strided_slice %349 {offsets = [64, 0], sizes = [16, 8], strides = [1, 1]} : vector<128x8xbf16> to vector<16x8xbf16>
    %cst_170 = arith.constant dense<0.000000e+00> : vector<16x8xf32>
    %449 = tpu.matmul %447, %448, %cst_170 {dimension_numbers = #tpu.dot_dimension_numbers<[1], [0], [0], [1], [0, 0, 1, 1], [], []>} : vector<16x16xbf16>, vector<16x8xbf16>, vector<16x8xf32> -> vector<16x8xf32>
    %450 = vector.extract_strided_slice %345 {offsets = [80, 0], sizes = [16, 8], strides = [1, 1]} : vector<128x8xbf16> to vector<16x8xbf16>
    %451 = vector.extract_strided_slice %347 {offsets = [80, 0], sizes = [16, 8], strides = [1, 1]} : vector<128x8xbf16> to vector<16x8xbf16>
    %452 = tpu.transpose %451, [1, 0] : vector<16x8xbf16> -> vector<8x16xbf16>
    %cst_171 = arith.constant dense<0.000000e+00> : vector<16x16xf32>
    %453 = tpu.matmul %450, %452, %cst_171 {dimension_numbers = #tpu.dot_dimension_numbers<[1], [0], [0], [1], [0, 0, 1, 1], [], []>} : vector<16x8xbf16>, vector<8x16xbf16>, vector<16x16xf32> -> vector<16x16xf32>
    %c1_172 = arith.constant 1 : index
    %c2_173 = arith.constant 2 : index
    %c0_174 = arith.constant 0 : index
    %c0_175 = arith.constant 0 : index
    %454 = vector.load %arg6[%c1_172, %c2_173, %c0_174, %c0_175] : memref<4x4x16x16xf32, #tpu.memory_space<vmem>>, vector<1x1x16x16xf32>
    %455 = vector.shape_cast %454 : vector<1x1x16x16xf32> to vector<16x16xf32>
    %456 = arith.addf %453, %455 : vector<16x16xf32>
    %cst_176 = arith.constant dense<0xFF800000> : vector<16xf32>
    %457 = vector.multi_reduction <maximumf>, %456, %cst_176 [1] : vector<16x16xf32> to vector<16xf32>
    %458 = vector.shape_cast %457 : vector<16xf32> to vector<16x1xf32>
    %459 = vector.broadcast %458 : vector<16x1xf32> to vector<16x16xf32>
    %460 = arith.subf %456, %459 : vector<16x16xf32>
    %461 = math.exp %460 : vector<16x16xf32>
    %cst_177 = arith.constant dense<0.000000e+00> : vector<16xf32>
    %462 = vector.multi_reduction <add>, %461, %cst_177 [1] : vector<16x16xf32> to vector<16xf32>
    %463 = vector.shape_cast %462 : vector<16xf32> to vector<16x1xf32>
    %464 = tpu.reciprocal %463 {approx = true} : vector<16x1xf32> -> vector<16x1xf32>
    %465 = vector.broadcast %464 : vector<16x1xf32> to vector<16x16xf32>
    %466 = arith.mulf %461, %465 : vector<16x16xf32>
    %467 = arith.truncf %466 : vector<16x16xf32> to vector<16x16xbf16>
    %468 = vector.extract_strided_slice %349 {offsets = [80, 0], sizes = [16, 8], strides = [1, 1]} : vector<128x8xbf16> to vector<16x8xbf16>
    %cst_178 = arith.constant dense<0.000000e+00> : vector<16x8xf32>
    %469 = tpu.matmul %467, %468, %cst_178 {dimension_numbers = #tpu.dot_dimension_numbers<[1], [0], [0], [1], [0, 0, 1, 1], [], []>} : vector<16x16xbf16>, vector<16x8xbf16>, vector<16x8xf32> -> vector<16x8xf32>
    %470 = vector.extract_strided_slice %345 {offsets = [96, 0], sizes = [16, 8], strides = [1, 1]} : vector<128x8xbf16> to vector<16x8xbf16>
    %471 = vector.extract_strided_slice %347 {offsets = [96, 0], sizes = [16, 8], strides = [1, 1]} : vector<128x8xbf16> to vector<16x8xbf16>
    %472 = tpu.transpose %471, [1, 0] : vector<16x8xbf16> -> vector<8x16xbf16>
    %cst_179 = arith.constant dense<0.000000e+00> : vector<16x16xf32>
    %473 = tpu.matmul %470, %472, %cst_179 {dimension_numbers = #tpu.dot_dimension_numbers<[1], [0], [0], [1], [0, 0, 1, 1], [], []>} : vector<16x8xbf16>, vector<8x16xbf16>, vector<16x16xf32> -> vector<16x16xf32>
    %c2_180 = arith.constant 2 : index
    %c2_181 = arith.constant 2 : index
    %c0_182 = arith.constant 0 : index
    %c0_183 = arith.constant 0 : index
    %474 = vector.load %arg6[%c2_180, %c2_181, %c0_182, %c0_183] : memref<4x4x16x16xf32, #tpu.memory_space<vmem>>, vector<1x1x16x16xf32>
    %475 = vector.shape_cast %474 : vector<1x1x16x16xf32> to vector<16x16xf32>
    %476 = arith.addf %473, %475 : vector<16x16xf32>
    %cst_184 = arith.constant dense<0xFF800000> : vector<16xf32>
    %477 = vector.multi_reduction <maximumf>, %476, %cst_184 [1] : vector<16x16xf32> to vector<16xf32>
    %478 = vector.shape_cast %477 : vector<16xf32> to vector<16x1xf32>
    %479 = vector.broadcast %478 : vector<16x1xf32> to vector<16x16xf32>
    %480 = arith.subf %476, %479 : vector<16x16xf32>
    %481 = math.exp %480 : vector<16x16xf32>
    %cst_185 = arith.constant dense<0.000000e+00> : vector<16xf32>
    %482 = vector.multi_reduction <add>, %481, %cst_185 [1] : vector<16x16xf32> to vector<16xf32>
    %483 = vector.shape_cast %482 : vector<16xf32> to vector<16x1xf32>
    %484 = tpu.reciprocal %483 {approx = true} : vector<16x1xf32> -> vector<16x1xf32>
    %485 = vector.broadcast %484 : vector<16x1xf32> to vector<16x16xf32>
    %486 = arith.mulf %481, %485 : vector<16x16xf32>
    %487 = arith.truncf %486 : vector<16x16xf32> to vector<16x16xbf16>
    %488 = vector.extract_strided_slice %349 {offsets = [96, 0], sizes = [16, 8], strides = [1, 1]} : vector<128x8xbf16> to vector<16x8xbf16>
    %cst_186 = arith.constant dense<0.000000e+00> : vector<16x8xf32>
    %489 = tpu.matmul %487, %488, %cst_186 {dimension_numbers = #tpu.dot_dimension_numbers<[1], [0], [0], [1], [0, 0, 1, 1], [], []>} : vector<16x16xbf16>, vector<16x8xbf16>, vector<16x8xf32> -> vector<16x8xf32>
    %490 = vector.extract_strided_slice %345 {offsets = [112, 0], sizes = [16, 8], strides = [1, 1]} : vector<128x8xbf16> to vector<16x8xbf16>
    %491 = vector.extract_strided_slice %347 {offsets = [112, 0], sizes = [16, 8], strides = [1, 1]} : vector<128x8xbf16> to vector<16x8xbf16>
    %492 = tpu.transpose %491, [1, 0] : vector<16x8xbf16> -> vector<8x16xbf16>
    %cst_187 = arith.constant dense<0.000000e+00> : vector<16x16xf32>
    %493 = tpu.matmul %490, %492, %cst_187 {dimension_numbers = #tpu.dot_dimension_numbers<[1], [0], [0], [1], [0, 0, 1, 1], [], []>} : vector<16x8xbf16>, vector<8x16xbf16>, vector<16x16xf32> -> vector<16x16xf32>
    %c3_188 = arith.constant 3 : index
    %c2_189 = arith.constant 2 : index
    %c0_190 = arith.constant 0 : index
    %c0_191 = arith.constant 0 : index
    %494 = vector.load %arg6[%c3_188, %c2_189, %c0_190, %c0_191] : memref<4x4x16x16xf32, #tpu.memory_space<vmem>>, vector<1x1x16x16xf32>
    %495 = vector.shape_cast %494 : vector<1x1x16x16xf32> to vector<16x16xf32>
    %496 = arith.addf %493, %495 : vector<16x16xf32>
    %cst_192 = arith.constant dense<0xFF800000> : vector<16xf32>
    %497 = vector.multi_reduction <maximumf>, %496, %cst_192 [1] : vector<16x16xf32> to vector<16xf32>
    %498 = vector.shape_cast %497 : vector<16xf32> to vector<16x1xf32>
    %499 = vector.broadcast %498 : vector<16x1xf32> to vector<16x16xf32>
    %500 = arith.subf %496, %499 : vector<16x16xf32>
    %501 = math.exp %500 : vector<16x16xf32>
    %cst_193 = arith.constant dense<0.000000e+00> : vector<16xf32>
    %502 = vector.multi_reduction <add>, %501, %cst_193 [1] : vector<16x16xf32> to vector<16xf32>
    %503 = vector.shape_cast %502 : vector<16xf32> to vector<16x1xf32>
    %504 = tpu.reciprocal %503 {approx = true} : vector<16x1xf32> -> vector<16x1xf32>
    %505 = vector.broadcast %504 : vector<16x1xf32> to vector<16x16xf32>
    %506 = arith.mulf %501, %505 : vector<16x16xf32>
    %507 = arith.truncf %506 : vector<16x16xf32> to vector<16x16xbf16>
    %508 = vector.extract_strided_slice %349 {offsets = [112, 0], sizes = [16, 8], strides = [1, 1]} : vector<128x8xbf16> to vector<16x8xbf16>
    %cst_194 = arith.constant dense<0.000000e+00> : vector<16x8xf32>
    %509 = tpu.matmul %507, %508, %cst_194 {dimension_numbers = #tpu.dot_dimension_numbers<[1], [0], [0], [1], [0, 0, 1, 1], [], []>} : vector<16x16xbf16>, vector<16x8xbf16>, vector<16x8xf32> -> vector<16x8xf32>
    %510 = tpu.concatenate %369, %389, %409, %429, %449, %469, %489, %509 in 0 : vector<16x8xf32>, vector<16x8xf32>, vector<16x8xf32>, vector<16x8xf32>, vector<16x8xf32>, vector<16x8xf32>, vector<16x8xf32>, vector<16x8xf32> -> vector<128x8xf32>
    %511 = vector.extract_strided_slice %9 {offsets = [0, 24], sizes = [128, 8], strides = [1, 1]} : vector<128x96xf32> to vector<128x8xf32>
    %512 = arith.truncf %511 : vector<128x8xf32> to vector<128x8xbf16>
    %513 = vector.extract_strided_slice %9 {offsets = [0, 56], sizes = [128, 8], strides = [1, 1]} : vector<128x96xf32> to vector<128x8xf32>
    %514 = arith.truncf %513 : vector<128x8xf32> to vector<128x8xbf16>
    %515 = vector.extract_strided_slice %9 {offsets = [0, 88], sizes = [128, 8], strides = [1, 1]} : vector<128x96xf32> to vector<128x8xf32>
    %516 = arith.truncf %515 : vector<128x8xf32> to vector<128x8xbf16>
    %517 = vector.extract_strided_slice %512 {offsets = [0, 0], sizes = [16, 8], strides = [1, 1]} : vector<128x8xbf16> to vector<16x8xbf16>
    %518 = vector.extract_strided_slice %514 {offsets = [0, 0], sizes = [16, 8], strides = [1, 1]} : vector<128x8xbf16> to vector<16x8xbf16>
    %519 = tpu.transpose %518, [1, 0] : vector<16x8xbf16> -> vector<8x16xbf16>
    %cst_195 = arith.constant dense<0.000000e+00> : vector<16x16xf32>
    %520 = tpu.matmul %517, %519, %cst_195 {dimension_numbers = #tpu.dot_dimension_numbers<[1], [0], [0], [1], [0, 0, 1, 1], [], []>} : vector<16x8xbf16>, vector<8x16xbf16>, vector<16x16xf32> -> vector<16x16xf32>
    %c0_196 = arith.constant 0 : index
    %c3_197 = arith.constant 3 : index
    %c0_198 = arith.constant 0 : index
    %c0_199 = arith.constant 0 : index
    %521 = vector.load %arg6[%c0_196, %c3_197, %c0_198, %c0_199] : memref<4x4x16x16xf32, #tpu.memory_space<vmem>>, vector<1x1x16x16xf32>
    %522 = vector.shape_cast %521 : vector<1x1x16x16xf32> to vector<16x16xf32>
    %523 = arith.addf %520, %522 : vector<16x16xf32>
    %cst_200 = arith.constant dense<0xFF800000> : vector<16xf32>
    %524 = vector.multi_reduction <maximumf>, %523, %cst_200 [1] : vector<16x16xf32> to vector<16xf32>
    %525 = vector.shape_cast %524 : vector<16xf32> to vector<16x1xf32>
    %526 = vector.broadcast %525 : vector<16x1xf32> to vector<16x16xf32>
    %527 = arith.subf %523, %526 : vector<16x16xf32>
    %528 = math.exp %527 : vector<16x16xf32>
    %cst_201 = arith.constant dense<0.000000e+00> : vector<16xf32>
    %529 = vector.multi_reduction <add>, %528, %cst_201 [1] : vector<16x16xf32> to vector<16xf32>
    %530 = vector.shape_cast %529 : vector<16xf32> to vector<16x1xf32>
    %531 = tpu.reciprocal %530 {approx = true} : vector<16x1xf32> -> vector<16x1xf32>
    %532 = vector.broadcast %531 : vector<16x1xf32> to vector<16x16xf32>
    %533 = arith.mulf %528, %532 : vector<16x16xf32>
    %534 = arith.truncf %533 : vector<16x16xf32> to vector<16x16xbf16>
    %535 = vector.extract_strided_slice %516 {offsets = [0, 0], sizes = [16, 8], strides = [1, 1]} : vector<128x8xbf16> to vector<16x8xbf16>
    %cst_202 = arith.constant dense<0.000000e+00> : vector<16x8xf32>
    %536 = tpu.matmul %534, %535, %cst_202 {dimension_numbers = #tpu.dot_dimension_numbers<[1], [0], [0], [1], [0, 0, 1, 1], [], []>} : vector<16x16xbf16>, vector<16x8xbf16>, vector<16x8xf32> -> vector<16x8xf32>
    %537 = vector.extract_strided_slice %512 {offsets = [16, 0], sizes = [16, 8], strides = [1, 1]} : vector<128x8xbf16> to vector<16x8xbf16>
    %538 = vector.extract_strided_slice %514 {offsets = [16, 0], sizes = [16, 8], strides = [1, 1]} : vector<128x8xbf16> to vector<16x8xbf16>
    %539 = tpu.transpose %538, [1, 0] : vector<16x8xbf16> -> vector<8x16xbf16>
    %cst_203 = arith.constant dense<0.000000e+00> : vector<16x16xf32>
    %540 = tpu.matmul %537, %539, %cst_203 {dimension_numbers = #tpu.dot_dimension_numbers<[1], [0], [0], [1], [0, 0, 1, 1], [], []>} : vector<16x8xbf16>, vector<8x16xbf16>, vector<16x16xf32> -> vector<16x16xf32>
    %c1_204 = arith.constant 1 : index
    %c3_205 = arith.constant 3 : index
    %c0_206 = arith.constant 0 : index
    %c0_207 = arith.constant 0 : index
    %541 = vector.load %arg6[%c1_204, %c3_205, %c0_206, %c0_207] : memref<4x4x16x16xf32, #tpu.memory_space<vmem>>, vector<1x1x16x16xf32>
    %542 = vector.shape_cast %541 : vector<1x1x16x16xf32> to vector<16x16xf32>
    %543 = arith.addf %540, %542 : vector<16x16xf32>
    %cst_208 = arith.constant dense<0xFF800000> : vector<16xf32>
    %544 = vector.multi_reduction <maximumf>, %543, %cst_208 [1] : vector<16x16xf32> to vector<16xf32>
    %545 = vector.shape_cast %544 : vector<16xf32> to vector<16x1xf32>
    %546 = vector.broadcast %545 : vector<16x1xf32> to vector<16x16xf32>
    %547 = arith.subf %543, %546 : vector<16x16xf32>
    %548 = math.exp %547 : vector<16x16xf32>
    %cst_209 = arith.constant dense<0.000000e+00> : vector<16xf32>
    %549 = vector.multi_reduction <add>, %548, %cst_209 [1] : vector<16x16xf32> to vector<16xf32>
    %550 = vector.shape_cast %549 : vector<16xf32> to vector<16x1xf32>
    %551 = tpu.reciprocal %550 {approx = true} : vector<16x1xf32> -> vector<16x1xf32>
    %552 = vector.broadcast %551 : vector<16x1xf32> to vector<16x16xf32>
    %553 = arith.mulf %548, %552 : vector<16x16xf32>
    %554 = arith.truncf %553 : vector<16x16xf32> to vector<16x16xbf16>
    %555 = vector.extract_strided_slice %516 {offsets = [16, 0], sizes = [16, 8], strides = [1, 1]} : vector<128x8xbf16> to vector<16x8xbf16>
    %cst_210 = arith.constant dense<0.000000e+00> : vector<16x8xf32>
    %556 = tpu.matmul %554, %555, %cst_210 {dimension_numbers = #tpu.dot_dimension_numbers<[1], [0], [0], [1], [0, 0, 1, 1], [], []>} : vector<16x16xbf16>, vector<16x8xbf16>, vector<16x8xf32> -> vector<16x8xf32>
    %557 = vector.extract_strided_slice %512 {offsets = [32, 0], sizes = [16, 8], strides = [1, 1]} : vector<128x8xbf16> to vector<16x8xbf16>
    %558 = vector.extract_strided_slice %514 {offsets = [32, 0], sizes = [16, 8], strides = [1, 1]} : vector<128x8xbf16> to vector<16x8xbf16>
    %559 = tpu.transpose %558, [1, 0] : vector<16x8xbf16> -> vector<8x16xbf16>
    %cst_211 = arith.constant dense<0.000000e+00> : vector<16x16xf32>
    %560 = tpu.matmul %557, %559, %cst_211 {dimension_numbers = #tpu.dot_dimension_numbers<[1], [0], [0], [1], [0, 0, 1, 1], [], []>} : vector<16x8xbf16>, vector<8x16xbf16>, vector<16x16xf32> -> vector<16x16xf32>
    %c2_212 = arith.constant 2 : index
    %c3_213 = arith.constant 3 : index
    %c0_214 = arith.constant 0 : index
    %c0_215 = arith.constant 0 : index
    %561 = vector.load %arg6[%c2_212, %c3_213, %c0_214, %c0_215] : memref<4x4x16x16xf32, #tpu.memory_space<vmem>>, vector<1x1x16x16xf32>
    %562 = vector.shape_cast %561 : vector<1x1x16x16xf32> to vector<16x16xf32>
    %563 = arith.addf %560, %562 : vector<16x16xf32>
    %cst_216 = arith.constant dense<0xFF800000> : vector<16xf32>
    %564 = vector.multi_reduction <maximumf>, %563, %cst_216 [1] : vector<16x16xf32> to vector<16xf32>
    %565 = vector.shape_cast %564 : vector<16xf32> to vector<16x1xf32>
    %566 = vector.broadcast %565 : vector<16x1xf32> to vector<16x16xf32>
    %567 = arith.subf %563, %566 : vector<16x16xf32>
    %568 = math.exp %567 : vector<16x16xf32>
    %cst_217 = arith.constant dense<0.000000e+00> : vector<16xf32>
    %569 = vector.multi_reduction <add>, %568, %cst_217 [1] : vector<16x16xf32> to vector<16xf32>
    %570 = vector.shape_cast %569 : vector<16xf32> to vector<16x1xf32>
    %571 = tpu.reciprocal %570 {approx = true} : vector<16x1xf32> -> vector<16x1xf32>
    %572 = vector.broadcast %571 : vector<16x1xf32> to vector<16x16xf32>
    %573 = arith.mulf %568, %572 : vector<16x16xf32>
    %574 = arith.truncf %573 : vector<16x16xf32> to vector<16x16xbf16>
    %575 = vector.extract_strided_slice %516 {offsets = [32, 0], sizes = [16, 8], strides = [1, 1]} : vector<128x8xbf16> to vector<16x8xbf16>
    %cst_218 = arith.constant dense<0.000000e+00> : vector<16x8xf32>
    %576 = tpu.matmul %574, %575, %cst_218 {dimension_numbers = #tpu.dot_dimension_numbers<[1], [0], [0], [1], [0, 0, 1, 1], [], []>} : vector<16x16xbf16>, vector<16x8xbf16>, vector<16x8xf32> -> vector<16x8xf32>
    %577 = vector.extract_strided_slice %512 {offsets = [48, 0], sizes = [16, 8], strides = [1, 1]} : vector<128x8xbf16> to vector<16x8xbf16>
    %578 = vector.extract_strided_slice %514 {offsets = [48, 0], sizes = [16, 8], strides = [1, 1]} : vector<128x8xbf16> to vector<16x8xbf16>
    %579 = tpu.transpose %578, [1, 0] : vector<16x8xbf16> -> vector<8x16xbf16>
    %cst_219 = arith.constant dense<0.000000e+00> : vector<16x16xf32>
    %580 = tpu.matmul %577, %579, %cst_219 {dimension_numbers = #tpu.dot_dimension_numbers<[1], [0], [0], [1], [0, 0, 1, 1], [], []>} : vector<16x8xbf16>, vector<8x16xbf16>, vector<16x16xf32> -> vector<16x16xf32>
    %c3_220 = arith.constant 3 : index
    %c3_221 = arith.constant 3 : index
    %c0_222 = arith.constant 0 : index
    %c0_223 = arith.constant 0 : index
    %581 = vector.load %arg6[%c3_220, %c3_221, %c0_222, %c0_223] : memref<4x4x16x16xf32, #tpu.memory_space<vmem>>, vector<1x1x16x16xf32>
    %582 = vector.shape_cast %581 : vector<1x1x16x16xf32> to vector<16x16xf32>
    %583 = arith.addf %580, %582 : vector<16x16xf32>
    %cst_224 = arith.constant dense<0xFF800000> : vector<16xf32>
    %584 = vector.multi_reduction <maximumf>, %583, %cst_224 [1] : vector<16x16xf32> to vector<16xf32>
    %585 = vector.shape_cast %584 : vector<16xf32> to vector<16x1xf32>
    %586 = vector.broadcast %585 : vector<16x1xf32> to vector<16x16xf32>
    %587 = arith.subf %583, %586 : vector<16x16xf32>
    %588 = math.exp %587 : vector<16x16xf32>
    %cst_225 = arith.constant dense<0.000000e+00> : vector<16xf32>
    %589 = vector.multi_reduction <add>, %588, %cst_225 [1] : vector<16x16xf32> to vector<16xf32>
    %590 = vector.shape_cast %589 : vector<16xf32> to vector<16x1xf32>
    %591 = tpu.reciprocal %590 {approx = true} : vector<16x1xf32> -> vector<16x1xf32>
    %592 = vector.broadcast %591 : vector<16x1xf32> to vector<16x16xf32>
    %593 = arith.mulf %588, %592 : vector<16x16xf32>
    %594 = arith.truncf %593 : vector<16x16xf32> to vector<16x16xbf16>
    %595 = vector.extract_strided_slice %516 {offsets = [48, 0], sizes = [16, 8], strides = [1, 1]} : vector<128x8xbf16> to vector<16x8xbf16>
    %cst_226 = arith.constant dense<0.000000e+00> : vector<16x8xf32>
    %596 = tpu.matmul %594, %595, %cst_226 {dimension_numbers = #tpu.dot_dimension_numbers<[1], [0], [0], [1], [0, 0, 1, 1], [], []>} : vector<16x16xbf16>, vector<16x8xbf16>, vector<16x8xf32> -> vector<16x8xf32>
    %597 = vector.extract_strided_slice %512 {offsets = [64, 0], sizes = [16, 8], strides = [1, 1]} : vector<128x8xbf16> to vector<16x8xbf16>
    %598 = vector.extract_strided_slice %514 {offsets = [64, 0], sizes = [16, 8], strides = [1, 1]} : vector<128x8xbf16> to vector<16x8xbf16>
    %599 = tpu.transpose %598, [1, 0] : vector<16x8xbf16> -> vector<8x16xbf16>
    %cst_227 = arith.constant dense<0.000000e+00> : vector<16x16xf32>
    %600 = tpu.matmul %597, %599, %cst_227 {dimension_numbers = #tpu.dot_dimension_numbers<[1], [0], [0], [1], [0, 0, 1, 1], [], []>} : vector<16x8xbf16>, vector<8x16xbf16>, vector<16x16xf32> -> vector<16x16xf32>
    %c0_228 = arith.constant 0 : index
    %c3_229 = arith.constant 3 : index
    %c0_230 = arith.constant 0 : index
    %c0_231 = arith.constant 0 : index
    %601 = vector.load %arg6[%c0_228, %c3_229, %c0_230, %c0_231] : memref<4x4x16x16xf32, #tpu.memory_space<vmem>>, vector<1x1x16x16xf32>
    %602 = vector.shape_cast %601 : vector<1x1x16x16xf32> to vector<16x16xf32>
    %603 = arith.addf %600, %602 : vector<16x16xf32>
    %cst_232 = arith.constant dense<0xFF800000> : vector<16xf32>
    %604 = vector.multi_reduction <maximumf>, %603, %cst_232 [1] : vector<16x16xf32> to vector<16xf32>
    %605 = vector.shape_cast %604 : vector<16xf32> to vector<16x1xf32>
    %606 = vector.broadcast %605 : vector<16x1xf32> to vector<16x16xf32>
    %607 = arith.subf %603, %606 : vector<16x16xf32>
    %608 = math.exp %607 : vector<16x16xf32>
    %cst_233 = arith.constant dense<0.000000e+00> : vector<16xf32>
    %609 = vector.multi_reduction <add>, %608, %cst_233 [1] : vector<16x16xf32> to vector<16xf32>
    %610 = vector.shape_cast %609 : vector<16xf32> to vector<16x1xf32>
    %611 = tpu.reciprocal %610 {approx = true} : vector<16x1xf32> -> vector<16x1xf32>
    %612 = vector.broadcast %611 : vector<16x1xf32> to vector<16x16xf32>
    %613 = arith.mulf %608, %612 : vector<16x16xf32>
    %614 = arith.truncf %613 : vector<16x16xf32> to vector<16x16xbf16>
    %615 = vector.extract_strided_slice %516 {offsets = [64, 0], sizes = [16, 8], strides = [1, 1]} : vector<128x8xbf16> to vector<16x8xbf16>
    %cst_234 = arith.constant dense<0.000000e+00> : vector<16x8xf32>
    %616 = tpu.matmul %614, %615, %cst_234 {dimension_numbers = #tpu.dot_dimension_numbers<[1], [0], [0], [1], [0, 0, 1, 1], [], []>} : vector<16x16xbf16>, vector<16x8xbf16>, vector<16x8xf32> -> vector<16x8xf32>
    %617 = vector.extract_strided_slice %512 {offsets = [80, 0], sizes = [16, 8], strides = [1, 1]} : vector<128x8xbf16> to vector<16x8xbf16>
    %618 = vector.extract_strided_slice %514 {offsets = [80, 0], sizes = [16, 8], strides = [1, 1]} : vector<128x8xbf16> to vector<16x8xbf16>
    %619 = tpu.transpose %618, [1, 0] : vector<16x8xbf16> -> vector<8x16xbf16>
    %cst_235 = arith.constant dense<0.000000e+00> : vector<16x16xf32>
    %620 = tpu.matmul %617, %619, %cst_235 {dimension_numbers = #tpu.dot_dimension_numbers<[1], [0], [0], [1], [0, 0, 1, 1], [], []>} : vector<16x8xbf16>, vector<8x16xbf16>, vector<16x16xf32> -> vector<16x16xf32>
    %c1_236 = arith.constant 1 : index
    %c3_237 = arith.constant 3 : index
    %c0_238 = arith.constant 0 : index
    %c0_239 = arith.constant 0 : index
    %621 = vector.load %arg6[%c1_236, %c3_237, %c0_238, %c0_239] : memref<4x4x16x16xf32, #tpu.memory_space<vmem>>, vector<1x1x16x16xf32>
    %622 = vector.shape_cast %621 : vector<1x1x16x16xf32> to vector<16x16xf32>
    %623 = arith.addf %620, %622 : vector<16x16xf32>
    %cst_240 = arith.constant dense<0xFF800000> : vector<16xf32>
    %624 = vector.multi_reduction <maximumf>, %623, %cst_240 [1] : vector<16x16xf32> to vector<16xf32>
    %625 = vector.shape_cast %624 : vector<16xf32> to vector<16x1xf32>
    %626 = vector.broadcast %625 : vector<16x1xf32> to vector<16x16xf32>
    %627 = arith.subf %623, %626 : vector<16x16xf32>
    %628 = math.exp %627 : vector<16x16xf32>
    %cst_241 = arith.constant dense<0.000000e+00> : vector<16xf32>
    %629 = vector.multi_reduction <add>, %628, %cst_241 [1] : vector<16x16xf32> to vector<16xf32>
    %630 = vector.shape_cast %629 : vector<16xf32> to vector<16x1xf32>
    %631 = tpu.reciprocal %630 {approx = true} : vector<16x1xf32> -> vector<16x1xf32>
    %632 = vector.broadcast %631 : vector<16x1xf32> to vector<16x16xf32>
    %633 = arith.mulf %628, %632 : vector<16x16xf32>
    %634 = arith.truncf %633 : vector<16x16xf32> to vector<16x16xbf16>
    %635 = vector.extract_strided_slice %516 {offsets = [80, 0], sizes = [16, 8], strides = [1, 1]} : vector<128x8xbf16> to vector<16x8xbf16>
    %cst_242 = arith.constant dense<0.000000e+00> : vector<16x8xf32>
    %636 = tpu.matmul %634, %635, %cst_242 {dimension_numbers = #tpu.dot_dimension_numbers<[1], [0], [0], [1], [0, 0, 1, 1], [], []>} : vector<16x16xbf16>, vector<16x8xbf16>, vector<16x8xf32> -> vector<16x8xf32>
    %637 = vector.extract_strided_slice %512 {offsets = [96, 0], sizes = [16, 8], strides = [1, 1]} : vector<128x8xbf16> to vector<16x8xbf16>
    %638 = vector.extract_strided_slice %514 {offsets = [96, 0], sizes = [16, 8], strides = [1, 1]} : vector<128x8xbf16> to vector<16x8xbf16>
    %639 = tpu.transpose %638, [1, 0] : vector<16x8xbf16> -> vector<8x16xbf16>
    %cst_243 = arith.constant dense<0.000000e+00> : vector<16x16xf32>
    %640 = tpu.matmul %637, %639, %cst_243 {dimension_numbers = #tpu.dot_dimension_numbers<[1], [0], [0], [1], [0, 0, 1, 1], [], []>} : vector<16x8xbf16>, vector<8x16xbf16>, vector<16x16xf32> -> vector<16x16xf32>
    %c2_244 = arith.constant 2 : index
    %c3_245 = arith.constant 3 : index
    %c0_246 = arith.constant 0 : index
    %c0_247 = arith.constant 0 : index
    %641 = vector.load %arg6[%c2_244, %c3_245, %c0_246, %c0_247] : memref<4x4x16x16xf32, #tpu.memory_space<vmem>>, vector<1x1x16x16xf32>
    %642 = vector.shape_cast %641 : vector<1x1x16x16xf32> to vector<16x16xf32>
    %643 = arith.addf %640, %642 : vector<16x16xf32>
    %cst_248 = arith.constant dense<0xFF800000> : vector<16xf32>
    %644 = vector.multi_reduction <maximumf>, %643, %cst_248 [1] : vector<16x16xf32> to vector<16xf32>
    %645 = vector.shape_cast %644 : vector<16xf32> to vector<16x1xf32>
    %646 = vector.broadcast %645 : vector<16x1xf32> to vector<16x16xf32>
    %647 = arith.subf %643, %646 : vector<16x16xf32>
    %648 = math.exp %647 : vector<16x16xf32>
    %cst_249 = arith.constant dense<0.000000e+00> : vector<16xf32>
    %649 = vector.multi_reduction <add>, %648, %cst_249 [1] : vector<16x16xf32> to vector<16xf32>
    %650 = vector.shape_cast %649 : vector<16xf32> to vector<16x1xf32>
    %651 = tpu.reciprocal %650 {approx = true} : vector<16x1xf32> -> vector<16x1xf32>
    %652 = vector.broadcast %651 : vector<16x1xf32> to vector<16x16xf32>
    %653 = arith.mulf %648, %652 : vector<16x16xf32>
    %654 = arith.truncf %653 : vector<16x16xf32> to vector<16x16xbf16>
    %655 = vector.extract_strided_slice %516 {offsets = [96, 0], sizes = [16, 8], strides = [1, 1]} : vector<128x8xbf16> to vector<16x8xbf16>
    %cst_250 = arith.constant dense<0.000000e+00> : vector<16x8xf32>
    %656 = tpu.matmul %654, %655, %cst_250 {dimension_numbers = #tpu.dot_dimension_numbers<[1], [0], [0], [1], [0, 0, 1, 1], [], []>} : vector<16x16xbf16>, vector<16x8xbf16>, vector<16x8xf32> -> vector<16x8xf32>
    %657 = vector.extract_strided_slice %512 {offsets = [112, 0], sizes = [16, 8], strides = [1, 1]} : vector<128x8xbf16> to vector<16x8xbf16>
    %658 = vector.extract_strided_slice %514 {offsets = [112, 0], sizes = [16, 8], strides = [1, 1]} : vector<128x8xbf16> to vector<16x8xbf16>
    %659 = tpu.transpose %658, [1, 0] : vector<16x8xbf16> -> vector<8x16xbf16>
    %cst_251 = arith.constant dense<0.000000e+00> : vector<16x16xf32>
    %660 = tpu.matmul %657, %659, %cst_251 {dimension_numbers = #tpu.dot_dimension_numbers<[1], [0], [0], [1], [0, 0, 1, 1], [], []>} : vector<16x8xbf16>, vector<8x16xbf16>, vector<16x16xf32> -> vector<16x16xf32>
    %c3_252 = arith.constant 3 : index
    %c3_253 = arith.constant 3 : index
    %c0_254 = arith.constant 0 : index
    %c0_255 = arith.constant 0 : index
    %661 = vector.load %arg6[%c3_252, %c3_253, %c0_254, %c0_255] : memref<4x4x16x16xf32, #tpu.memory_space<vmem>>, vector<1x1x16x16xf32>
    %662 = vector.shape_cast %661 : vector<1x1x16x16xf32> to vector<16x16xf32>
    %663 = arith.addf %660, %662 : vector<16x16xf32>
    %cst_256 = arith.constant dense<0xFF800000> : vector<16xf32>
    %664 = vector.multi_reduction <maximumf>, %663, %cst_256 [1] : vector<16x16xf32> to vector<16xf32>
    %665 = vector.shape_cast %664 : vector<16xf32> to vector<16x1xf32>
    %666 = vector.broadcast %665 : vector<16x1xf32> to vector<16x16xf32>
    %667 = arith.subf %663, %666 : vector<16x16xf32>
    %668 = math.exp %667 : vector<16x16xf32>
    %cst_257 = arith.constant dense<0.000000e+00> : vector<16xf32>
    %669 = vector.multi_reduction <add>, %668, %cst_257 [1] : vector<16x16xf32> to vector<16xf32>
    %670 = vector.shape_cast %669 : vector<16xf32> to vector<16x1xf32>
    %671 = tpu.reciprocal %670 {approx = true} : vector<16x1xf32> -> vector<16x1xf32>
    %672 = vector.broadcast %671 : vector<16x1xf32> to vector<16x16xf32>
    %673 = arith.mulf %668, %672 : vector<16x16xf32>
    %674 = arith.truncf %673 : vector<16x16xf32> to vector<16x16xbf16>
    %675 = vector.extract_strided_slice %516 {offsets = [112, 0], sizes = [16, 8], strides = [1, 1]} : vector<128x8xbf16> to vector<16x8xbf16>
    %cst_258 = arith.constant dense<0.000000e+00> : vector<16x8xf32>
    %676 = tpu.matmul %674, %675, %cst_258 {dimension_numbers = #tpu.dot_dimension_numbers<[1], [0], [0], [1], [0, 0, 1, 1], [], []>} : vector<16x16xbf16>, vector<16x8xbf16>, vector<16x8xf32> -> vector<16x8xf32>
    %677 = tpu.concatenate %536, %556, %576, %596, %616, %636, %656, %676 in 0 : vector<16x8xf32>, vector<16x8xf32>, vector<16x8xf32>, vector<16x8xf32>, vector<16x8xf32>, vector<16x8xf32>, vector<16x8xf32>, vector<16x8xf32> -> vector<128x8xf32>
    %678 = tpu.concatenate %176, %343, %510, %677 in 1 : vector<128x8xf32>, vector<128x8xf32>, vector<128x8xf32>, vector<128x8xf32> -> vector<128x32xf32>
    %679 = arith.truncf %678 : vector<128x32xf32> to vector<128x32xbf16>
    %c0_259 = arith.constant 0 : index
    %c0_260 = arith.constant 0 : index
    %680 = vector.load %arg4[%c0_259, %c0_260] : memref<32x32xbf16, #tpu.memory_space<vmem>>, vector<32x32xbf16>
    %cst_261 = arith.constant dense<0.000000e+00> : vector<128x32xf32>
    %681 = tpu.matmul %679, %680, %cst_261 {dimension_numbers = #tpu.dot_dimension_numbers<[1], [0], [0], [1], [0, 0, 1, 1], [], []>} : vector<128x32xbf16>, vector<32x32xbf16>, vector<128x32xf32> -> vector<128x32xf32>
    %c0_262 = arith.constant 0 : index
    %c0_263 = arith.constant 0 : index
    %682 = vector.load %arg5[%c0_262, %c0_263] : memref<1x32xf32, #tpu.memory_space<vmem>>, vector<1x32xf32>
    %683 = vector.shape_cast %682 : vector<1x32xf32> to vector<32xf32>
    %684 = vector.shape_cast %683 : vector<32xf32> to vector<1x32xf32>
    %685 = vector.broadcast %684 : vector<1x32xf32> to vector<128x32xf32>
    %686 = arith.addf %681, %685 : vector<128x32xf32>
    %687 = vector.shape_cast %686 : vector<128x32xf32> to vector<8x16x32xf32>
    %c0_264 = arith.constant 0 : index
    %c0_265 = arith.constant 0 : index
    %c0_266 = arith.constant 0 : index
    %688 = vector.load %arg7[%c0_264, %c0_265, %c0_266] : memref<8x16x32xf32, #tpu.memory_space<vmem>>, vector<8x16x32xf32>
    tpu.vector_store %arg7[%c0_264, %c0_265, %c0_266], %687 {strides = array<i32>} : memref<8x16x32xf32, #tpu.memory_space<vmem>>, vector<8x16x32xf32>,
    return
  }
  func.func @transform_0(%arg0: i32) -> (i32, i32, i32) {
    %c0_i32 = arith.constant 0 : i32
    %c0_i32_0 = arith.constant 0 : i32
    %c0_i32_1 = arith.constant 0 : i32
    return %arg0, %c0_i32, %c0_i32_0 : i32, i32, i32
  }
  func.func @transform_1(%arg0: i32) -> (i32, i32) {
    %c0_i32 = arith.constant 0 : i32
    %c0_i32_0 = arith.constant 0 : i32
    %c0_i32_1 = arith.constant 0 : i32
    return %c0_i32, %c0_i32_0 : i32, i32
  }
  func.func @transform_2(%arg0: i32) -> (i32, i32) {
    %c0_i32 = arith.constant 0 : i32
    %c0_i32_0 = arith.constant 0 : i32
    %c0_i32_1 = arith.constant 0 : i32
    return %c0_i32, %c0_i32_0 : i32, i32
  }
  func.func @transform_3(%arg0: i32) -> (i32, i32) {
    %c0_i32 = arith.constant 0 : i32
    %c0_i32_0 = arith.constant 0 : i32
    %c0_i32_1 = arith.constant 0 : i32
    return %c0_i32, %c0_i32_0 : i32, i32
  }
  func.func @transform_4(%arg0: i32) -> (i32, i32) {
    %c0_i32 = arith.constant 0 : i32
    %c0_i32_0 = arith.constant 0 : i32
    %c0_i32_1 = arith.constant 0 : i32
    return %c0_i32, %c0_i32_0 : i32, i32
  }
  func.func @transform_5(%arg0: i32) -> (i32, i32, i32, i32) {
    %c0_i32 = arith.constant 0 : i32
    %c0_i32_0 = arith.constant 0 : i32
    %c0_i32_1 = arith.constant 0 : i32
    %c0_i32_2 = arith.constant 0 : i32
    %c0_i32_3 = arith.constant 0 : i32
    return %c0_i32, %c0_i32_0, %c0_i32_1, %c0_i32_2 : i32, i32, i32, i32
  }
  func.func @transform_6(%arg0: i32) -> (i32, i32, i32) {
    %c0_i32 = arith.constant 0 : i32
    %c0_i32_0 = arith.constant 0 : i32
    %c0_i32_1 = arith.constant 0 : i32
    return %arg0, %c0_i32, %c0_i32_0 : i32, i32, i32
  }
}

</mosaic_0001>

<bundles_post_ra>
// kernel: tpu_custom_call.1
= control target key start
LH: loop header
LB: loop body
LE: loop exit
PB: predicated region body
PF: predicated region fallthrough
CT: control target
= control target key end

     0   :  { %11 = vsyncpa [#allocation3], 0  ;;  %s5498_s0 = inlined_call_operand.hbm [shape: f32[16,16,32], index: 0, kind: input, shape index: {}]   ;;  %s5499_s1 = inlined_call_operand.hbm [shape: bf16[32,96], index: 1, kind: input, shape index: {}]   ;;  %s5500_s2 = inlined_call_operand.vmem [shape: f32[1,96], index: 2, kind: input, shape index: {}]   ;;  %s5501_s3 = inlined_call_operand.hbm [shape: bf16[32,32], index: 3, kind: input, shape index: {}]   ;;  %s5502_s4 = inlined_call_operand.vmem [shape: f32[1,32], index: 4, kind: input, shape index: {}]   ;;  %s5503_s5 = inlined_call_operand.hbm [shape: f32[4,4,16,16], index: 5, kind: input, shape index: {}]   ;;  %s5504_s6 = inlined_call_operand.hbm [shape: f32[16,16,32], index: 6, kind: output, shape index: {}]  }
   0x1   :  { %13 = vsyncpa [#allocation3 + $0x1], 0 }
   0x2   :  { %14 = vsyncpa [#allocation6], 0 }
   0x3   :  { %15 = vsyncpa [#allocation9], 0 }
   0x4   :  { %16 = vsyncpa [#allocation4], 0 }
   0x5   :  { %18 = vsyncpa [#allocation4 + $0x1], 0  ;;  %s4015_s21 = smov 0   ;;  %s4017_s22 = smov 0  }
   0x6   :  { %s4019_s23 = smov 0   ;;  %s4021_s24 = smov 0  }
   0x7 LB: > { %s4036_s25 = sadd.s32 4294967295, %s3956_s24   ;;  %s3154_s26 = sadd.s32 4294967294, %s3956_s24   ;;  %s3956_s24 = sphi %s4021_s24, %s5585_s24   ;;  %s3952_s23 = sphi %s4019_s23, %s5584_s23   ;;  %s3948_s22 = sphi %s4017_s22, %s5583_s22   ;;  %s3944_s21 = sphi %s4015_s21, %s5582_s21  }
   0x8   : > { %p44_p0 = scmp.ne.s32.totalorder %s3948_s22, %s3944_s21  ;;  %p45_p1 = scmp.eq.s32.totalorder %s4036_s25, 0 }
   0x9   : > { %p173_p2 = scmp.eq.s32.totalorder %s4036_s25, 1  ;;  %p179_p3 = scmp.eq.s32.totalorder %s3154_s26, 1 }
   0xa   : > { %p4045_p4 = por %p45_p1, %p44_p0  ;;  %p3155_p5 = scmp.ge.s32.totalorder %s3956_s24, 1 }
   0xb   : > { %p4050_p6 = por %p179_p3, %p44_p0  ;;  %p186_p7 = scmp.lt.s32.totalorder %s3956_s24, 3 }
   0xc   : > { %s197_s7 = sshll.u32 %s5499_s1, 4  ;;  %s3958_s9 = smov [#allocation5]   ;;  %s198_s7 = int_to_ptr.hbm [resolvable:$true] %s197_s7 }
   0xd   : > { %p4058_p8 = pnand %p3155_p5, %p186_p7  ;;  %s199_s10 = sshll.u32 %s3958_s9, 4  ;;  %s200_s10 = int_to_ptr.vmem [resolvable:$true] %s199_s10 }
   0xe   : > { %s214_s14 = sshll.u32 %s5501_s3, 4  ;;  %s3959_s15 = smov 64   ;;  %s215_s14 = int_to_ptr.hbm [resolvable:$true] %s214_s14 }
   0xf   : > { %p3302_p9 = pneg %p4058_p8  ;;  %s3960_s16 = smov 4  }
  0x10   : > { %s3961_s17 = smov [#allocation7]   ;;  %s231_s26 = sshll.u32 %s5503_s5, 4  ;;  %s232_s26 = int_to_ptr.hbm [resolvable:$true] %s231_s26 }
  0x11   : > { %p4066_p10 = pnand %p3302_p9, %p45_p1  ;;  %s216_s18 = sshll.u32 %s3961_s17, 4  ;;  %s217_s18 = int_to_ptr.vmem [resolvable:$true] %s216_s18 }
  0x12   : > { %s3962_s29 = smov [#allocation8]   ;;  %s5506_s9 = smov 8  }
  0x13   : > { %3305 = dma.hbm_to_vmem [thread:$0]  (!%p4066_p10), %s198_s7, 256, %s200_s10, [#allocation6], %s3959_s15, %s3959_s15, %s3960_s16  }
  0x14   : > { %3308 = dma.hbm_to_vmem [thread:$0]  (!%p4066_p10), %s215_s14, 256, %s217_s18, [#allocation6], %s3959_s15, %s3959_s15, %s3960_s16  }
  0x15   : > { %s233_s30 = sshll.u32 %s3962_s29, 4  ;;  %s5505_s7 = smov 128   ;;  %s234_s30 = int_to_ptr.vmem [resolvable:$true] %s233_s30 }
  0x16   : > { %3311 = dma.hbm_to_vmem [thread:$0]  (!%p4066_p10), %s232_s26, 4096, %s234_s30, [#allocation9], %s5505_s7, %s5505_s7, %s5506_s9  }
  0x17   : > { %s4087_s10 = sadd.s32 1, %s3956_s24   ;;  %s31_s13 = sadd.s32 1, %s3952_s23 }
  0x18   : > { %s28_s12 = ssub.s32 %s3956_s24, %s4087_s10  ;;  %p38_p13 = scmp.ne.s32.totalorder %s3952_s23, %s3948_s22 }
  0x19   : > { %p29_p12 = scmp.eq.s32.totalorder %s28_s12, 0  ;;  %p39_p0 = scmp.eq.s32.totalorder %s3956_s24, 0 }
  0x1a   : > { %p4100_p3 = por %p173_p2, %p38_p13  ;;  %p3323_p5 = scmp.lt.s32.totalorder %s3956_s24, 2 }
  0x1b   : > { %s4096_s14 = scalar_select %p29_p12, %s3952_s23, %s31_s13  }
  0x1c   : > { %s247_s11 = sand.u32 1, %s3952_s23   ;;  %s3273_s16 = sshll.u32 %s3956_s24, 7 }
  0x1d   : > { %p40_p7 = por %p39_p0, %p38_p13  ;;  %s3160_s17 = sshll.u32 %s247_s11, 7 }
  0x1e   : > { %s257_s20 = scalar_lea.hbm %s5498_s0, %s3273_s16  ;;  %s251_s29 = scalar_lea.vmem [#allocation2], %s3160_s17 }
  0x1f   : > { %s258_s26 = sshll.u32 %s257_s20, 4  ;;  %s260_s30 = sshll.u32 %s251_s29, 4  ;;  %s259_s26 = int_to_ptr.hbm [resolvable:$true] %s258_s26  ;;  %s261_s30 = int_to_ptr.vmem [resolvable:$true] %s260_s30 }
  0x20   : > { %p4110_p9 = pnand %p3323_p5, %p40_p7  ;;  %s248_s13 = scalar_lea.sflag [#allocation3], %s247_s11 }
  0x21   : > { %s3852_s7 = sshra.s32 %s259_s26, 4  ;;  %s3859_s17 = scalar_lea.hbm %s5498_s0, 256  ;;  %s3853_s7 = int_to_ptr.hbm [resolvable:$true] %s3852_s7 }
  0x22   : > { %s3854_s9 = scalar_lea.hbm %s3853_s7, 128  ;;  %p3856_p10 = pneg %p4110_p9 }
  0x23   : > { %p3855_p2 = scmp.ne.s32.totalorder %s3853_s7, %s3854_s9  ;;  %p3860_p0 = scmp.lt.s32.totalorder %s3853_s7, %s5498_s0 }
  0x24   : > { %p3861_p5 = scmp.lt.s32.totalorder %s3859_s17, %s3854_s9 }
  0x25   : > { %p3857_p12 = pnand %p3856_p10, %p3855_p2 }
  0x26   : > { %p3862_p7 = por %p3861_p5, %p3860_p0 }
  0x27   : > { %p3858_p13 = pneg %p3857_p12 }
  0x29   : > { %p3863_p11 = pnand %p3862_p7, %p3858_p13 }
  0x2b   : > { %3866 = shalt.err (!%p3863_p11)
}
  0x2c   : > { %s5518_s11 = smov 8   ;;  %s5519_s29 = smov 128  }
  0x2d   : > { %3315 = dma.hbm_to_vmem [thread:$0]  (!%p4110_p9), %s259_s26, 2048, %s261_s30, %s248_s13, %s5519_s29, %s5519_s29, %s5518_s11  }
  0x2e   : > { %272 = sbr.rel (%p4058_p8) target bundleno = 4237 (0x108d), region = 44 }
  0x33   : > { %s4130_s16 = sand.u32 1, %s3948_s22  }
  0x34   : > { %s3165_s7 = sshll.u32 %s4130_s16, 7  ;;  %s275_s9 = scalar_lea.sflag [#allocation3], %s4130_s16 }
  0x35   : > { %s4136_s18 = scalar_lea.vmem [#allocation2], %s3165_s7 }
  0x36   : > { %3927 = dma.done.wait (%p4045_p4), %s275_s9, 2048  }
  0x37   : > { %3929 = vsyncadd (%p4045_p4), %s275_s9, 4294965248 }
  0x38   : > { %3931 = dma.done.wait (%p45_p1), [#allocation6], 512  }
  0x39   : > { %3933 = vsyncadd (%p45_p1), [#allocation6], 4294966784 }
  0x3a   : > { %3935 = dma.done.wait (%p45_p1), [#allocation9], 4096  }
  0x3b   : > { %3937 = vsyncadd (%p45_p1), [#allocation9], 4294963200  ;;  %v3275_v0 = vld [vmem:[#allocation5 + $0x8] sm:$0xff]  ;;  %v3274_v1 = vld [vmem:[#allocation5] sm:$0xff]  ;;  %vm370_vm0 = vcmask 261120   ;;  %s3965_s26 = smov 96  }
  0x3c   : > { %401 = vmatpush.bf16.msra.mxu0 %v3275_v0  ;;  %v326_v2 = vld [vmem:[%s4136_s18] sm:$0xff]  ;;  %v327_v3 = vld [vmem:[%s4136_s18 + $0x8] sm:$0xff]  ;;  %3280 = vmatpush.bf16.msra.mxu1 %v3275_v0  ;;  %v336_v5 = vld [vmem:[%s4136_s18 + $0x50] sm:$0xff]  ;;  %vm469_vm1 = vcmask 64512   ;;  %vm490_vm2 = vcmask 130048   ;;  %s3966_s30 = smov 64  }
  0x3d   : > { %3281 = vmatpush.bf16.msra.mxu3 %v3275_v0  ;;  %v342_v4 = vpack.c.bf16 %v327_v3, %v326_v2  ;;  %v337_v6 = vld [vmem:[%s4136_s18 + $0x58] sm:$0xff]  ;;  %v4159_v9 = vld [vmem:[%s5500_s2] ss:$0 sm:$0xff]  ;;  %v328_v18 = vld [vmem:[%s4136_s18 + $0x10] sm:$0xff]  ;;  %s3967_s12 = smov 88   ;;  %s3968_s13 = smov 120  }
  0x3e   : > { %v347_v7 = vpack.c.bf16 %v337_v6, %v336_v5  ;;  %v329_v19 = vld [vmem:[%s4136_s18 + $0x18] sm:$0xff]  ;;  %v330_v23 = vld [vmem:[%s4136_s18 + $0x20] sm:$0xff]  ;;  %v331_v24 = vld [vmem:[%s4136_s18 + $0x28] sm:$0xff]  ;;  %s3969_s17 = smov 56   ;;  %s3970_s19 = smov 112   ;;  %vm2901_vm3 = vcmask 195584  }
  0x3f   : > { %v343_v20 = vpack.c.bf16 %v329_v19, %v328_v18  ;;  %v344_v25 = vpack.c.bf16 %v331_v24, %v330_v23  ;;  %v4180_v28 = vld [vmem:[#allocation8] sm:$0xff]  ;;  %v4184_v32 = vld [vmem:[#allocation8 + $0x8] sm:$0xff]  ;;  %v340_v48 = vld [vmem:[%s4136_s18 + $0x70] sm:$0xff]  ;;  %s3971_s20 = smov 80   ;;  %s3972_s11 = smov 72  }
  0x40   : > { %402 = vmatpush.bf16.msra.mxu0 %v3274_v1  ;;  %3282 = vmatpush.bf16.msra.mxu1 %v3274_v1  ;;  %v338_v45 = vld [vmem:[%s4136_s18 + $0x60] sm:$0xff]  ;;  %v339_v46 = vld [vmem:[%s4136_s18 + $0x68] sm:$0xff]  ;;  %v341_v49 = vld [vmem:[%s4136_s18 + $0x78] sm:$0xff]  ;;  %s3973_s29 = smov 104   ;;  %s3974_s9 = smov 48  }
  0x41   : > { %3283 = vmatpush.bf16.msra.mxu3 %v3274_v1  ;;  %v348_v47 = vpack.c.bf16 %v339_v46, %v338_v45  ;;  %v349_v50 = vpack.c.bf16 %v341_v49, %v340_v48  ;;  %v4225_v24 = vld [vmem:[#allocation8 + $0x40] sm:$0xff]  ;;  %v335_v46 = vld [vmem:[%s4136_s18 + $0x48] sm:$0xff]  ;;  %s3976_s27 = smov 8   ;;  %s3977_s8 = smov 16  }
  0x42   : > { %v334_v45 = vld [vmem:[%s4136_s18 + $0x40] sm:$0xff] }
  0x43   : > { %3178 = vmatmul.msk.bf16.vlgmr.msra.gmra.mxu0 %vm370_vm0, %v342_v4  ;;  %3183 = vmatmul.msk.bf16.vlgmr.msra.gmra.mxu1 %vm370_vm0, %v347_v7 }
  0x44   : > { %3184 = vmatmul.msk.bf16.vlgmr.msra.gmra.mxu3 %vm370_vm0, %v348_v47  ;;  %v346_v47 = vpack.c.bf16 %v335_v46, %v334_v45 }
  0x53   : > { %3179 = vmatmul.msk.bf16.gmra.mxu0 %vm370_vm0, %v343_v20 }
  0x54   : > { %3185 = vmatmul.msk.bf16.gmra.mxu3 %vm370_vm0, %v349_v50 }
  0x63   : > { %3180 = vmatmul.msk.bf16.gmra.mxu0 %vm370_vm0, %v344_v25 }
  0xc0   : > { %v404_v8 = vpop.f32.mrf.mxu0  ;;  %v4175_v26 = vpop.f32.mrf.mxu1 }
  0xc1   : > { %v405_v10 = vadd.f32 %v4159_v9, %v404_v8 }
  0xc3   : > { %v444_v12 = vpack.c.bf16 %v405_v10, %v405_v10 }
  0xc5   : > { %v464_v15 = vunpack.c.l.b16 %v444_v12 }
  0xc7   : > { %v4213_v10 = vpop.f32.mrf.mxu3 }
  0xc8   : > { %v406_v11 = vpop.f32.mrf.mxu0  ;;  %v4178_v27 = vpop.f32.mrf.mxu1 }
  0xc9   : > { %v407_v13 = vadd.f32 %v4159_v9, %v406_v11 }
  0xcb   : > { %v445_v14 = vpack.c.bf16 %v407_v13, %v407_v13 }
  0xcd   : > { %v465_v16 = vunpack.c.l.b16 %v445_v14 }
  0xcf   : > { %v4163_v17 = vpack.c.b16 %v465_v16, %v464_v15  ;;  %v4216_v20 = vpop.f32.mrf.mxu3 }
  0xd0   : > { %v409_v35 = vpop.f32.mrf.mxu0 }
  0xd1   : > { %467 = vrot.lane.b32.xlu0 %v4163_v17, %s3965_s26  ;;  %v410_v38 = vadd.f32 %v4159_v9, %v409_v35 }
  0xd3   : > { %v446_v40 = vpack.c.bf16 %v410_v38, %v410_v38 }
  0xd5   : > { %v539_v42 = vunpack.c.l.b16 %v446_v40 }
  0xd8   : > { %v411_v37 = vpop.f32.mrf.mxu0 }
  0xd9   : > { %v412_v39 = vadd.f32 %v4159_v9, %v411_v37  ;;  %v333_v37 = vld [vmem:[%s4136_s18 + $0x38] sm:$0xff] }
  0xdb   : > { %v447_v41 = vpack.c.bf16 %v412_v39, %v412_v39 }
  0xdd   : > { %v540_v43 = vunpack.c.l.b16 %v447_v41 }
  0xdf   : > { %v4190_v44 = vpack.c.b16 %v540_v43, %v539_v42 }
  0xe0   : > { %v414_v51 = vpop.f32.mrf.mxu0 }
  0xe1   : > { %v415_v52 = vadd.f32 %v4159_v9, %v414_v51 }
  0xe3   : > { %v448_v53 = vpack.c.bf16 %v415_v52, %v415_v52  ;;  %v4246_v52 = vld [vmem:[#allocation8 + $0x80] sm:$0xff] }
  0xe5   : > { %v612_v57 = vunpack.c.l.b16 %v448_v53 }
  0xe8   : > { %v416_v54 = vpop.f32.mrf.mxu0 }
  0xe9   : > { %v417_v55 = vadd.f32 %v4159_v9, %v416_v54 }
  0xeb   : > { %v449_v58 = vpack.c.bf16 %v417_v55, %v417_v55 }
  0xed   : > { %v613_v60 = vunpack.c.l.b16 %v449_v58 }
  0xef   : > { %v4202_v62 = vpack.c.b16 %v613_v60, %v612_v57  ;;  %v4250_v57 = vld [vmem:[#allocation8 + $0x88] sm:$0xff] }
 0x143   : > { %v468_v21 = vpop.permute.xlu0 %467 }
 0x144   : > { %v474_v22 = vsel %vm469_vm1, %v468_v21, 0 }
 0x145   : > { %483 = vmatpush.bf16.xpose.msrb.mxu1 %v474_v22  ;;  %v4219_v22 = vpop.f32.mrf.mxu3 }
 0x14c   : > { %3186 = vmatmul.msk.bf16.vlgmr.msrb.gmra.mxu1 %vm469_vm1, %v4163_v17 }
 0x14d   : > { %v4221_v23 = vpop.f32.mrf.mxu3 }
 0x1c9   : > { %v485_v29 = vpop.f32.mrf.mxu1 }
 0x1ca   : > { %v486_v30 = vadd.f32 %v485_v29, %v4180_v28 }
 0x1cc   : > { %v491_v31 = vsel %vm490_vm2, %v486_v30, -inf }
 0x1cd   : > { %492 = vmax.xlane.f32.xlu0 %v491_v31  ;;  %v4229_v31 = vld [vmem:[#allocation8 + $0x48] sm:$0xff] }
 0x1d1   : > { %v487_v33 = vpop.f32.mrf.mxu1 }
 0x1d2   : > { %v488_v34 = vadd.f32 %v487_v33, %v4184_v32 }
 0x1d4   : > { %v494_v36 = vsel %vm490_vm2, %v488_v34, -inf }
 0x1d5   : > { %495 = vmax.xlane.f32.xlu1 %v494_v36  ;;  %v332_v36 = vld [vmem:[%s4136_s18 + $0x30] sm:$0xff]  ;;  %s3975_s18 = smov 40  }
 0x1d6   : > { %v345_v38 = vpack.c.bf16 %v333_v37, %v332_v36 }
 0x1d8   : > { %3181 = vmatmul.msk.bf16.gmra.mxu0 %vm370_vm0, %v345_v38 }
 0x1e8   : > { %3182 = vmatmul.msk.bf16.gmra.mxu0 %vm370_vm0, %v346_v47 }
 0x1ee   : > { %542 = vrot.lane.b32.xlu1 %v4190_v44, %s3965_s26 }
 0x1f6   : > { %615 = vrot.lane.b32.xlu1 %v4202_v62, %s3965_s26 }
 0x240   : > { %v493_v56 = vpop.xlane.xlu0 %492 }
 0x241   : > { %v497_v59 = vsub.f32 %v486_v30, %v493_v56 }
 0x243   : > { %v499_v61 = vmul.f32 1.442695, %v497_v59 }
 0x245   : > { %3504 = vpow2.f32 %v499_v61 }
 0x248   : > { %v496_v63 = vpop.xlane.xlu1 %495 }
 0x249   : > { %v498_v0 = vsub.f32 %v488_v34, %v496_v63 }
 0x24b   : > { %v3505_v1 = vpop.eup %3504  ;;  %v501_v2 = vmul.f32 1.442695, %v498_v0 }
 0x24c   : > { %v503_v3 = vsel %vm490_vm2, %v3505_v1, 0.0 }
 0x24d   : > { %3506 = vpow2.f32 %v501_v2  ;;  %504 = vadd.xlane.f32.xlu2 %v503_v3 }
 0x253   : > { %v3507_v4 = vpop.eup %3506 }
 0x254   : > { %v506_v5 = vsel %vm490_vm2, %v3507_v4, 0.0 }
 0x255   : > { %507 = vadd.xlane.f32.xlu2 %v506_v5  ;;  %v419_v2 = vpop.f32.mrf.mxu0 }
 0x260   : > { %v543_v6 = vpop.permute.xlu1 %542 }
 0x261   : > { %v548_v7 = vsel %vm469_vm1, %v543_v6, 0  ;;  %v421_v6 = vpop.f32.mrf.mxu0 }
 0x262   : > { %557 = vmatpush.bf16.xpose.msrb.mxu3 %v548_v7 }
 0x268   : > { %v616_v12 = vpop.permute.xlu1 %615 }
 0x269   : > { %3188 = vmatmul.msk.bf16.vlgmr.msrb.gmra.mxu3 %vm469_vm1, %v4190_v44  ;;  %v621_v15 = vsel %vm469_vm1, %v616_v12, 0 }
 0x26d   : > { %514 = vrot.lane.b32.xlu2 %v4163_v17, %s3966_s30 }
 0x2c0   : > { %v505_v8 = vpop.xlane.xlu2 %504 }
 0x2c1   : > { %3508 = vrcp.f32 %v505_v8 }
 0x2c7   : > { %v3509_v13 = vpop.eup %3508 }
 0x2c8   : > { %v508_v11 = vpop.xlane.xlu2 %507  ;;  %v511_v16 = vmul.f32 %v3509_v13, %v3505_v1 }
 0x2c9   : > { %3510 = vrcp.f32 %v508_v11 }
 0x2cf   : > { %v3511_v14 = vpop.eup %3510 }
 0x2d0   : > { %v512_v18 = vmul.f32 %v3511_v14, %v3507_v4  ;;  %v515_v19 = vpop.permute.xlu2 %514  ;;  %v424_v14 = vpop.f32.mrf.mxu0 }
 0x2d1   : > { %527 = vmatpush.bf16.msra.mxu1 %v515_v19  ;;  %v420_v19 = vadd.f32 %v4159_v9, %v419_v2 }
 0x2d2   : > { %v513_v21 = vpack.c.bf16 %v512_v18, %v511_v16  ;;  %v425_v16 = vadd.f32 %v4159_v9, %v424_v14 }
 0x2d4   : > { %3187 = vmatmul.msk.bf16.vlgmr.msra.gmra.mxu1 %vm490_vm2, %v513_v21  ;;  %v422_v21 = vadd.f32 %v4159_v9, %v421_v6 }
 0x2d5   : > { %630 = vmatpush.bf16.xpose.msrb.mxu1 %v621_v15 }
 0x2d6   : > { %v451_v36 = vpack.c.bf16 %v422_v21, %v422_v21 }
 0x2d8   : > { %v686_v47 = vunpack.c.l.b16 %v451_v36 }
 0x2e4   : > { %3190 = vmatmul.msk.bf16.vlgmr.msrb.gmra.mxu1 %vm469_vm1, %v4202_v62 }
 0x2ec   : > { %v559_v25 = vpop.f32.mrf.mxu3 }
 0x2ed   : > { %v560_v29 = vadd.f32 %v559_v25, %v4225_v24 }
 0x2ef   : > { %v564_v30 = vsel %vm490_vm2, %v560_v29, -inf }
 0x2f0   : > { %565 = vmax.xlane.f32.xlu2 %v564_v30  ;;  %v452_v30 = vpack.c.bf16 %v425_v16, %v425_v16 }
 0x2f4   : > { %v561_v33 = vpop.f32.mrf.mxu3 }
 0x2f5   : > { %v562_v34 = vadd.f32 %v561_v33, %v4229_v31  ;;  %v426_v33 = vpop.f32.mrf.mxu0 }
 0x2f6   : > { %v427_v37 = vadd.f32 %v4159_v9, %v426_v33  ;;  %v437_v33 = vadd.f32 %v4159_v9, %v4216_v20 }
 0x2f7   : > { %v567_v35 = vsel %vm490_vm2, %v562_v34, -inf }
 0x2f8   : > { %568 = vmax.xlane.f32.xlu1 %v567_v35  ;;  %v450_v35 = vpack.c.bf16 %v420_v19, %v420_v19 }
 0x2fa   : > { %v685_v46 = vunpack.c.l.b16 %v450_v35  ;;  %v457_v35 = vpack.c.bf16 %v437_v33, %v437_v33 }
 0x2fc   : > { %v896_v36 = vunpack.c.l.b16 %v457_v35 }
 0x308   : > { %587 = vrot.lane.b32.xlu2 %v4190_v44, %s3966_s30 }
 0x351   : > { %v4237_v39 = vpop.f32.mrf.mxu1 }
 0x352   : > { %5520 = vst [vmem:[#allocation15_spill] sm:$0xff] %v4237_v39 }
 0x359   : > { %v4240_v41 = vpop.f32.mrf.mxu1 }
 0x35a   : > { %5521 = vst [vmem:[#allocation16_spill] sm:$0xff] %v4240_v41 }
 0x361   : > { %v632_v50 = vpop.f32.mrf.mxu1 }
 0x362   : > { %v633_v53 = vadd.f32 %v632_v50, %v4246_v52 }
 0x363   : > { %v566_v40 = vpop.xlane.xlu2 %565 }
 0x364   : > { %v570_v42 = vsub.f32 %v560_v29, %v566_v40  ;;  %v637_v56 = vsel %vm490_vm2, %v633_v53, -inf }
 0x366   : > { %v572_v43 = vmul.f32 1.442695, %v570_v42  ;;  %v755_v42 = vunpack.c.l.b16 %v452_v30  ;;  %v435_v30 = vadd.f32 %v4159_v9, %v4213_v10 }
 0x368   : > { %3512 = vpow2.f32 %v572_v43  ;;  %v453_v43 = vpack.c.bf16 %v427_v37, %v427_v37 }
 0x369   : > { %v634_v58 = vpop.f32.mrf.mxu1 }
 0x36a   : > { %v635_v60 = vadd.f32 %v634_v58, %v4250_v57 }
 0x36b   : > { %v588_v48 = vpop.permute.xlu2 %587  ;;  %v569_v54 = vpop.xlane.xlu1 %568 }
 0x36c   : > { %600 = vmatpush.bf16.msra.mxu2 %v588_v48  ;;  %v571_v55 = vsub.f32 %v562_v34, %v569_v54  ;;  %v640_v61 = vsel %vm490_vm2, %v635_v60, -inf  ;;  %v756_v48 = vunpack.c.l.b16 %v453_v43 }
 0x36e   : > { %v3513_v49 = vpop.eup %3512  ;;  %v574_v59 = vmul.f32 1.442695, %v571_v55  ;;  %v4262_v50 = vpack.c.b16 %v756_v48, %v755_v42 }
 0x36f   : > { %v576_v51 = vsel %vm490_vm2, %v3513_v49, 0.0 }
 0x370   : > { %577 = vadd.xlane.f32.xlu0 %v576_v51  ;;  %3514 = vpow2.f32 %v574_v59  ;;  %v4264_v51 = vpack.c.b16 %v686_v47, %v685_v46  ;;  %758 = vrot.lane.b32.xlu2 %v4262_v50, %s3965_s26 }
 0x376   : > { %v3515_v63 = vpop.eup %3514 }
 0x377   : > { %v579_v0 = vsel %vm490_vm2, %v3515_v63, 0.0 }
 0x378   : > { %638 = vmax.xlane.f32.xlu0 %v637_v56 }
 0x380   : > { %641 = vmax.xlane.f32.xlu0 %v640_v61 }
 0x388   : > { %580 = vadd.xlane.f32.xlu0 %v579_v0 }
 0x3ca   : > { %v759_v58 = vpop.permute.xlu2 %758 }
 0x3cb   : > { %v764_v61 = vsel %vm469_vm1, %v759_v58, 0 }
 0x3e3   : > { %v578_v1 = vpop.xlane.xlu0 %577 }
 0x3eb   : > { %v639_v3 = vpop.xlane.xlu0 %638 }
 0x3ec   : > { %v643_v4 = vsub.f32 %v633_v53, %v639_v3 }
 0x3ee   : > { %v645_v5 = vmul.f32 1.442695, %v643_v4  ;;  %v4283_v4 = vld [vmem:[#allocation8 + $0xc0] sm:$0xff] }
 0x3f0   : > { %3516 = vpow2.f32 %v645_v5 }
 0x3f3   : > { %v642_v7 = vpop.xlane.xlu0 %641 }
 0x3f4   : > { %v644_v8 = vsub.f32 %v635_v60, %v642_v7 }
 0x3f6   : > { %v3517_v11 = vpop.eup %3516  ;;  %v647_v12 = vmul.f32 1.442695, %v644_v8  ;;  %v4287_v8 = vld [vmem:[#allocation8 + $0xc8] sm:$0xff] }
 0x3f7   : > { %v649_v13 = vsel %vm490_vm2, %v3517_v11, 0.0 }
 0x3f8   : > { %3518 = vpow2.f32 %v647_v12  ;;  %650 = vadd.xlane.f32.xlu0 %v649_v13 }
 0x3f9   : > { %3520 = vrcp.f32 %v578_v1 }
 0x3fb   : > { %v581_v15 = vpop.xlane.xlu0 %580 }
 0x3fc   : > { %3522 = vrcp.f32 %v581_v15 }
 0x3fe   : > { %v3519_v18 = vpop.eup %3518 }
 0x3ff   : > { %v652_v25 = vsel %vm490_vm2, %v3519_v18, 0.0  ;;  %v3521_v29 = vpop.eup %3520 }
 0x400   : > { %653 = vadd.xlane.f32.xlu1 %v652_v25  ;;  %v584_v38 = vmul.f32 %v3521_v29, %v3513_v49 }
 0x402   : > { %v3523_v34 = vpop.eup %3522 }
 0x403   : > { %v585_v40 = vmul.f32 %v3523_v34, %v3515_v63  ;;  %v456_v34 = vpack.c.bf16 %v435_v30, %v435_v30 }
 0x405   : > { %v586_v45 = vpack.c.bf16 %v585_v40, %v584_v38 }
 0x407   : > { %3189 = vmatmul.msk.bf16.vlgmr.msra.gmra.mxu2 %vm490_vm2, %v586_v45 }
 0x40c   : > { %688 = vrot.lane.b32.xlu0 %v4264_v51, %s3965_s26 }
 0x419   : > { %660 = vrot.lane.b32.xlu1 %v4202_v62, %s3966_s30 }
 0x46b   : > { %v651_v49 = vpop.xlane.xlu0 %650 }
 0x473   : > { %v654_v53 = vpop.xlane.xlu1 %653 }
 0x474   : > { %3524 = vrcp.f32 %v654_v53 }
 0x475   : > { %3526 = vrcp.f32 %v651_v49 }
 0x47a   : > { %v3525_v56 = vpop.eup %3524 }
 0x47b   : > { %v3527_v59 = vpop.eup %3526  ;;  %v658_v60 = vmul.f32 %v3525_v56, %v3519_v18 }
 0x47c   : > { %v657_v63 = vmul.f32 %v3527_v59, %v3517_v11 }
 0x47e   : > { %v689_v54 = vpop.permute.xlu0 %688  ;;  %v659_v1 = vpack.c.bf16 %v658_v60, %v657_v63  ;;  %v430_v63 = vadd.f32 %v4159_v9, %v4175_v26 }
 0x47f   : > { %v694_v55 = vsel %vm469_vm1, %v689_v54, 0 }
 0x480   : > { %703 = vmatpush.bf16.xpose.msrb.mxu2 %v694_v55 }
 0x487   : > { %3192 = vmatmul.msk.bf16.vlgmr.msrb.gmra.mxu2 %vm469_vm1, %v4264_v51 }
 0x48a   : > { %v4279_v2 = vpop.f32.mrf.mxu2 }
 0x48b   : > { %v661_v0 = vpop.permute.xlu1 %660  ;;  %5522 = vst [vmem:[#allocation17_spill] sm:$0xff] %v4279_v2 }
 0x48c   : > { %673 = vmatpush.bf16.msra.mxu3 %v661_v0  ;;  %v432_v0 = vadd.f32 %v4159_v9, %v4178_v27 }
 0x48f   : > { %3191 = vmatmul.msk.bf16.vlgmr.msra.gmra.mxu3 %vm490_vm2, %v659_v1  ;;  %v454_v1 = vpack.c.bf16 %v430_v63, %v430_v63 }
 0x490   : > { %773 = vmatpush.bf16.xpose.msrb.mxu3 %v764_v61 }
 0x492   : > { %v4281_v3 = vpop.f32.mrf.mxu2 }
 0x493   : > { %5523 = vst [vmem:[#allocation18_spill] sm:$0xff] %v4281_v3 }
 0x49f   : > { %3194 = vmatmul.msk.bf16.vlgmr.msrb.gmra.mxu3 %vm469_vm1, %v4262_v50 }
 0x50a   : > { %v705_v5 = vpop.f32.mrf.mxu2 }
 0x50b   : > { %v706_v6 = vadd.f32 %v705_v5, %v4283_v4  ;;  %v455_v5 = vpack.c.bf16 %v432_v0, %v432_v0 }
 0x50d   : > { %v710_v7 = vsel %vm490_vm2, %v706_v6, -inf }
 0x50e   : > { %711 = vmax.xlane.f32.xlu0 %v710_v7  ;;  %v825_v7 = vunpack.c.l.b16 %v454_v1 }
 0x512   : > { %v4289_v11 = vpop.f32.mrf.mxu3  ;;  %v707_v12 = vpop.f32.mrf.mxu2 }
 0x513   : > { %5524 = vst [vmem:[#allocation19_spill] sm:$0xff] %v4289_v11  ;;  %v708_v13 = vadd.f32 %v707_v12, %v4287_v8  ;;  %v826_v12 = vunpack.c.l.b16 %v455_v5 }
 0x515   : > { %v713_v14 = vsel %vm490_vm2, %v708_v13, -inf }
 0x516   : > { %714 = vmax.xlane.f32.xlu2 %v713_v14 }
 0x51a   : > { %v4293_v15 = vpop.f32.mrf.mxu3 }
 0x51b   : > { %5525 = vst [vmem:[#allocation20_spill] sm:$0xff] %v4293_v15 }
 0x522   : > { %v775_v16 = vpop.f32.mrf.mxu3 }
 0x523   : > { %v776_v18 = vadd.f32 %v775_v16, %v4180_v28  ;;  %v895_v28 = vunpack.c.l.b16 %v456_v34 }
 0x525   : > { %v780_v19 = vsel %vm490_vm2, %v776_v18, -inf  ;;  %v4305_v37 = vpack.c.b16 %v896_v36, %v895_v28 }
 0x526   : > { %781 = vmax.xlane.f32.xlu1 %v780_v19 }
 0x52a   : > { %v777_v21 = vpop.f32.mrf.mxu3 }
 0x52b   : > { %v778_v25 = vadd.f32 %v777_v21, %v4184_v32 }
 0x52d   : > { %v783_v29 = vsel %vm490_vm2, %v778_v25, -inf }
 0x52e   : > { %784 = vmax.xlane.f32.xlu0 %v783_v29 }
 0x542   : > { %733 = vrot.lane.b32.xlu0 %v4264_v51, %s3966_s30 }
 0x54a   : > { %898 = vrot.lane.b32.xlu0 %v4305_v37, %s3965_s26 }
 0x581   : > { %v712_v32 = vpop.xlane.xlu0 %711 }
 0x582   : > { %v716_v38 = vsub.f32 %v706_v6, %v712_v32 }
 0x584   : > { %v718_v40 = vmul.f32 1.442695, %v716_v38 }
 0x586   : > { %3528 = vpow2.f32 %v718_v40 }
 0x589   : > { %v715_v10 = vpop.xlane.xlu2 %714 }
 0x58a   : > { %v717_v42 = vsub.f32 %v708_v13, %v715_v10  ;;  %v4317_v13 = vpack.c.b16 %v826_v12, %v825_v7  ;;  %v440_v12 = vadd.f32 %v4159_v9, %v4219_v22 }
 0x58c   : > { %v3529_v43 = vpop.eup %3528  ;;  %v720_v20 = vmul.f32 1.442695, %v717_v42 }
 0x58d   : > { %v722_v45 = vsel %vm490_vm2, %v3529_v43, 0.0 }
 0x58e   : > { %3530 = vpow2.f32 %v720_v20  ;;  %723 = vadd.xlane.f32.xlu2 %v722_v45 }
 0x594   : > { %v3531_v46 = vpop.eup %3530 }
 0x595   : > { %v725_v47 = vsel %vm490_vm2, %v3531_v46, 0.0 }
 0x596   : > { %726 = vadd.xlane.f32.xlu1 %v725_v47 }
 0x599   : > { %v782_v48 = vpop.xlane.xlu1 %781 }
 0x59a   : > { %v786_v49 = vsub.f32 %v776_v18, %v782_v48 }
 0x59c   : > { %v788_v53 = vmul.f32 1.442695, %v786_v49 }
 0x59e   : > { %3532 = vpow2.f32 %v788_v53 }
 0x5a1   : > { %v785_v54 = vpop.xlane.xlu0 %784 }
 0x5a2   : > { %v787_v55 = vsub.f32 %v778_v25, %v785_v54 }
 0x5a4   : > { %v3533_v56 = vpop.eup %3532  ;;  %v790_v58 = vmul.f32 1.442695, %v787_v55 }
 0x5a5   : > { %v792_v59 = vsel %vm490_vm2, %v3533_v56, 0.0 }
 0x5a6   : > { %3534 = vpow2.f32 %v790_v58  ;;  %793 = vadd.xlane.f32.xlu2 %v792_v59 }
 0x5ac   : > { %v3535_v60 = vpop.eup %3534 }
 0x5ad   : > { %v795_v61 = vsel %vm490_vm2, %v3535_v60, 0.0 }
 0x5ae   : > { %796 = vadd.xlane.f32.xlu1 %v795_v61 }
 0x5b4   : > { %v734_v6 = vpop.permute.xlu0 %733 }
 0x5b5   : > { %746 = vmatpush.bf16.msra.mxu1 %v734_v6 }
 0x5bc   : > { %v899_v28 = vpop.permute.xlu0 %898 }
 0x5bd   : > { %v904_v40 = vsel %vm469_vm1, %v899_v28, 0 }
 0x5be   : > { %828 = vrot.lane.b32.xlu2 %v4317_v13, %s3965_s26 }
 0x5c7   : > { %803 = vrot.lane.b32.xlu1 %v4262_v50, %s3966_s30 }
 0x601   : > { %v724_v14 = vpop.xlane.xlu2 %723 }
 0x602   : > { %3536 = vrcp.f32 %v724_v14  ;;  %v442_v14 = vadd.f32 %v4159_v9, %v4221_v23 }
 0x608   : > { %v3537_v16 = vpop.eup %3536 }
 0x609   : > { %v727_v26 = vpop.xlane.xlu1 %726  ;;  %v730_v18 = vmul.f32 %v3537_v16, %v3529_v43  ;;  %v459_v16 = vpack.c.bf16 %v442_v14, %v442_v14 }
 0x60a   : > { %3538 = vrcp.f32 %v727_v26  ;;  %v458_v26 = vpack.c.bf16 %v440_v12, %v440_v12 }
 0x610   : > { %v3539_v27 = vpop.eup %3538 }
 0x611   : > { %v731_v19 = vmul.f32 %v3539_v27, %v3531_v46  ;;  %v965_v27 = vunpack.c.l.b16 %v458_v26 }
 0x613   : > { %v732_v21 = vpack.c.bf16 %v731_v19, %v730_v18  ;;  %v966_v18 = vunpack.c.l.b16 %v459_v16  ;;  %v1034_v16 = vld [vmem:[#allocation8 + $0x10] sm:$0xff] }
 0x615   : > { %3193 = vmatmul.msk.bf16.vlgmr.msra.gmra.mxu1 %vm490_vm2, %v732_v21  ;;  %v4357_v19 = vpack.c.b16 %v966_v18, %v965_v27 }
 0x617   : > { %5530 = vst [vmem:[#allocation25_spill] sm:$0xff] %v4357_v19 }
 0x619   : > { %v794_v25 = vpop.xlane.xlu2 %793 }
 0x621   : > { %v829_v29 = vpop.permute.xlu2 %828  ;;  %v797_v33 = vpop.xlane.xlu1 %796 }
 0x622   : > { %v834_v30 = vsel %vm469_vm1, %v829_v29, 0  ;;  %3540 = vrcp.f32 %v797_v33 }
 0x623   : > { %843 = vmatpush.bf16.xpose.msrb.mxu1 %v834_v30  ;;  %3542 = vrcp.f32 %v794_v25 }
 0x628   : > { %v3541_v34 = vpop.eup %3540 }
 0x629   : > { %v3543_v35 = vpop.eup %3542  ;;  %v801_v36 = vmul.f32 %v3541_v34, %v3535_v60 }
 0x62a   : > { %3196 = vmatmul.msk.bf16.vlgmr.msrb.gmra.mxu1 %vm469_vm1, %v4317_v13  ;;  %v800_v32 = vmul.f32 %v3543_v35, %v3533_v56 }
 0x62c   : > { %v802_v10 = vpack.c.bf16 %v801_v36, %v800_v32 }
 0x639   : > { %v804_v38 = vpop.permute.xlu1 %803 }
 0x63a   : > { %816 = vmatpush.bf16.msra.mxu2 %v804_v38 }
 0x63d   : > { %3195 = vmatmul.msk.bf16.vlgmr.msra.gmra.mxu2 %vm490_vm2, %v802_v10 }
 0x63e   : > { %913 = vmatpush.bf16.xpose.msrb.mxu2 %v904_v40 }
 0x64d   : > { %3198 = vmatmul.msk.bf16.vlgmr.msrb.gmra.mxu2 %vm469_vm1, %v4305_v37 }
 0x692   : > { %v4331_v42 = vpop.f32.mrf.mxu1 }
 0x693   : > { %5526 = vst [vmem:[#allocation21_spill] sm:$0xff] %v4331_v42 }
 0x69a   : > { %v4333_v43 = vpop.f32.mrf.mxu1 }
 0x69b   : > { %5527 = vst [vmem:[#allocation22_spill] sm:$0xff] %v4333_v43  ;;  %v1653_v43 = vld [vmem:[#allocation8 + $0x68] sm:$0xff] }
 0x6a7   : > { %v845_v20 = vpop.f32.mrf.mxu1 }
 0x6a8   : > { %v846_v45 = vadd.f32 %v845_v20, %v4225_v24 }
 0x6aa   : > { %v850_v46 = vsel %vm490_vm2, %v846_v45, -inf }
 0x6ab   : > { %851 = vmax.xlane.f32.xlu0 %v850_v46 }
 0x6af   : > { %v847_v47 = vpop.f32.mrf.mxu1 }
 0x6b0   : > { %v848_v48 = vadd.f32 %v847_v47, %v4229_v31 }
 0x6b2   : > { %v853_v49 = vsel %vm490_vm2, %v848_v48, -inf }
 0x6b3   : > { %854 = vmax.xlane.f32.xlu2 %v853_v49 }
 0x6c0   : > { %v4339_v53 = vpop.f32.mrf.mxu2 }
 0x6c1   : > { %5528 = vst [vmem:[#allocation23_spill] sm:$0xff] %v4339_v53 }
 0x6c8   : > { %v4341_v54 = vpop.f32.mrf.mxu2 }
 0x6c9   : > { %5529 = vst [vmem:[#allocation24_spill] sm:$0xff] %v4341_v54 }
 0x6d0   : > { %v915_v55 = vpop.f32.mrf.mxu2 }
 0x6d1   : > { %v916_v56 = vadd.f32 %v915_v55, %v4246_v52 }
 0x6d3   : > { %v920_v58 = vsel %vm490_vm2, %v916_v56, -inf }
 0x6d4   : > { %921 = vmax.xlane.f32.xlu1 %v920_v58 }
 0x6d8   : > { %v917_v24 = vpop.f32.mrf.mxu2 }
 0x6d9   : > { %v918_v59 = vadd.f32 %v917_v24, %v4250_v57 }
 0x6db   : > { %v923_v60 = vsel %vm490_vm2, %v918_v59, -inf }
 0x6dc   : > { %924 = vmax.xlane.f32.xlu0 %v923_v60 }
 0x6ed   : > { %873 = vrot.lane.b32.xlu1 %v4317_v13, %s3966_s30 }
 0x6f5   : > { %1038 = vrot.lane.b32.xlu1 %v4163_v17, %s3967_s12 }
 0x71e   : > { %v852_v31 = vpop.xlane.xlu0 %851 }
 0x71f   : > { %v856_v61 = vsub.f32 %v846_v45, %v852_v31 }
 0x721   : > { %v858_v63 = vmul.f32 1.442695, %v856_v61 }
 0x723   : > { %3544 = vpow2.f32 %v858_v63 }
 0x726   : > { %v855_v52 = vpop.xlane.xlu2 %854 }
 0x727   : > { %v857_v0 = vsub.f32 %v848_v48, %v855_v52 }
 0x729   : > { %v3545_v1 = vpop.eup %3544  ;;  %v860_v5 = vmul.f32 1.442695, %v857_v0 }
 0x72a   : > { %v862_v57 = vsel %vm490_vm2, %v3545_v1, 0.0 }
 0x72b   : > { %3546 = vpow2.f32 %v860_v5  ;;  %863 = vadd.xlane.f32.xlu2 %v862_v57 }
 0x731   : > { %v3547_v6 = vpop.eup %3546 }
 0x732   : > { %v865_v7 = vsel %vm490_vm2, %v3547_v6, 0.0 }
 0x733   : > { %866 = vadd.xlane.f32.xlu0 %v865_v7 }
 0x743   : > { %968 = vrot.lane.b32.xlu2 %v4357_v19, %s3965_s26  ;;  %s3978_s26 = smov 24  }
 0x747   : > { %v922_v21 = vpop.xlane.xlu1 %921 }
 0x748   : > { %v926_v25 = vsub.f32 %v916_v56, %v922_v21  ;;  %v1035_v21 = vld [vmem:[#allocation8 + $0x18] sm:$0xff] }
 0x74a   : > { %v928_v29 = vmul.f32 1.442695, %v926_v25 }
 0x74b   : > { %1036 = vrot.lane.b32.xlu2 %v4163_v17, %s3968_s13 }
 0x74c   : > { %3548 = vpow2.f32 %v928_v29 }
 0x74f   : > { %v925_v22 = vpop.xlane.xlu0 %924 }
 0x750   : > { %v927_v30 = vsub.f32 %v918_v59, %v925_v22 }
 0x752   : > { %v3549_v9 = vpop.eup %3548  ;;  %v930_v23 = vmul.f32 1.442695, %v927_v30 }
 0x753   : > { %v932_v33 = vsel %vm490_vm2, %v3549_v9, 0.0 }
 0x754   : > { %3550 = vpow2.f32 %v930_v23  ;;  %933 = vadd.xlane.f32.xlu0 %v932_v33 }
 0x75a   : > { %v3551_v34 = vpop.eup %3550 }
 0x75b   : > { %v935_v35 = vsel %vm490_vm2, %v3551_v34, 0.0 }
 0x75c   : > { %936 = vadd.xlane.f32.xlu0 %v935_v35 }
 0x75f   : > { %v874_v28 = vpop.permute.xlu1 %873 }
 0x760   : > { %886 = vmatpush.bf16.msra.mxu3 %v874_v28 }
 0x767   : > { %v1039_v58 = vpop.permute.xlu1 %1038 }
 0x768   : > { %v1044_v31 = vsel %vm469_vm1, %v1039_v58, 0 }
 0x770   : > { %943 = vrot.lane.b32.xlu0 %v4305_v37, %s3966_s30 }
 0x79e   : > { %v864_v36 = vpop.xlane.xlu2 %863 }
 0x79f   : > { %3552 = vrcp.f32 %v864_v36 }
 0x7a5   : > { %v3553_v10 = vpop.eup %3552 }
 0x7a6   : > { %v969_v32 = vpop.permute.xlu2 %968  ;;  %v867_v38 = vpop.xlane.xlu0 %866  ;;  %v870_v45 = vmul.f32 %v3553_v10, %v3545_v1 }
 0x7a7   : > { %v974_v40 = vsel %vm469_vm1, %v969_v32, 0  ;;  %3554 = vrcp.f32 %v867_v38 }
 0x7a8   : > { %983 = vmatpush.bf16.xpose.msrb.mxu3 %v974_v40 }
 0x7ad   : > { %v3555_v20 = vpop.eup %3554 }
 0x7ae   : > { %v871_v46 = vmul.f32 %v3555_v20, %v3547_v6  ;;  %v1037_v63 = vpop.permute.xlu2 %1036 }
 0x7b0   : > { %v872_v47 = vpack.c.bf16 %v871_v46, %v870_v45 }
 0x7b2   : > { %3197 = vmatmul.msk.bf16.vlgmr.msra.gmra.mxu3 %vm490_vm2, %v872_v47 }
 0x7c2   : > { %3200 = vmatmul.msk.bf16.vlgmr.msrb.gmra.mxu3 %vm469_vm1, %v4357_v19 }
 0x7c7   : > { %v934_v48 = vpop.xlane.xlu0 %933 }
 0x7cf   : > { %v937_v49 = vpop.xlane.xlu0 %936 }
 0x7d0   : > { %3556 = vrcp.f32 %v937_v49 }
 0x7d1   : > { %3558 = vrcp.f32 %v934_v48 }
 0x7d6   : > { %v3557_v55 = vpop.eup %3556 }
 0x7d7   : > { %v3559_v56 = vpop.eup %3558  ;;  %v941_v24 = vmul.f32 %v3557_v55, %v3551_v34 }
 0x7d8   : > { %v940_v59 = vmul.f32 %v3559_v56, %v3549_v9 }
 0x7da   : > { %v942_v61 = vpack.c.bf16 %v941_v24, %v940_v59 }
 0x7e2   : > { %v944_v60 = vpop.permute.xlu0 %943 }
 0x7e3   : > { %956 = vmatpush.bf16.msra.mxu1 %v944_v60 }
 0x7e6   : > { %3199 = vmatmul.msk.bf16.vlgmr.msra.gmra.mxu1 %vm490_vm2, %v942_v61 }
 0x7e7   : > { %1053 = vmatpush.bf16.xpose.msrb.mxu1 %v1044_v31 }
 0x7f6   : > { %3202 = vmatmul.msk.bf16.vlgmr.msrb.gmra.mxu1 %vm469_vm1, %v1037_v63 }
 0x835   : > { %v4374_v52 = vpop.f32.mrf.mxu3 }
 0x836   : > { %5531 = vst [vmem:[#allocation26_spill] sm:$0xff] %v4374_v52 }
 0x83d   : > { %v4376_v0 = vpop.f32.mrf.mxu3 }
 0x83e   : > { %5532 = vst [vmem:[#allocation27_spill] sm:$0xff] %v4376_v0 }
 0x845   : > { %v985_v1 = vpop.f32.mrf.mxu3 }
 0x846   : > { %v986_v5 = vadd.f32 %v985_v1, %v4283_v4 }
 0x848   : > { %v990_v57 = vsel %vm490_vm2, %v986_v5, -inf }
 0x849   : > { %991 = vmax.xlane.f32.xlu1 %v990_v57 }
 0x84d   : > { %v987_v6 = vpop.f32.mrf.mxu3 }
 0x84e   : > { %v988_v7 = vadd.f32 %v987_v6, %v4287_v8 }
 0x850   : > { %v993_v12 = vsel %vm490_vm2, %v988_v7, -inf }
 0x851   : > { %994 = vmax.xlane.f32.xlu2 %v993_v12 }
 0x863   : > { %v4382_v14 = vpop.f32.mrf.mxu1 }
 0x864   : > { %5533 = vst [vmem:[#allocation28_spill] sm:$0xff] %v4382_v14 }
 0x86b   : > { %v4384_v26 = vpop.f32.mrf.mxu1 }
 0x86c   : > { %5534 = vst [vmem:[#allocation29_spill] sm:$0xff] %v4384_v26 }
 0x873   : > { %v1055_v27 = vpop.f32.mrf.mxu1 }
 0x874   : > { %v4386_v18 = vadd.f32 %v1055_v27, %v1034_v16 }
 0x876   : > { %v1060_v4 = vsel %vm490_vm2, %v4386_v18, -inf }
 0x877   : > { %1061 = vmax.xlane.f32.xlu0 %v1060_v4 }
 0x87b   : > { %v1057_v25 = vpop.f32.mrf.mxu1 }
 0x87c   : > { %v4390_v29 = vadd.f32 %v1057_v25, %v1035_v21  ;;  %v4442_v25 = vld [vmem:[#allocation8 + $0x58] sm:$0xff] }
 0x87e   : > { %v1063_v8 = vsel %vm490_vm2, %v4390_v29, -inf }
 0x87f   : > { %1064 = vmax.xlane.f32.xlu1 %v1063_v8 }
 0x898   : > { %1013 = vrot.lane.b32.xlu1 %v4357_v19, %s3966_s30  ;;  %s3902_s30 = scalar_lea.hbm %s5504_s6, 256 }
 0x8a0   : > { %1106 = vrot.lane.b32.xlu1 %v4190_v44, %s3968_s13 }
 0x8a8   : > { %1176 = vrot.lane.b32.xlu1 %v4202_v62, %s3968_s13 }
 0x8b0   : > { %1223 = vrot.lane.b32.xlu1 %v4202_v62, %s3969_s17 }
 0x8b8   : > { %1315 = vrot.lane.b32.xlu1 %v4262_v50, %s3967_s12 }
 0x8bc   : > { %v992_v22 = vpop.xlane.xlu1 %991 }
 0x8bd   : > { %v996_v30 = vsub.f32 %v986_v5, %v992_v22 }
 0x8bf   : > { %v998_v9 = vmul.f32 1.442695, %v996_v30 }
 0x8c0   : > { %1380 = vrot.lane.b32.xlu1 %v4317_v13, %s3968_s13 }
 0x8c1   : > { %3560 = vpow2.f32 %v998_v9 }
 0x8c4   : > { %v995_v23 = vpop.xlane.xlu2 %994 }
 0x8c5   : > { %v997_v33 = vsub.f32 %v988_v7, %v995_v23  ;;  %v4437_v7 = vld [vmem:[#allocation8 + $0x50] sm:$0xff] }
 0x8c7   : > { %v3561_v34 = vpop.eup %3560  ;;  %v1000_v35 = vmul.f32 1.442695, %v997_v33 }
 0x8c8   : > { %1447 = vrot.lane.b32.xlu1 %v4305_v37, %s3968_s13  ;;  %v1002_v28 = vsel %vm490_vm2, %v3561_v34, 0.0 }
 0x8c9   : > { %3562 = vpow2.f32 %v1000_v35  ;;  %1003 = vadd.xlane.f32.xlu2 %v1002_v28 }
 0x8cf   : > { %v3563_v36 = vpop.eup %3562 }
 0x8d0   : > { %1516 = vrot.lane.b32.xlu1 %v4357_v19, %s3967_s12  ;;  %v1005_v32 = vsel %vm490_vm2, %v3563_v36, 0.0 }
 0x8d1   : > { %1006 = vadd.xlane.f32.xlu0 %v1005_v32 }
 0x8d8   : > { %1514 = vrot.lane.b32.xlu1 %v4357_v19, %s3968_s13 }
 0x8e0   : > { %1654 = vrot.lane.b32.xlu1 %v4190_v44, %s3970_s19 }
 0x8e1   : > { %1108 = vrot.lane.b32.xlu2 %v4190_v44, %s3967_s12 }
 0x8e5   : > { %1083 = vrot.lane.b32.xlu0 %v4163_v17, %s3969_s17 }
 0x8e8   : > { %1861 = vrot.lane.b32.xlu1 %v4262_v50, %s3970_s19 }
 0x8e9   : > { %1178 = vrot.lane.b32.xlu2 %v4202_v62, %s3967_s12 }
 0x8ea   : > { %v1062_v10 = vpop.xlane.xlu0 %1061 }
 0x8eb   : > { %v1066_v27 = vsub.f32 %v4386_v18, %v1062_v10 }
 0x8ed   : > { %v1068_v21 = vmul.f32 1.442695, %v1066_v27 }
 0x8f0   : > { %2064 = vrot.lane.b32.xlu1 %v4357_v19, %s3971_s20 }
 0x8f2   : > { %v1065_v38 = vpop.xlane.xlu1 %1064 }
 0x8f3   : > { %v1067_v23 = vsub.f32 %v4390_v29, %v1065_v38 }
 0x8f5   : > { %v1070_v33 = vmul.f32 1.442695, %v1067_v23 }
 0x90a   : > { %v1014_v40 = vpop.permute.xlu1 %1013 }
 0x90b   : > { %1026 = vmatpush.bf16.msra.mxu2 %v1014_v40 }
 0x912   : > { %v1107_v20 = vpop.permute.xlu1 %1106 }
 0x91a   : > { %v4427_v49 = vpop.permute.xlu1 %1176 }
 0x922   : > { %v1224_v60 = vpop.permute.xlu1 %1223 }
 0x92a   : > { %v1316_v1 = vpop.permute.xlu1 %1315 }
 0x92b   : > { %v1321_v5 = vsel %vm469_vm1, %v1316_v1, 0 }
 0x93c   : > { %v1004_v45 = vpop.xlane.xlu2 %1003 }
 0x93d   : > { %3564 = vrcp.f32 %v1004_v45 }
 0x943   : > { %v3565_v55 = vpop.eup %3564 }
 0x944   : > { %v1109_v46 = vpop.permute.xlu2 %1108  ;;  %v1007_v47 = vpop.xlane.xlu0 %1006  ;;  %v1010_v58 = vmul.f32 %v3565_v55, %v3561_v34 }
 0x945   : > { %v1114_v48 = vsel %vm469_vm1, %v1109_v46, 0  ;;  %3566 = vrcp.f32 %v1007_v47 }
 0x946   : > { %1123 = vmatpush.bf16.xpose.msrb.mxu2 %v1114_v48  ;;  %3568 = vpow2.f32 %v1068_v21 }
 0x947   : > { %3570 = vpow2.f32 %v1070_v33 }
 0x94b   : > { %v3567_v56 = vpop.eup %3566 }
 0x94c   : > { %v1011_v24 = vmul.f32 %v3567_v56, %v3563_v36  ;;  %v1179_v31 = vpop.permute.xlu2 %1178  ;;  %v4449_v9 = vpop.eup %3568 }
 0x94d   : > { %v1184_v63 = vsel %vm469_vm1, %v1179_v31, 0  ;;  %v1072_v18 = vsel %vm490_vm2, %v4449_v9, 0.0  ;;  %v3571_v34 = vpop.eup %3570 }
 0x94e   : > { %v1012_v59 = vpack.c.bf16 %v1011_v24, %v1010_v58  ;;  %v1075_v35 = vsel %vm490_vm2, %v3571_v34, 0.0 }
 0x950   : > { %3201 = vmatmul.msk.bf16.vlgmr.msra.gmra.mxu2 %vm490_vm2, %v1012_v59 }
 0x951   : > { %1236 = vmatpush.bf16.msra.mxu2 %v1224_v60 }
 0x957   : > { %v1084_v61 = vpop.permute.xlu0 %1083 }
 0x958   : > { %1096 = vmatpush.bf16.msra.mxu3 %v1084_v61 }
 0x95c   : > { %1193 = vmatpush.bf16.xpose.msrb.mxu3 %v1184_v63 }
 0x960   : > { %3204 = vmatmul.msk.bf16.vlgmr.msrb.gmra.mxu2 %vm469_vm1, %v1107_v20 }
 0x961   : > { %1330 = vmatpush.bf16.xpose.msrb.mxu2 %v1321_v5 }
 0x9d3   : > { %v4433_v57 = vpop.f32.mrf.mxu2 }
 0x9d4   : > { %5535 = vst [vmem:[#allocation30_spill] sm:$0xff] %v4433_v57 }
 0x9db   : > { %v4435_v6 = vpop.f32.mrf.mxu2 }
 0x9dc   : > { %5536 = vst [vmem:[#allocation31_spill] sm:$0xff] %v4435_v6 }
 0x9e3   : > { %v1125_v12 = vpop.f32.mrf.mxu2 }
 0x9e4   : > { %v1126_v16 = vadd.f32 %v1125_v12, %v4437_v7 }
 0x9e6   : > { %v1130_v4 = vsel %vm490_vm2, %v1126_v16, -inf }
 0x9e7   : > { %1131 = vmax.xlane.f32.xlu0 %v1130_v4 }
 0x9eb   : > { %v1127_v8 = vpop.f32.mrf.mxu2 }
 0x9ec   : > { %v4445_v22 = vadd.f32 %v1127_v8, %v4442_v25 }
 0x9ee   : > { %v1133_v30 = vsel %vm490_vm2, %v4445_v22, -inf }
 0x9ef   : > { %1134 = vmax.xlane.f32.xlu2 %v1133_v30 }
 0x9f7   : > { %1073 = vadd.xlane.f32.xlu2 %v1072_v18  ;;  %v1381_v18 = vpop.permute.xlu1 %1380 }
 0x9fb   : > { %1246 = vrot.lane.b32.xlu0 %v4264_v51, %s3968_s13 }
 0x9ff   : > { %v4554_v23 = vpop.permute.xlu1 %1447 }
 0xa03   : > { %1313 = vrot.lane.b32.xlu0 %v4262_v50, %s3968_s13  ;;  %s5429_s13 = scalar_lea.vmem [#allocation10], %s3165_s7  ;;  %s3279_s7 = sshll.u32 %s4036_s25, 7 }
 0xa04   : > { %s3036_s25 = scalar_lea.sflag [#allocation4], %s4130_s16 }
 0xa0f   : > { %1153 = vrot.lane.b32.xlu2 %v4190_v44, %s3969_s17 }
 0xa17   : > { %1248 = vrot.lane.b32.xlu2 %v4264_v51, %s3967_s12 }
 0xa1f   : > { %1293 = vrot.lane.b32.xlu2 %v4264_v51, %s3969_s17 }
 0xa27   : > { %1360 = vrot.lane.b32.xlu2 %v4262_v50, %s3969_s17 }
 0xa2d   : > { %1076 = vadd.xlane.f32.xlu0 %v1075_v35 }
 0xa2f   : > { %1449 = vrot.lane.b32.xlu2 %v4305_v37, %s3967_s12 }
 0xa37   : > { %1656 = vrot.lane.b32.xlu2 %v4190_v44, %s3971_s20 }
 0xa3f   : > { %1796 = vrot.lane.b32.xlu2 %v4264_v51, %s3971_s20 }
 0xa41   : > { %1382 = vrot.lane.b32.xlu0 %v4317_v13, %s3967_s12 }
 0xa47   : > { %1794 = vrot.lane.b32.xlu2 %v4264_v51, %s3970_s19 }
 0xa49   : > { %1427 = vrot.lane.b32.xlu0 %v4317_v13, %s3969_s17 }
 0xa4f   : > { %1930 = vrot.lane.b32.xlu2 %v4317_v13, %s3971_s20 }
 0xa51   : > { %1586 = vrot.lane.b32.xlu0 %v4163_v17, %s3971_s20 }
 0xa57   : > { %1997 = vrot.lane.b32.xlu2 %v4305_v37, %s3971_s20 }
 0xa59   : > { %1584 = vrot.lane.b32.xlu0 %v4163_v17, %s3970_s19 }
 0xa5a   : > { %v1132_v29 = vpop.xlane.xlu0 %1131 }
 0xa5b   : > { %v1136_v28 = vsub.f32 %v1126_v16, %v1132_v29 }
 0xa5d   : > { %v1138_v36 = vmul.f32 1.442695, %v1136_v28 }
 0xa5f   : > { %3572 = vpow2.f32 %v1138_v36  ;;  %2062 = vrot.lane.b32.xlu2 %v4357_v19, %s3970_s19 }
 0xa61   : > { %1726 = vrot.lane.b32.xlu0 %v4202_v62, %s3971_s20 }
 0xa62   : > { %v1135_v32 = vpop.xlane.xlu2 %1134 }
 0xa63   : > { %v1137_v5 = vsub.f32 %v4445_v22, %v1135_v32 }
 0xa65   : > { %v4491_v38 = vpop.eup %3572  ;;  %v1140_v12 = vmul.f32 1.442695, %v1137_v5 }
 0xa66   : > { %v1142_v40 = vsel %vm490_vm2, %v4491_v38, 0.0 }
 0xa67   : > { %2204 = vrot.lane.b32.xlu2 %v4190_v44, %s3972_s11  ;;  %1143 = vadd.xlane.f32.xlu1 %v1142_v40 }
 0xa69   : > { %1724 = vrot.lane.b32.xlu0 %v4202_v62, %s3970_s19 }
 0xa6a   : > { %v1074_v10 = vpop.xlane.xlu2 %1073 }
 0xa6b   : > { %3574 = vrcp.f32 %v1074_v10 }
 0xa6d   : > { %v4516_v55 = vpop.permute.xlu0 %1246 }
 0xa6f   : > { %2202 = vrot.lane.b32.xlu2 %v4190_v44, %s3973_s29 }
 0xa71   : > { %1863 = vrot.lane.b32.xlu0 %v4262_v50, %s3971_s20  ;;  %v3575_v24 = vpop.eup %3574  ;;  %s3048_s20 = scalar_lea.hbm %s5504_s6, %s3279_s7 }
 0xa72   : > { %v1154_v20 = vpop.permute.xlu2 %1153  ;;  %v1080_v60 = vmul.f32 %v3575_v24, %v4449_v9 }
 0xa73   : > { %1166 = vmatpush.bf16.msra.mxu1 %v1154_v20 }
 0xa75   : > { %v4524_v56 = vpop.permute.xlu0 %1313 }
 0xa77   : > { %2344 = vrot.lane.b32.xlu2 %v4264_v51, %s3972_s11 }
 0xa79   : > { %1928 = vrot.lane.b32.xlu0 %v4317_v13, %s3970_s19 }
 0xa7a   : > { %v1249_v45 = vpop.permute.xlu2 %1248 }
 0xa7b   : > { %v1254_v46 = vsel %vm469_vm1, %v1249_v45, 0 }
 0xa7c   : > { %1263 = vmatpush.bf16.xpose.msrb.mxu1 %v1254_v46  ;;  %v4572_v46 = vld [vmem:[#allocation8 + $0x90] sm:$0xff] }
 0xa7f   : > { %2342 = vrot.lane.b32.xlu2 %v4264_v51, %s3973_s29 }
 0xa81   : > { %1995 = vrot.lane.b32.xlu0 %v4305_v37, %s3970_s19 }
 0xa82   : > { %v1294_v47 = vpop.permute.xlu2 %1293 }
 0xa87   : > { %2478 = vrot.lane.b32.xlu2 %v4317_v13, %s3972_s11 }
 0xa89   : > { %2134 = vrot.lane.b32.xlu0 %v4163_v17, %s3972_s11 }
 0xa8a   : > { %v1361_v48 = vpop.permute.xlu2 %1360 }
 0xa8b   : > { %1373 = vmatpush.bf16.msrb.mxu0 %v1361_v48 }
 0xa8f   : > { %2545 = vrot.lane.b32.xlu2 %v4305_v37, %s3972_s11 }
 0xa91   : > { %2132 = vrot.lane.b32.xlu0 %v4163_v17, %s3973_s29 }
 0xa97   : > { %2543 = vrot.lane.b32.xlu2 %v4305_v37, %s3973_s29 }
 0xa99   : > { %2274 = vrot.lane.b32.xlu0 %v4202_v62, %s3972_s11 }
 0xaa0   : > { %v1077_v58 = vpop.xlane.xlu0 %1076 }
 0xaa1   : > { %3576 = vrcp.f32 %v1077_v58  ;;  %2272 = vrot.lane.b32.xlu0 %v4202_v62, %s3973_s29 }
 0xaa2   : > { %3578 = vpow2.f32 %v1140_v12 }
 0xaa7   : > { %v3577_v59 = vpop.eup %3576 }
 0xaa8   : > { %v1081_v31 = vmul.f32 %v3577_v59, %v3571_v34  ;;  %v3579_v27 = vpop.eup %3578  ;;  %v1517_v34 = vpop.permute.xlu1 %1516  ;;  %v4576_v59 = vld [vmem:[#allocation8 + $0x98] sm:$0xff] }
 0xaa9   : > { %2411 = vrot.lane.b32.xlu0 %v4262_v50, %s3972_s11  ;;  %v1145_v21 = vsel %vm490_vm2, %v3579_v27, 0.0 }
 0xaaa   : > { %v1082_v61 = vpack.c.bf16 %v1081_v31, %v1080_v60 }
 0xaac   : > { %3203 = vmatmul.msk.bf16.vlgmr.msra.gmra.mxu3 %vm490_vm2, %v1082_v61 }
 0xaad   : > { %1306 = vmatpush.bf16.msra.mxu3 %v1294_v47 }
 0xab0   : > { %v1515_v29 = vpop.permute.xlu1 %1514 }
 0xab1   : > { %2409 = vrot.lane.b32.xlu0 %v4262_v50, %s3973_s29 }
 0xab3   : > { %v1383_v63 = vpop.permute.xlu0 %1382 }
 0xab4   : > { %v1388_v57 = vsel %vm469_vm1, %v1383_v63, 0 }
 0xab8   : > { %v1655_v36 = vpop.permute.xlu1 %1654 }
 0xabb   : > { %v1428_v1 = vpop.permute.xlu0 %1427 }
 0xabc   : > { %3206 = vmatmul.msk.bf16.vlgmr.msrb.gmra.mxu3 %vm469_vm1, %v4427_v49 }
 0xabd   : > { %1440 = vmatpush.bf16.msrb.mxu3 %v1428_v1 }
 0xac0   : > { %v4568_v20 = vpop.permute.xlu1 %1861 }
 0xac3   : > { %v4539_v16 = vpop.permute.xlu0 %1586 }
 0xac8   : > { %v2065_v58 = vpop.permute.xlu1 %2064 }
 0xacb   : > { %v4541_v4 = vpop.permute.xlu0 %1584 }
 0xad3   : > { %v4544_v8 = vpop.permute.xlu0 %1726 }
 0xada   : > { %v1144_v1 = vpop.xlane.xlu1 %1143 }
 0xadb   : > { %1146 = vadd.xlane.f32.xlu0 %v1145_v21  ;;  %v4546_v30 = vpop.permute.xlu0 %1724  ;;  %3580 = vrcp.f32 %v1144_v1  ;;  %v1522_v1 = vsel %vm469_vm1, %v1517_v34, 0 }
 0xae1   : > { %v3581_v21 = vpop.eup %3580 }
 0xae3   : > { %v4548_v9 = vpop.permute.xlu0 %1863 }
 0xaeb   : > { %v4550_v49 = vpop.permute.xlu0 %1928 }
 0xaf3   : > { %v4552_v22 = vpop.permute.xlu0 %1995 }
 0xafb   : > { %v4556_v33 = vpop.permute.xlu0 %2134 }
 0xb03   : > { %v4558_v35 = vpop.permute.xlu0 %2132 }
 0xb0b   : > { %v4560_v28 = vpop.permute.xlu0 %2274 }
 0xb13   : > { %v4564_v40 = vpop.permute.xlu0 %2272 }
 0xb1b   : > { %v4570_v45 = vpop.permute.xlu0 %2411 }
 0xb23   : > { %v4578_v60 = vpop.permute.xlu0 %2409 }
 0xb2f   : > { %v4562_v32 = vpop.f32.mrf.mxu3 }
 0xb30   : > { %5537 = vst [vmem:[#allocation32_spill] sm:$0xff] %v4562_v32 }
 0xb37   : > { %v4566_v10 = vpop.f32.mrf.mxu3 }
 0xb38   : > { %5538 = vst [vmem:[#allocation33_spill] sm:$0xff] %v4566_v10 }
 0xb3f   : > { %v1195_v47 = vpop.f32.mrf.mxu3 }
 0xb40   : > { %v1196_v48 = vadd.f32 %v1195_v47, %v4572_v46 }
 0xb42   : > { %v1200_v24 = vsel %vm490_vm2, %v1196_v48, -inf }
 0xb43   : > { %1201 = vmax.xlane.f32.xlu1 %v1200_v24  ;;  %v1150_v24 = vmul.f32 %v3581_v21, %v4491_v38 }
 0xb47   : > { %v1197_v31 = vpop.f32.mrf.mxu3 }
 0xb48   : > { %v4581_v61 = vadd.f32 %v1197_v31, %v4576_v59  ;;  %v4592_v31 = vpop.permute.xlu2 %1449 }
 0xb4a   : > { %v1203_v5 = vsel %vm490_vm2, %v4581_v61, -inf }
 0xb4b   : > { %1204 = vmax.xlane.f32.xlu0 %v1203_v5 }
 0xb4e   : > { %v1147_v12 = vpop.xlane.xlu0 %1146 }
 0xb4f   : > { %3582 = vrcp.f32 %v1147_v12  ;;  %v2070_v12 = vsel %vm469_vm1, %v2065_v58, 0 }
 0xb55   : > { %v3583_v47 = vpop.eup %3582 }
 0xb56   : > { %v1151_v53 = vmul.f32 %v3583_v47, %v3579_v27 }
 0xb58   : > { %v1152_v54 = vpack.c.bf16 %v1151_v53, %v1150_v24  ;;  %v1657_v53 = vpop.permute.xlu2 %1656 }
 0xb59   : > { %v1662_v38 = vsel %vm469_vm1, %v1657_v53, 0 }
 0xb5a   : > { %3205 = vmatmul.msk.bf16.vlgmr.msra.gmra.mxu1 %vm490_vm2, %v1152_v54 }
 0xb5b   : > { %1397 = vmatpush.bf16.xpose.msra.mxu1 %v1388_v57 }
 0xb5c   : > { %2476 = vrot.lane.b32.xlu1 %v4317_v13, %s3973_s29 }
 0xb5f   : > { %1494 = vrot.lane.b32.xlu0 %v4305_v37, %s3969_s17 }
 0xb60   : > { %v1797_v54 = vpop.permute.xlu2 %1796 }
 0xb61   : > { %v1802_v63 = vsel %vm469_vm1, %v1797_v54, 0 }
 0xb68   : > { %v1795_v57 = vpop.permute.xlu2 %1794 }
 0xb6a   : > { %3208 = vmatmul.msk.bf16.vlgmr.msrb.gmra.mxu1 %vm469_vm1, %v4516_v55 }
 0xb6b   : > { %1531 = vmatpush.bf16.xpose.msrb.mxu1 %v1522_v1 }
 0xb70   : > { %v1931_v27 = vpop.permute.xlu2 %1930 }
 0xb71   : > { %v1936_v34 = vsel %vm469_vm1, %v1931_v27, 0 }
 0xb78   : > { %v4603_v55 = vpop.permute.xlu2 %1997 }
 0xb7a   : > { %3212 = vmatmul.msk.bf16.vlgmr.msra.gmra.mxu1 %vm469_vm1, %v1381_v18 }
 0xb7b   : > { %1671 = vmatpush.bf16.xpose.msra.mxu1 %v1662_v38 }
 0xb80   : > { %v2063_v5 = vpop.permute.xlu2 %2062 }
 0xb88   : > { %v2205_v18 = vpop.permute.xlu2 %2204 }
 0xb89   : > { %v2210_v1 = vsel %vm469_vm1, %v2205_v18, 0 }
 0xb8a   : > { %3216 = vmatmul.msk.bf16.vlgmr.msrb.gmra.mxu1 %vm469_vm1, %v1515_v29 }
 0xb8b   : > { %1811 = vmatpush.bf16.xpose.msrb.mxu1 %v1802_v63 }
 0xb90   : > { %v2203_v24 = vpop.permute.xlu2 %2202 }
 0xb98   : > { %v2345_v53 = vpop.permute.xlu2 %2344 }
 0xb99   : > { %v2350_v54 = vsel %vm469_vm1, %v2345_v53, 0 }
 0xb9a   : > { %3220 = vmatmul.msk.bf16.vlgmr.msra.gmra.mxu1 %vm469_vm1, %v1655_v36 }
 0xb9b   : > { %1945 = vmatpush.bf16.xpose.msra.mxu1 %v1936_v34 }
 0xbaa   : > { %3224 = vmatmul.msk.bf16.vlgmr.msrb.gmra.mxu1 %vm469_vm1, %v1795_v57 }
 0xbab   : > { %2079 = vmatpush.bf16.xpose.msrb.mxu1 %v2070_v12  ;;  %v1244_v12 = vld [vmem:[#allocation8 + $0xd0] sm:$0xff] }
 0xbb6   : > { %v1202_v21 = vpop.xlane.xlu1 %1201 }
 0xbb7   : > { %v1206_v47 = vsub.f32 %v1196_v48, %v1202_v21  ;;  %v2343_v48 = vpop.permute.xlu2 %2342 }
 0xbb9   : > { %v1208_v29 = vmul.f32 1.442695, %v1206_v47 }
 0xbba   : > { %3228 = vmatmul.msk.bf16.vlgmr.msra.gmra.mxu1 %vm469_vm1, %v4550_v49 }
 0xbbb   : > { %3584 = vpow2.f32 %v1208_v29  ;;  %2219 = vmatpush.bf16.xpose.msra.mxu1 %v2210_v1 }
 0xbbe   : > { %v1205_v38 = vpop.xlane.xlu0 %1204 }
 0xbbf   : > { %v2479_v63 = vpop.permute.xlu2 %2478 }
 0xbc0   : > { %v2484_v27 = vsel %vm469_vm1, %v2479_v63, 0 }
 0xbc1   : > { %v4610_v36 = vpop.eup %3584 }
 0xbc2   : > { %v1212_v58 = vsel %vm490_vm2, %v4610_v36, 0.0 }
 0xbc3   : > { %1213 = vadd.xlane.f32.xlu1 %v1212_v58 }
 0xbca   : > { %3232 = vmatmul.msk.bf16.vlgmr.msrb.gmra.mxu1 %vm469_vm1, %v2063_v5 }
 0xbcb   : > { %2359 = vmatpush.bf16.xpose.msrb.mxu1 %v2350_v54 }
 0xbce   : > { %v2477_v63 = vpop.permute.xlu1 %2476 }
 0xbd1   : > { %v1495_v57 = vpop.permute.xlu0 %1494 }
 0xbd2   : > { %1507 = vmatpush.bf16.msra.mxu0 %v1495_v57  ;;  %v1207_v57 = vsub.f32 %v4581_v61, %v1205_v38 }
 0xbd7   : > { %v4616_v49 = vpop.f32.mrf.mxu1 }
 0xbd8   : > { %5539 = vst [vmem:[#allocation34_spill] sm:$0xff] %v4616_v49 }
 0xbda   : > { %3236 = vmatmul.msk.bf16.vlgmr.msra.gmra.mxu1 %vm469_vm1, %v2203_v24  ;;  %v1245_v24 = vld [vmem:[#allocation8 + $0xd8] sm:$0xff] }
 0xbdb   : > { %2493 = vmatpush.bf16.xpose.msra.mxu1 %v2484_v27  ;;  %v1210_v27 = vmul.f32 1.442695, %v1207_v57 }
 0xbdc   : > { %2610 = vrot.lane.b32.xlu1 %v4357_v19, %s3973_s29  ;;  %s3051_s29 = sshll.u32 %s3048_s20, 4  ;;  %s3052_s29 = int_to_ptr.hbm [resolvable:$true] %s3051_s29 }
 0xbdd   : > { %3586 = vpow2.f32 %v1210_v27 }
 0xbdf   : > { %v4622_v34 = vpop.f32.mrf.mxu1 }
 0xbe0   : > { %5540 = vst [vmem:[#allocation35_spill] sm:$0xff] %v4622_v34 }
 0xbe7   : > { %v1265_v18 = vpop.f32.mrf.mxu1 }
 0xbe8   : > { %v4626_v21 = vadd.f32 %v1265_v18, %v1244_v12 }
 0xbea   : > { %3240 = vmatmul.msk.bf16.vlgmr.msrb.gmra.mxu1 %vm469_vm1, %v2343_v48  ;;  %v1270_v47 = vsel %vm490_vm2, %v4626_v21, -inf }
 0xbeb   : > { %1271 = vmax.xlane.f32.xlu2 %v1270_v47 }
 0xbef   : > { %v1267_v29 = vpop.f32.mrf.mxu1 }
 0xbf0   : > { %v4631_v1 = vadd.f32 %v1267_v29, %v1245_v24 }
 0xbf2   : > { %v1273_v58 = vsel %vm490_vm2, %v4631_v1, -inf }
 0xbf3   : > { %1274 = vmax.xlane.f32.xlu0 %v1273_v58 }
 0xbf7   : > { %v1399_v53 = vpop.f32.mrf.mxu1 }
 0xbf8   : > { %v4636_v54 = vadd.f32 %v1399_v53, %v4437_v7  ;;  %v4647_v7 = vpop.eup %3586 }
 0xbf9   : > { %v1215_v38 = vsel %vm490_vm2, %v4647_v7, 0.0 }
 0xbfa   : > { %3244 = vmatmul.msk.bf16.vlgmr.msra.gmra.mxu1 %vm469_vm1, %v2477_v63  ;;  %v1404_v48 = vsel %vm490_vm2, %v4636_v54, -inf }
 0xbfb   : > { %1405 = vmax.xlane.f32.xlu2 %v1404_v48 }
 0xbff   : > { %v1401_v18 = vpop.f32.mrf.mxu1 }
 0xc00   : > { %v4643_v47 = vadd.f32 %v1401_v18, %v4442_v25  ;;  %v1652_v25 = vld [vmem:[#allocation8 + $0x60] sm:$0xff] }
 0xc02   : > { %v1407_v29 = vsel %vm490_vm2, %v4643_v47, -inf }
 0xc03   : > { %1408 = vmax.xlane.f32.xlu0 %v1407_v29 }
 0xc07   : > { %v1533_v61 = vpop.f32.mrf.mxu1 }
 0xc08   : > { %v4651_v58 = vadd.f32 %v1533_v61, %v1244_v12  ;;  %v1793_v12 = vld [vmem:[#allocation8 + $0xe8] sm:$0xff] }
 0xc0a   : > { %v1538_v57 = vsel %vm490_vm2, %v4651_v58, -inf }
 0xc0b   : > { %1216 = vadd.xlane.f32.xlu0 %v1215_v38 }
 0xc0f   : > { %v1535_v53 = vpop.f32.mrf.mxu1 }
 0xc10   : > { %v4667_v5 = vadd.f32 %v1535_v53, %v1245_v24 }
 0xc12   : > { %v1541_v42 = vsel %vm490_vm2, %v4667_v5, -inf }
 0xc13   : > { %2612 = vrot.lane.b32.xlu2 %v4357_v19, %s3972_s11  ;;  %1539 = vmax.xlane.f32.xlu0 %v1538_v57  ;;  %s3049_s11 = sshll.u32 %s5429_s13, 4  ;;  %s3050_s11 = int_to_ptr.vmem [resolvable:$true] %s3049_s11 }
 0xc17   : > { %v1673_v63 = vpop.f32.mrf.mxu1 }
 0xc18   : > { %v4657_v48 = vadd.f32 %v1673_v63, %v1652_v25 }
 0xc1a   : > { %v1678_v27 = vsel %vm490_vm2, %v4657_v48, -inf }
 0xc1b   : > { %1679 = vmax.xlane.f32.xlu1 %v1678_v27 }
 0xc1f   : > { %v1675_v18 = vpop.f32.mrf.mxu1 }
 0xc27   : > { %v1813_v29 = vpop.f32.mrf.mxu1  ;;  %1561 = vrot.lane.b32.xlu0 %v4357_v19, %s3969_s17 }
 0xc2f   : > { %v1815_v61 = vpop.f32.mrf.mxu1 }
 0xc30   : > { %v4663_v38 = vadd.f32 %v1815_v61, %v1793_v12  ;;  %v4675_v61 = vadd.f32 %v1675_v18, %v1653_v43 }
 0xc32   : > { %v1821_v57 = vsel %vm490_vm2, %v4663_v38, -inf }
 0xc33   : > { %1822 = vmax.xlane.f32.xlu1 %v1821_v57  ;;  %v1681_v57 = vsel %vm490_vm2, %v4675_v61, -inf }
 0xc37   : > { %v1947_v63 = vpop.f32.mrf.mxu1 }
 0xc38   : > { %v4669_v6 = vadd.f32 %v1947_v63, %v1652_v25  ;;  %v1792_v25 = vld [vmem:[#allocation8 + $0xe0] sm:$0xff] }
 0xc3a   : > { %v1952_v27 = vsel %vm490_vm2, %v4669_v6, -inf }
 0xc3b   : > { %1953 = vmax.xlane.f32.xlu1 %v1952_v27  ;;  %v4683_v27 = vadd.f32 %v1813_v29, %v1792_v25  ;;  %v4696_v29 = vld [vmem:[#allocation8 + $0x70] sm:$0xff] }
 0xc3c   : > { %1542 = vmax.xlane.f32.xlu2 %v1541_v42 }
 0xc3d   : > { %v1818_v18 = vsel %vm490_vm2, %v4683_v27, -inf }
 0xc3f   : > { %v1949_v14 = vpop.f32.mrf.mxu1 }
 0xc40   : > { %v4679_v24 = vadd.f32 %v1949_v14, %v1653_v43  ;;  %v4691_v43 = vpop.permute.xlu2 %2545 }
 0xc42   : > { %v1955_v63 = vsel %vm490_vm2, %v4679_v24, -inf }
 0xc44   : > { %1682 = vmax.xlane.f32.xlu2 %v1681_v57 }
 0xc47   : > { %v2081_v53 = vpop.f32.mrf.mxu1 }
 0xc48   : > { %v4685_v26 = vadd.f32 %v2081_v53, %v1792_v25 }
 0xc4a   : > { %v2086_v57 = vsel %vm490_vm2, %v4685_v26, -inf }
 0xc4c   : > { %1956 = vmax.xlane.f32.xlu2 %v1955_v63 }
 0xc4f   : > { %v2083_v42 = vpop.f32.mrf.mxu1 }
 0xc50   : > { %v4693_v14 = vadd.f32 %v2083_v42, %v1793_v12  ;;  %v4706_v12 = vpop.permute.xlu2 %2543 }
 0xc51   : > { %1819 = vmax.xlane.f32.xlu0 %v1818_v18 }
 0xc52   : > { %v2089_v63 = vsel %vm490_vm2, %v4693_v14, -inf }
 0xc54   : > { %1631 = vrot.lane.b32.xlu1 %v4163_v17, %s3974_s9  ;;  %2087 = vmax.xlane.f32.xlu2 %v2086_v57 }
 0xc57   : > { %v2221_v53 = vpop.f32.mrf.mxu1 }
 0xc58   : > { %v4699_v25 = vadd.f32 %v2221_v53, %v4696_v29 }
 0xc59   : > { %2090 = vmax.xlane.f32.xlu0 %v2089_v63  ;;  %v1214_v63 = vpop.xlane.xlu1 %1213 }
 0xc5a   : > { %v2226_v18 = vsel %vm490_vm2, %v4699_v25, -inf  ;;  %3588 = vrcp.f32 %v1214_v63 }
 0xc5c   : > { %1701 = vrot.lane.b32.xlu1 %v4190_v44, %s3974_s9  ;;  %2227 = vmax.xlane.f32.xlu2 %v2226_v18 }
 0xc5e   : > { %v1272_v42 = vpop.xlane.xlu2 %1271 }
 0xc61   : > { %v2611_v52 = vpop.permute.xlu1 %2610 }
 0xc64   : > { %1975 = vrot.lane.b32.xlu1 %v4317_v13, %s3974_s9 }
 0xc66   : > { %v1275_v57 = vpop.xlane.xlu0 %1274 }
 0xc6c   : > { %2042 = vrot.lane.b32.xlu1 %v4305_v37, %s3974_s9 }
 0xc6d   : > { %1841 = vrot.lane.b32.xlu0 %v4264_v51, %s3974_s9 }
 0xc6e   : > { %v1406_v53 = vpop.xlane.xlu2 %1405 }
 0xc74   : > { %2179 = vrot.lane.b32.xlu1 %v4163_v17, %s3975_s18  ;;  %1908 = vrot.lane.b32.xlu2 %v4262_v50, %s3974_s9  ;;  %v3589_v17 = vpop.eup %3588 }
 0xc75   : > { %1771 = vrot.lane.b32.xlu0 %v4202_v62, %s3974_s9  ;;  %v1220_v3 = vmul.f32 %v3589_v17, %v4610_v36  ;;  %v1732_v17 = vsel %vm469_vm1, %v4544_v8, 0 }
 0xc76   : > { %v2613_v18 = vpop.permute.xlu2 %2612  ;;  %v4715_v11 = vpop.xlane.xlu0 %1408 }
 0xc77   : > { %v2618_v15 = vsel %vm469_vm1, %v2613_v18, 0  ;;  %v2223_v18 = vpop.f32.mrf.mxu1  ;;  %v1411_v8 = vsub.f32 %v4643_v47, %v4715_v11 }
 0xc78   : > { %2627 = vmatpush.bf16.xpose.msrb.mxu1 %v2618_v15  ;;  %v1455_v15 = vsel %vm469_vm1, %v4592_v31, 0 }
 0xc7c   : > { %2249 = vrot.lane.b32.xlu2 %v4190_v44, %s3975_s18  ;;  %v1276_v44 = vsub.f32 %v4626_v21, %v1272_v42  ;;  %v2201_v21 = vld [vmem:[#allocation8 + $0x78] sm:$0xff] }
 0xc7d   : > { %2109 = vrot.lane.b32.xlu0 %v4357_v19, %s3974_s9  ;;  %v5008_v19 = vld [vmem:[#allocation8 + $0xb8] sm:$0xff]  ;;  %s3896_s9 = sshra.s32 %s3052_s29, 4  ;;  %s3897_s9 = int_to_ptr.hbm [resolvable:$true] %s3896_s9 }
 0xc7e   : > { %v1217_v0 = vpop.xlane.xlu0 %1216  ;;  %v1278_v63 = vmul.f32 1.442695, %v1276_v44  ;;  %p3903_p11 = scmp.lt.s32.totalorder %s3897_s9, %s5504_s6 }
 0xc7f   : > { %3590 = vrcp.f32 %v1217_v0  ;;  %3248 = vmatmul.msk.bf16.vlgmr.msrb.gmra.mxu1 %vm469_vm1, %v2611_v52  ;;  %v1410_v52 = vsub.f32 %v4636_v54, %v1406_v53  ;;  %v2361_v31 = vpop.f32.mrf.mxu1 }
 0xc80   : > { %3592 = vpow2.f32 %v1278_v63  ;;  %v4764_v63 = vld [vmem:[#allocation8 + $0xf8] sm:$0xff] }
 0xc81   : > { %v1412_v0 = vmul.f32 1.442695, %v1410_v52 }
 0xc83   : > { %3594 = vpow2.f32 %v1412_v0 }
 0xc85   : > { %v3591_v2 = vpop.eup %3590 }
 0xc86   : > { %v1221_v39 = vmul.f32 %v3591_v2, %v4647_v7  ;;  %v1540_v49 = vpop.xlane.xlu0 %1539  ;;  %v4729_v34 = vpop.eup %3592 }
 0xc87   : > { %v1544_v2 = vsub.f32 %v4651_v58, %v1540_v49  ;;  %v1282_v36 = vsel %vm490_vm2, %v4729_v34, 0.0 }
 0xc88   : > { %v1222_v41 = vpack.c.bf16 %v1221_v39, %v1220_v3  ;;  %v1592_v39 = vsel %vm469_vm1, %v4539_v16, 0  ;;  %v4737_v3 = vld [vmem:[#allocation8 + $0xf0] sm:$0xff] }
 0xc89   : > { %v4742_v16 = vadd.f32 %v2361_v31, %v4737_v3  ;;  %v1546_v7 = vmul.f32 1.442695, %v1544_v2 }
 0xc8a   : > { %3207 = vmatmul.msk.bf16.vlgmr.msra.gmra.mxu2 %vm490_vm2, %v1222_v41  ;;  %v1277_v41 = vsub.f32 %v4631_v1, %v1275_v57  ;;  %v4746_v1 = vadd.f32 %v2223_v18, %v2201_v21 }
 0xc8b   : > { %1464 = vmatpush.bf16.xpose.msra.mxu2 %v1455_v15  ;;  %v2366_v49 = vsel %vm490_vm2, %v4742_v16, -inf  ;;  %v2363_v15 = vpop.f32.mrf.mxu1 }
 0xc8c   : > { %v1280_v54 = vmul.f32 1.442695, %v1277_v41  ;;  %v2229_v42 = vsel %vm490_vm2, %v4746_v1, -inf  ;;  %v4771_v0 = vadd.f32 %v2363_v15, %v4764_v63  ;;  %v1414_v41 = vmul.f32 1.442695, %v1411_v8 }
 0xc8e   : > { %3596 = vpow2.f32 %v1280_v54  ;;  %v1680_v54 = vpop.xlane.xlu1 %1679 }
 0xc8f   : > { %3598 = vpow2.f32 %v1546_v7 }
 0xc90   : > { %3600 = vpow2.f32 %v1414_v41 }
 0xc99   : > { %v4786_v11 = vpop.permute.xlu0 %1561 }
 0xc9a   : > { %3210 = vmatmul.msk.bf16.vlgmr.msrb.gmra.mxu2 %vm469_vm1, %v4524_v56  ;;  %v4744_v56 = vpop.eup %3594 }
 0xc9b   : > { %1601 = vmatpush.bf16.xpose.msrb.mxu2 %v1592_v39  ;;  %v1416_v58 = vsel %vm490_vm2, %v4744_v56, 0.0  ;;  %v4754_v57 = vpop.eup %3596  ;;  %v2495_v39 = vpop.f32.mrf.mxu1 }
 0xc9c   : > { %v4756_v53 = vpop.eup %3598  ;;  %v1285_v44 = vsel %vm490_vm2, %v4754_v57, 0.0  ;;  %v4778_v2 = vadd.f32 %v2495_v39, %v4696_v29 }
 0xc9d   : > { %v1550_v18 = vsel %vm490_vm2, %v4756_v53, 0.0  ;;  %v4790_v7 = vpop.eup %3600 }
 0xc9e   : > { %1283 = vadd.xlane.f32.xlu1 %v1282_v36  ;;  %v1869_v36 = vsel %vm469_vm1, %v4548_v9, 0  ;;  %v2500_v47 = vsel %vm490_vm2, %v4778_v2, -inf  ;;  %v1419_v9 = vsel %vm490_vm2, %v4790_v7, 0.0 }
 0xca5   : > { %2367 = vmax.xlane.f32.xlu2 %v2366_v49  ;;  %v1684_v49 = vsub.f32 %v4657_v48, %v1680_v54 }
 0xca6   : > { %1417 = vadd.xlane.f32.xlu1 %v1416_v58 }
 0xca7   : > { %2230 = vmax.xlane.f32.xlu0 %v2229_v42  ;;  %v2497_v42 = vpop.f32.mrf.mxu1  ;;  %v1686_v15 = vmul.f32 1.442695, %v1684_v49 }
 0xca8   : > { %v4797_v8 = vadd.f32 %v2497_v42, %v2201_v21  ;;  %v2140_v42 = vsel %vm469_vm1, %v4556_v33, 0 }
 0xcaa   : > { %3214 = vmatmul.msk.bf16.vlgmr.msra.gmra.mxu2 %vm469_vm1, %v4554_v23  ;;  %v2369_v23 = vsel %vm490_vm2, %v4771_v0, -inf  ;;  %v2503_v41 = vsel %vm490_vm2, %v4797_v8, -inf }
 0xcab   : > { %1741 = vmatpush.bf16.xpose.msra.mxu2 %v1732_v17  ;;  %v1823_v17 = vpop.xlane.xlu1 %1822 }
 0xcac   : > { %v1825_v48 = vsub.f32 %v4663_v38, %v1823_v17 }
 0xcad   : > { %1286 = vadd.xlane.f32.xlu2 %v1285_v44 }
 0xcae   : > { %1551 = vadd.xlane.f32.xlu1 %v1550_v18  ;;  %v1828_v21 = vmul.f32 1.442695, %v1825_v48 }
 0xcaf   : > { %v4768_v52 = vpop.xlane.xlu2 %1542 }
 0xcb5   : > { %2370 = vmax.xlane.f32.xlu2 %v2369_v23  ;;  %v2003_v23 = vsel %vm469_vm1, %v4603_v55, 0  ;;  %v1954_v55 = vpop.xlane.xlu1 %1953 }
 0xcb6   : > { %v1958_v38 = vsub.f32 %v4669_v6, %v1954_v55 }
 0xcb7   : > { %v4780_v31 = vpop.xlane.xlu2 %1682 }
 0xcba   : > { %3218 = vmatmul.msk.bf16.vlgmr.msrb.gmra.mxu2 %vm469_vm1, %v4541_v4 }
 0xcbb   : > { %1878 = vmatpush.bf16.xpose.msrb.mxu2 %v1869_v36 }
 0xcbd   : > { %2501 = vmax.xlane.f32.xlu2 %v2500_v47 }
 0xcbf   : > { %v1957_v29 = vpop.xlane.xlu2 %1956 }
 0xcc0   : > { %v1959_v44 = vsub.f32 %v4679_v24, %v1957_v29 }
 0xcc2   : > { %v1962_v39 = vmul.f32 1.442695, %v1959_v44 }
 0xcc4   : > { %v1820_v58 = vpop.xlane.xlu0 %1819 }
 0xcc5   : > { %v1824_v4 = vsub.f32 %v4683_v27, %v1820_v58  ;;  %1420 = vadd.xlane.f32.xlu2 %v1419_v9  ;;  %v1960_v58 = vmul.f32 1.442695, %v1958_v38 }
 0xcc6   : > { %v4840_v44 = vpop.permute.xlu1 %1631 }
 0xcc7   : > { %v1826_v18 = vmul.f32 1.442695, %v1824_v4  ;;  %v2088_v27 = vpop.xlane.xlu2 %2087 }
 0xcc8   : > { %v2092_v36 = vsub.f32 %v4685_v26, %v2088_v27 }
 0xcc9   : > { %3602 = vpow2.f32 %v1826_v18 }
 0xcca   : > { %3222 = vmatmul.msk.bf16.vlgmr.msra.gmra.mxu2 %vm469_vm1, %v4546_v30  ;;  %3604 = vpow2.f32 %v1686_v15  ;;  %v2094_v54 = vmul.f32 1.442695, %v2092_v36 }
 0xccb   : > { %2012 = vmatpush.bf16.xpose.msra.mxu2 %v2003_v23  ;;  %3606 = vpow2.f32 %v1962_v39  ;;  %v1545_v23 = vsub.f32 %v4667_v5, %v4768_v52  ;;  %v2417_v39 = vsel %vm469_vm1, %v4570_v45, 0 }
 0xccc   : > { %3608 = vpow2.f32 %v1828_v21  ;;  %v2091_v48 = vpop.xlane.xlu0 %2090 }
 0xccd   : > { %2504 = vmax.xlane.f32.xlu2 %v2503_v41  ;;  %3610 = vpow2.f32 %v2094_v54  ;;  %v1548_v27 = vmul.f32 1.442695, %v1545_v23  ;;  %v2551_v54 = vsel %vm469_vm1, %v4691_v43, 0 }
 0xcce   : > { %3612 = vpow2.f32 %v1960_v58  ;;  %v4842_v18 = vpop.permute.xlu1 %1701  ;;  %v2093_v58 = vsub.f32 %v4693_v14, %v2091_v48 }
 0xccf   : > { %v4806_v24 = vpop.eup %3602  ;;  %3614 = vpow2.f32 %v1548_v27 }
 0xcd0   : > { %v1830_v30 = vsel %vm490_vm2, %v4806_v24, 0.0  ;;  %v4811_v47 = vpop.eup %3604  ;;  %v2096_v43 = vmul.f32 1.442695, %v2093_v58 }
 0xcd1   : > { %1831 = vadd.xlane.f32.xlu1 %v1830_v30  ;;  %v1690_v29 = vsel %vm490_vm2, %v4811_v47, 0.0  ;;  %v4816_v49 = vpop.eup %3606 }
 0xcd2   : > { %v1967_v26 = vsel %vm490_vm2, %v4816_v49, 0.0  ;;  %v4820_v9 = vpop.eup %3608 }
 0xcd3   : > { %v1833_v6 = vsel %vm490_vm2, %v4820_v9, 0.0  ;;  %v4828_v4 = vpop.eup %3610 }
 0xcd4   : > { %v2098_v17 = vsel %vm490_vm2, %v4828_v4, 0.0  ;;  %v4832_v15 = vpop.eup %3612 }
 0xcd5   : > { %1691 = vadd.xlane.f32.xlu2 %v1690_v29  ;;  %v1964_v33 = vsel %vm490_vm2, %v4832_v15, 0.0  ;;  %v4859_v45 = vpop.eup %3614 }
 0xcd6   : > { %v4855_v36 = vpop.permute.xlu1 %1975 }
 0xcd9   : > { %1968 = vadd.xlane.f32.xlu1 %v1967_v26 }
 0xcda   : > { %3226 = vmatmul.msk.bf16.vlgmr.msrb.gmra.mxu2 %vm469_vm1, %v4568_v20  ;;  %v2280_v20 = vsel %vm469_vm1, %v4560_v28, 0  ;;  %v2228_v28 = vpop.xlane.xlu2 %2227 }
 0xcdb   : > { %2149 = vmatpush.bf16.xpose.msrb.mxu2 %v2140_v42 }
 0xcdd   : > { %1834 = vadd.xlane.f32.xlu2 %v1833_v6 }
 0xcde   : > { %v4869_v38 = vpop.permute.xlu1 %2042 }
 0xcdf   : > { %v4853_v21 = vpop.permute.xlu0 %1841  ;;  %5543 = vst [vmem:[#allocation38_spill] sm:$0xff] %v4869_v38 }
 0xce1   : > { %2099 = vadd.xlane.f32.xlu1 %v2098_v17 }
 0xce2   : > { %v4863_v52 = vpop.permute.xlu2 %1908 }
 0xce3   : > { %5541 = vst [vmem:[#allocation36_spill] sm:$0xff] %v4863_v52 }
 0xce5   : > { %1965 = vadd.xlane.f32.xlu2 %v1964_v33 }
 0xce6   : > { %v4887_v17 = vpop.permute.xlu1 %2179 }
 0xce7   : > { %v4867_v55 = vpop.permute.xlu0 %1771  ;;  %5546 = vst [vmem:[#allocation41_spill] sm:$0xff] %v4887_v17 }
 0xce8   : > { %5542 = vst [vmem:[#allocation37_spill] sm:$0xff] %v4867_v55 }
 0xcea   : > { %3230 = vmatmul.msk.bf16.vlgmr.msra.gmra.mxu2 %vm469_vm1, %v4552_v22  ;;  %v4883_v42 = vpop.permute.xlu2 %2249 }
 0xceb   : > { %2289 = vmatpush.bf16.xpose.msra.mxu2 %v2280_v20 }
 0xcef   : > { %v4885_v6 = vpop.permute.xlu0 %2109 }
 0xcfa   : > { %3234 = vmatmul.msk.bf16.vlgmr.msrb.gmra.mxu2 %vm469_vm1, %v4558_v35  ;;  %v1685_v35 = vsub.f32 %v4675_v61, %v4780_v31 }
 0xcfb   : > { %2426 = vmatpush.bf16.xpose.msrb.mxu2 %v2417_v39 }
 0xcfc   : > { %v2629_v41 = vpop.f32.mrf.mxu1  ;;  %v1688_v29 = vmul.f32 1.442695, %v1685_v35 }
 0xcfd   : > { %v4851_v22 = vadd.f32 %v2629_v41, %v4737_v3  ;;  %v1553_v3 = vsel %vm490_vm2, %v4859_v45, 0.0 }
 0xcfe   : > { %3616 = vpow2.f32 %v1688_v29 }
 0xcff   : > { %v2634_v5 = vsel %vm490_vm2, %v4851_v22, -inf  ;;  %3618 = vpow2.f32 %v2096_v43 }
 0xd00   : > { %2635 = vmax.xlane.f32.xlu0 %v2634_v5 }
 0xd04   : > { %v2631_v30 = vpop.f32.mrf.mxu1 }
 0xd05   : > { %v4876_v61 = vadd.f32 %v2631_v30, %v4764_v63  ;;  %v2232_v63 = vsub.f32 %v4699_v25, %v2228_v28 }
 0xd07   : > { %5544 = vst [vmem:[#allocation39_spill] sm:$0xff] %v4876_v61  ;;  %v2637_v26 = vsel %vm490_vm2, %v4876_v61, -inf  ;;  %v2234_v23 = vmul.f32 1.442695, %v2232_v63 }
 0xd08   : > { %1554 = vadd.xlane.f32.xlu0 %v1553_v3 }
 0xd09   : > { %3620 = vpow2.f32 %v2234_v23  ;;  %v3760_v23 = vld [vmem:[#allocation8 + $0x18] sm:$0xff] }
 0xd0a   : > { %3238 = vmatmul.msk.bf16.vlgmr.msra.gmra.mxu2 %vm469_vm1, %v4564_v40  ;;  %v4889_v40 = vpop.eup %3616 }
 0xd0b   : > { %2560 = vmatpush.bf16.xpose.msra.mxu2 %v2551_v54  ;;  %v1693_v14 = vsel %vm490_vm2, %v4889_v40, 0.0  ;;  %v4901_v41 = vpop.eup %3618 }
 0xd0c   : > { %v2101_v5 = vsel %vm490_vm2, %v4901_v41, 0.0 }
 0xd0d   : > { %v4878_v31 = vpop.f32.mrf.mxu2 }
 0xd0e   : > { %5545 = vst [vmem:[#allocation40_spill] sm:$0xff] %v4878_v31 }
 0xd0f   : > { %v4905_v3 = vpop.eup %3620 }
 0xd10   : > { %2638 = vmax.xlane.f32.xlu0 %v2637_v26  ;;  %v2238_v58 = vsel %vm490_vm2, %v4905_v3, 0.0 }
 0xd11   : > { %v1284_v39 = vpop.xlane.xlu1 %1283 }
 0xd12   : > { %3622 = vrcp.f32 %v1284_v39  ;;  %v3761_v39 = vld [vmem:[#allocation8 + $0x10] sm:$0xff] }
 0xd15   : > { %v4892_v33 = vpop.f32.mrf.mxu2 }
 0xd16   : > { %5547 = vst [vmem:[#allocation42_spill] sm:$0xff] %v4892_v33 }
 0xd18   : > { %v4896_v20 = vpop.xlane.xlu2 %2367  ;;  %1694 = vadd.xlane.f32.xlu0 %v1693_v14 }
 0xd1a   : > { %3242 = vmatmul.msk.bf16.vlgmr.msrb.gmra.mxu2 %vm469_vm1, %v4578_v60  ;;  %v2231_v48 = vpop.xlane.xlu0 %2230  ;;  %v3623_v60 = vpop.eup %3622 }
 0xd1b   : > { %v2233_v27 = vsub.f32 %v4746_v1, %v2231_v48  ;;  %v1290_v26 = vmul.f32 %v3623_v60, %v4729_v34 }
 0xd1d   : > { %v2236_v25 = vmul.f32 1.442695, %v2233_v27  ;;  %v1332_v28 = vpop.f32.mrf.mxu2 }
 0xd1e   : > { %v4921_v27 = vadd.f32 %v3761_v39, %v1332_v28  ;;  %v1418_v28 = vpop.xlane.xlu1 %1417 }
 0xd1f   : > { %3624 = vpow2.f32 %v2236_v25 }
 0xd20   : > { %v1287_v35 = vpop.xlane.xlu2 %1286  ;;  %2102 = vadd.xlane.f32.xlu0 %v2101_v5  ;;  %v1337_v25 = vsel %vm490_vm2, %v4921_v27, -inf }
 0xd21   : > { %3626 = vrcp.f32 %v1287_v35 }
 0xd22   : > { %3628 = vrcp.f32 %v1418_v28 }
 0xd25   : > { %v4907_v30 = vpop.eup %3624  ;;  %v1334_v54 = vpop.f32.mrf.mxu2 }
 0xd26   : > { %v2241_v1 = vsel %vm490_vm2, %v4907_v30, 0.0  ;;  %v4917_v48 = vadd.f32 %v3760_v23, %v1334_v54 }
 0xd27   : > { %v3627_v29 = vpop.eup %3626  ;;  %2242 = vadd.xlane.f32.xlu2 %v2241_v1 }
 0xd28   : > { %v1291_v43 = vmul.f32 %v3627_v29, %v4754_v57  ;;  %v4915_v63 = vpop.xlane.xlu2 %2370  ;;  %2239 = vadd.xlane.f32.xlu0 %v2238_v58  ;;  %v1340_v57 = vsel %vm490_vm2, %v4917_v48, -inf  ;;  %v1582_v29 = vld [vmem:[#allocation8 + $0x20] sm:$0xff]  ;;  %v3629_v58 = vpop.eup %3628 }
 0xd2a   : > { %v1292_v14 = vpack.c.bf16 %v1291_v43, %v1290_v26  ;;  %3246 = vmatmul.msk.bf16.vlgmr.msra.gmra.mxu2 %vm469_vm1, %v4706_v12 }
 0xd2c   : > { %3209 = vmatmul.msk.bf16.vlgmr.msra.gmra.mxu3 %vm490_vm2, %v1292_v14 }
 0xd2d   : > { %1574 = vmatpush.bf16.msra.mxu3 %v4786_v11  ;;  %v1466_v34 = vpop.f32.mrf.mxu2 }
 0xd2e   : > { %v4932_v12 = vadd.f32 %v1466_v34, %v4572_v46  ;;  %v1583_v34 = vld [vmem:[#allocation8 + $0x28] sm:$0xff] }
 0xd2f   : > { %1341 = vmax.xlane.f32.xlu2 %v1340_v57 }
 0xd30   : > { %v4929_v5 = vpop.xlane.xlu2 %2501  ;;  %1338 = vmax.xlane.f32.xlu0 %v1337_v25  ;;  %v1471_v11 = vsel %vm490_vm2, %v4932_v12, -inf }
 0xd35   : > { %v1468_v35 = vpop.f32.mrf.mxu2 }
 0xd36   : > { %v4935_v60 = vadd.f32 %v1468_v35, %v4576_v59  ;;  %v1424_v59 = vmul.f32 %v3629_v58, %v4744_v56  ;;  %v1722_v56 = vld [vmem:[#allocation8 + $0xa0] sm:$0xff] }
 0xd38   : > { %v1421_v54 = vpop.xlane.xlu2 %1420  ;;  %1472 = vmax.xlane.f32.xlu0 %v1471_v11  ;;  %v1474_v1 = vsel %vm490_vm2, %v4935_v60, -inf }
 0xd39   : > { %3630 = vrcp.f32 %v1421_v54  ;;  %1475 = vmax.xlane.f32.xlu2 %v1474_v1  ;;  %v1723_v54 = vld [vmem:[#allocation8 + $0xa8] sm:$0xff] }
 0xd3d   : > { %v1603_v46 = vpop.f32.mrf.mxu2 }
 0xd3e   : > { %v4941_v26 = vadd.f32 %v1603_v46, %v1582_v29 }
 0xd3f   : > { %v3631_v43 = vpop.eup %3630 }
 0xd40   : > { %v1425_v14 = vmul.f32 %v3631_v43, %v4790_v7  ;;  %v1608_v23 = vsel %vm490_vm2, %v4941_v26, -inf }
 0xd41   : > { %1609 = vmax.xlane.f32.xlu2 %v1608_v23 }
 0xd42   : > { %v1426_v39 = vpack.c.bf16 %v1425_v14, %v1424_v59 }
 0xd44   : > { %3213 = vmatmul.msk.bf16.vlgmr.msrb.gmra.mxu3 %vm490_vm2, %v1426_v39 }
 0xd45   : > { %1714 = vmatpush.bf16.msrb.mxu3 %v4842_v18  ;;  %v1605_v57 = vpop.f32.mrf.mxu2 }
 0xd46   : > { %v4949_v25 = vadd.f32 %v1605_v57, %v1583_v34 }
 0xd48   : > { %v1611_v28 = vsel %vm490_vm2, %v4949_v25, -inf }
 0xd49   : > { %1612 = vmax.xlane.f32.xlu1 %v1611_v28 }
 0xd4d   : > { %v1743_v35 = vpop.f32.mrf.mxu2 }
 0xd4e   : > { %v4953_v7 = vadd.f32 %v1743_v35, %v1722_v56 }
 0xd50   : > { %v1748_v11 = vsel %vm490_vm2, %v4953_v7, -inf }
 0xd51   : > { %1749 = vmax.xlane.f32.xlu2 %v1748_v11  ;;  %v4975_v11 = vpop.xlane.xlu2 %2504 }
 0xd55   : > { %v1745_v1 = vpop.f32.mrf.mxu2 }
 0xd56   : > { %v4957_v58 = vadd.f32 %v1745_v1, %v1723_v54 }
 0xd58   : > { %v1751_v18 = vsel %vm490_vm2, %v4957_v58, -inf }
 0xd59   : > { %1752 = vmax.xlane.f32.xlu1 %v1751_v18 }
 0xd5d   : > { %v1880_v46 = vpop.f32.mrf.mxu2 }
 0xd5e   : > { %v4961_v43 = vadd.f32 %v1880_v46, %v1582_v29 }
 0xd60   : > { %v1885_v59 = vsel %vm490_vm2, %v4961_v43, -inf }
 0xd61   : > { %1886 = vmax.xlane.f32.xlu1 %v1885_v59 }
 0xd65   : > { %v1882_v14 = vpop.f32.mrf.mxu2 }
 0xd66   : > { %v4965_v23 = vadd.f32 %v1882_v14, %v1583_v34  ;;  %v1552_v34 = vpop.xlane.xlu1 %1551 }
 0xd67   : > { %3632 = vrcp.f32 %v1552_v34  ;;  %v2131_v34 = vld [vmem:[#allocation8 + $0x38] sm:$0xff] }
 0xd68   : > { %v1888_v39 = vsel %vm490_vm2, %v4965_v23, -inf }
 0xd69   : > { %1889 = vmax.xlane.f32.xlu2 %v1888_v39  ;;  %v1692_v39 = vpop.xlane.xlu2 %1691 }
 0xd6d   : > { %v2014_v57 = vpop.f32.mrf.mxu2 }
 0xd6e   : > { %v4969_v28 = vadd.f32 %v2014_v57, %v1722_v56  ;;  %v2130_v56 = vld [vmem:[#allocation8 + $0x30] sm:$0xff] }
 0xd70   : > { %v2019_v35 = vsel %vm490_vm2, %v4969_v28, -inf }
 0xd71   : > { %2020 = vmax.xlane.f32.xlu2 %v2019_v35  ;;  %v3633_v35 = vpop.eup %3632 }
 0xd73   : > { %v4973_v29 = vpop.xlane.xlu0 %2635 }
 0xd75   : > { %v2016_v1 = vpop.f32.mrf.mxu2 }
 0xd76   : > { %v4977_v18 = vadd.f32 %v2016_v1, %v1723_v54  ;;  %v1558_v1 = vmul.f32 %v3633_v35, %v4756_v53  ;;  %v4995_v35 = vld [vmem:[#allocation8 + $0xb0] sm:$0xff] }
 0xd78   : > { %v2022_v46 = vsel %vm490_vm2, %v4977_v18, -inf }
 0xd79   : > { %2023 = vmax.xlane.f32.xlu0 %v2022_v46 }
 0xd7b   : > { %v1555_v59 = vpop.xlane.xlu0 %1554 }
 0xd7c   : > { %3634 = vrcp.f32 %v1555_v59 }
 0xd7d   : > { %v2151_v14 = vpop.f32.mrf.mxu2  ;;  %3636 = vrcp.f32 %v1692_v39 }
 0xd7e   : > { %v4981_v57 = vadd.f32 %v2151_v14, %v2130_v56  ;;  %v1835_v14 = vpop.xlane.xlu2 %1834 }
 0xd80   : > { %v2156_v33 = vsel %vm490_vm2, %v4981_v57, -inf }
 0xd81   : > { %2157 = vmax.xlane.f32.xlu0 %v2156_v33 }
 0xd82   : > { %v3635_v54 = vpop.eup %3634 }
 0xd83   : > { %v1559_v31 = vmul.f32 %v3635_v54, %v4859_v45  ;;  %v4987_v17 = vpop.xlane.xlu0 %2638  ;;  %v3637_v54 = vpop.eup %3636 }
 0xd84   : > { %5548 = vst [vmem:[#allocation43_spill] sm:$0xff] %v4987_v17  ;;  %v1698_v39 = vmul.f32 %v3637_v54, %v4811_v47 }
 0xd85   : > { %v1560_v46 = vpack.c.bf16 %v1559_v31, %v1558_v1  ;;  %v2153_v10 = vpop.f32.mrf.mxu2 }
 0xd86   : > { %v4989_v59 = vadd.f32 %v2153_v10, %v2131_v34  ;;  %v2373_v10 = vsub.f32 %v4771_v0, %v4915_v63  ;;  %v1832_v63 = vpop.xlane.xlu1 %1831 }
 0xd87   : > { %3217 = vmatmul.msk.bf16.vlgmr.msra.gmra.mxu3 %vm490_vm2, %v1560_v46  ;;  %v1966_v46 = vpop.xlane.xlu2 %1965 }
 0xd88   : > { %1854 = vmatpush.bf16.msra.mxu3 %v4853_v21  ;;  %v2159_v33 = vsel %vm490_vm2, %v4989_v59, -inf }
 0xd89   : > { %2160 = vmax.xlane.f32.xlu2 %v2159_v33  ;;  %v2376_v33 = vmul.f32 1.442695, %v2373_v10 }
 0xd8b   : > { %v1695_v53 = vpop.xlane.xlu0 %1694 }
 0xd8c   : > { %3638 = vrcp.f32 %v1695_v53 }
 0xd8d   : > { %v2291_v45 = vpop.f32.mrf.mxu2  ;;  %3640 = vpow2.f32 %v2376_v33 }
 0xd8e   : > { %v4998_v31 = vadd.f32 %v2291_v45, %v4995_v35  ;;  %3642 = vrcp.f32 %v1835_v14 }
 0xd8f   : > { %3644 = vrcp.f32 %v1832_v63 }
 0xd90   : > { %v2296_v21 = vsel %vm490_vm2, %v4998_v31, -inf  ;;  %3646 = vrcp.f32 %v1966_v46 }
 0xd91   : > { %2297 = vmax.xlane.f32.xlu0 %v2296_v21 }
 0xd92   : > { %v3639_v1 = vpop.eup %3638 }
 0xd93   : > { %v1699_v32 = vmul.f32 %v3639_v1, %v4889_v40  ;;  %v5006_v53 = vpop.xlane.xlu0 %2102 }
 0xd95   : > { %v1700_v45 = vpack.c.bf16 %v1699_v32, %v1698_v39  ;;  %v2293_v38 = vpop.f32.mrf.mxu2  ;;  %v5021_v32 = vpop.eup %3640 }
 0xd96   : > { %v5011_v0 = vadd.f32 %v2293_v38, %v5008_v19  ;;  %5549 = vst [vmem:[#allocation44_spill] sm:$0xff] %v5021_v32  ;;  %v3643_v54 = vpop.eup %3642 }
 0xd97   : > { %3221 = vmatmul.msk.bf16.vlgmr.msrb.gmra.mxu3 %vm490_vm2, %v1700_v45  ;;  %v3645_v1 = vpop.eup %3644  ;;  %v1839_v33 = vmul.f32 %v3643_v54, %v4820_v9  ;;  %v1969_v9 = vpop.xlane.xlu1 %1968 }
 0xd98   : > { %1988 = vmatpush.bf16.msrb.mxu3 %v4855_v36  ;;  %v2299_v47 = vsel %vm490_vm2, %v5011_v0, -inf  ;;  %v2381_v36 = vsel %vm490_vm2, %v5021_v32, 0.0  ;;  %v1838_v45 = vmul.f32 %v3645_v1, %v4806_v24 }
 0xd99   : > { %2300 = vmax.xlane.f32.xlu2 %v2299_v47 }
 0xd9a   : > { %v5017_v40 = vpop.xlane.xlu2 %2242  ;;  %v1840_v61 = vpack.c.bf16 %v1839_v33, %v1838_v45 }
 0xd9b   : > { %v5019_v10 = vpop.xlane.xlu0 %2239 }
 0xd9d   : > { %v2428_v38 = vpop.f32.mrf.mxu2 }
 0xd9e   : > { %v5023_v21 = vadd.f32 %v2428_v38, %v2130_v56  ;;  %v2372_v38 = vsub.f32 %v4742_v16, %v4896_v20  ;;  %v3647_v20 = vpop.eup %3646 }
 0xd9f   : > { %v2100_v33 = vpop.xlane.xlu1 %2099 }
 0xda0   : > { %v2433_v14 = vsel %vm490_vm2, %v5023_v21, -inf }
 0xda1   : > { %2434 = vmax.xlane.f32.xlu0 %v2433_v14  ;;  %2382 = vadd.xlane.f32.xlu2 %v2381_v36 }
 0xda2   : > { %v1342_v39 = vpop.xlane.xlu2 %1341 }
 0xda3   : > { %v1344_v63 = vsub.f32 %v4917_v48, %v1342_v39  ;;  %v1339_v47 = vpop.xlane.xlu0 %1338  ;;  %v2374_v48 = vmul.f32 1.442695, %v2372_v38 }
 0xda4   : > { %v1343_v56 = vsub.f32 %v4921_v27, %v1339_v47 }
 0xda5   : > { %v1347_v17 = vmul.f32 1.442695, %v1344_v63  ;;  %v2430_v52 = vpop.f32.mrf.mxu2 }
 0xda6   : > { %v1345_v32 = vmul.f32 1.442695, %v1343_v56  ;;  %v5035_v55 = vadd.f32 %v2430_v52, %v2131_v34 }
 0xda7   : > { %3648 = vpow2.f32 %v1347_v17  ;;  %3225 = vmatmul.msk.bf16.vlgmr.msra.gmra.mxu3 %vm490_vm2, %v1840_v61 }
 0xda8   : > { %3650 = vpow2.f32 %v1345_v32  ;;  %2122 = vmatpush.bf16.msra.mxu3 %v4885_v6  ;;  %v2436_v24 = vsel %vm490_vm2, %v5035_v55, -inf }
 0xda9   : > { %2437 = vmax.xlane.f32.xlu2 %v2436_v24  ;;  %3652 = vrcp.f32 %v1969_v9 }
 0xdaa   : > { %3654 = vpow2.f32 %v2374_v48 }
 0xdab   : > { %v1473_v16 = vpop.xlane.xlu0 %1472 }
 0xdac   : > { %v1477_v27 = vsub.f32 %v4932_v12, %v1473_v16  ;;  %v1476_v46 = vpop.xlane.xlu2 %1475  ;;  %v1972_v12 = vmul.f32 %v3647_v20, %v4832_v15 }
 0xdad   : > { %v5042_v52 = vpop.eup %3648  ;;  %v2562_v17 = vpop.f32.mrf.mxu2  ;;  %v1478_v38 = vsub.f32 %v4935_v60, %v1476_v46 }
 0xdae   : > { %v5044_v34 = vpop.eup %3650  ;;  %v1479_v61 = vmul.f32 1.442695, %v1477_v27  ;;  %v1352_v6 = vsel %vm490_vm2, %v5042_v52, 0.0  ;;  %v5077_v16 = vadd.f32 %v2562_v17, %v4995_v35 }
 0xdaf   : > { %v5048_v32 = vpop.f32.mrf.mxu3  ;;  %1353 = vadd.xlane.f32.xlu0 %v1352_v6  ;;  %v1349_v54 = vsel %vm490_vm2, %v5044_v34, 0.0  ;;  %v3653_v1 = vpop.eup %3652 }
 0xdb0   : > { %3656 = vpow2.f32 %v1479_v61  ;;  %1350 = vadd.xlane.f32.xlu1 %v1349_v54  ;;  %v5053_v14 = vpop.eup %3654  ;;  %v1973_v36 = vmul.f32 %v3653_v1, %v4816_v49 }
 0xdb1   : > { %v2378_v15 = vsel %vm490_vm2, %v5053_v14, 0.0  ;;  %3658 = vrcp.f32 %v5006_v53 }
 0xdb2   : > { %v1974_v45 = vpack.c.bf16 %v1973_v36, %v1972_v12 }
 0xdb4   : > { %v1610_v39 = vpop.xlane.xlu2 %1609 }
 0xdb5   : > { %v1614_v63 = vsub.f32 %v4941_v26, %v1610_v39  ;;  %v2564_v47 = vpop.f32.mrf.mxu2  ;;  %v1481_v26 = vmul.f32 1.442695, %v1478_v38 }
 0xdb6   : > { %v5057_v56 = vpop.eup %3656  ;;  %v5061_v9 = vadd.f32 %v2564_v47, %v5008_v19 }
 0xdb7   : > { %v1616_v24 = vmul.f32 1.442695, %v1614_v63  ;;  %v5065_v48 = vpop.f32.mrf.mxu3  ;;  %2379 = vadd.xlane.f32.xlu0 %v2378_v15  ;;  %3229 = vmatmul.msk.bf16.vlgmr.msrb.gmra.mxu3 %vm490_vm2, %v1974_v45  ;;  %v1483_v49 = vsel %vm490_vm2, %v5057_v56, 0.0  ;;  %v3659_v53 = vpop.eup %3658 }
 0xdb8   : > { %v3447_v60 = vpack.i.bf16 %v5065_v48, %v5048_v32  ;;  %2262 = vmatpush.bf16.msrb.mxu3 %v4883_v42  ;;  %1484 = vadd.xlane.f32.xlu1 %v1483_v49  ;;  %v2570_v19 = vsel %vm490_vm2, %v5061_v9, -inf  ;;  %v2567_v42 = vsel %vm490_vm2, %v5077_v16, -inf  ;;  %v2107_v1 = vmul.f32 %v3659_v53, %v4901_v41 }
 0xdb9   : > { %3660 = vpow2.f32 %v1616_v24  ;;  %2571 = vmax.xlane.f32.xlu2 %v2570_v19 }
 0xdba   : > { %3662 = vrcp.f32 %v2100_v33 }
 0xdbb   : > { %3664 = vpow2.f32 %v1481_v26 }
 0xdbc   : > { %v1613_v20 = vpop.xlane.xlu1 %1612 }
 0xdbd   : > { %v1615_v27 = vsub.f32 %v4949_v25, %v1613_v20 }
 0xdbf   : > { %v5080_v46 = vpop.eup %3660  ;;  %v1618_v61 = vmul.f32 1.442695, %v1615_v27 }
 0xdc0   : > { %v3663_v6 = vpop.eup %3662  ;;  %2568 = vmax.xlane.f32.xlu1 %v2567_v42  ;;  %v1620_v54 = vsel %vm490_vm2, %v5080_v46, 0.0 }
 0xdc1   : > { %3666 = vpow2.f32 %v1618_v61  ;;  %1621 = vadd.xlane.f32.xlu2 %v1620_v54  ;;  %v2106_v35 = vmul.f32 %v3663_v6, %v4828_v4  ;;  %v5088_v25 = vpop.eup %3664  ;;  %v2507_v54 = vsub.f32 %v4797_v8, %v4975_v11 }
 0xdc2   : > { %3668 = vrcp.f32 %v5017_v40  ;;  %v1486_v41 = vsel %vm490_vm2, %v5088_v25, 0.0 }
 0xdc3   : > { %v2108_v12 = vpack.c.bf16 %v2107_v1, %v2106_v35  ;;  %3670 = vrcp.f32 %v5019_v10  ;;  %v2510_v35 = vmul.f32 1.442695, %v2507_v54 }
 0xdc4   : > { %v1750_v17 = vpop.xlane.xlu2 %1749 }
 0xdc5   : > { %v1754_v36 = vsub.f32 %v4953_v7, %v1750_v17 }
 0xdc7   : > { %v5091_v33 = vpop.eup %3666  ;;  %v1756_v39 = vmul.f32 1.442695, %v1754_v36  ;;  %v5094_v45 = vpop.f32.mrf.mxu3  ;;  %3233 = vmatmul.msk.bf16.vlgmr.msra.gmra.mxu3 %vm490_vm2, %v2108_v12 }
 0xdc8   : > { %1487 = vadd.xlane.f32.xlu1 %v1486_v41  ;;  %v1623_v4 = vsel %vm490_vm2, %v5091_v33, 0.0  ;;  %v3669_v63 = vpop.eup %3668 }
 0xdc9   : > { %3672 = vpow2.f32 %v1756_v39  ;;  %1624 = vadd.xlane.f32.xlu2 %v1623_v4  ;;  %v3671_v47 = vpop.eup %3670  ;;  %v2247_v19 = vmul.f32 %v3669_v63, %v4907_v30 }
 0xdca   : > { %v2246_v26 = vmul.f32 %v3671_v47, %v4905_v3 }
 0xdcc   : > { %v1753_v7 = vpop.xlane.xlu1 %1752 }
 0xdcd   : > { %v1755_v40 = vsub.f32 %v4957_v58, %v1753_v7  ;;  %v2248_v58 = vpack.c.bf16 %v2247_v19, %v2246_v26 }
 0xdcf   : > { %v5103_v38 = vpop.eup %3672  ;;  %v1758_v15 = vmul.f32 1.442695, %v1755_v40  ;;  %v5105_v24 = vpop.f32.mrf.mxu3 }
 0xdd0   : > { %v3412_v49 = vpack.i.bf16 %v5105_v24, %v5094_v45  ;;  %v1760_v10 = vsel %vm490_vm2, %v5103_v38, 0.0 }
 0xdd1   : > { %3674 = vpow2.f32 %v1758_v15  ;;  %1761 = vadd.xlane.f32.xlu0 %v1760_v10 }
 0xdd4   : > { %v1887_v20 = vpop.xlane.xlu1 %1886 }
 0xdd5   : > { %v1891_v27 = vsub.f32 %v4961_v43, %v1887_v20 }
 0xdd7   : > { %v5114_v53 = vpop.eup %3674  ;;  %v1893_v61 = vmul.f32 1.442695, %v1891_v27  ;;  %3237 = vmatmul.msk.bf16.vlgmr.msrb.gmra.mxu3 %vm490_vm2, %v2248_v58 }
 0xdd8   : > { %v1763_v42 = vsel %vm490_vm2, %v5114_v53, 0.0 }
 0xdd9   : > { %3676 = vpow2.f32 %v1893_v61  ;;  %1764 = vadd.xlane.f32.xlu2 %v1763_v42 }
 0xddc   : > { %v1890_v6 = vpop.xlane.xlu2 %1889 }
 0xddd   : > { %v1892_v30 = vsub.f32 %v4965_v23, %v1890_v6 }
 0xddf   : > { %v5120_v3 = vpop.eup %3676  ;;  %v1895_v1 = vmul.f32 1.442695, %v1892_v30 }
 0xde0   : > { %v1897_v43 = vsel %vm490_vm2, %v5120_v3, 0.0 }
 0xde1   : > { %3678 = vpow2.f32 %v1895_v1  ;;  %1898 = vadd.xlane.f32.xlu1 %v1897_v43 }
 0xde2   : > { %3680 = vpow2.f32 %v2510_v35 }
 0xde4   : > { %v2021_v17 = vpop.xlane.xlu2 %2020 }
 0xde5   : > { %v2025_v12 = vsub.f32 %v4969_v28, %v2021_v17 }
 0xde7   : > { %v5127_v36 = vpop.eup %3678  ;;  %v2027_v39 = vmul.f32 1.442695, %v2025_v12 }
 0xde8   : > { %v1900_v23 = vsel %vm490_vm2, %v5127_v36, 0.0  ;;  %v5131_v11 = vpop.eup %3680 }
 0xde9   : > { %3682 = vpow2.f32 %v2027_v39  ;;  %1901 = vadd.xlane.f32.xlu2 %v1900_v23  ;;  %v2515_v28 = vsel %vm490_vm2, %v5131_v11, 0.0 }
 0xdec   : > { %v2024_v8 = vpop.xlane.xlu0 %2023 }
 0xded   : > { %v2026_v41 = vsub.f32 %v4977_v18, %v2024_v8 }
 0xdef   : > { %v5134_v4 = vpop.eup %3682  ;;  %v2029_v7 = vmul.f32 1.442695, %v2026_v41 }
 0xdf0   : > { %v2031_v63 = vsel %vm490_vm2, %v5134_v4, 0.0 }
 0xdf1   : > { %3684 = vpow2.f32 %v2029_v7  ;;  %2516 = vadd.xlane.f32.xlu2 %v2515_v28  ;;  %2032 = vadd.xlane.f32.xlu0 %v2031_v63 }
 0xdf4   : > { %v2158_v40 = vpop.xlane.xlu0 %2157 }
 0xdf5   : > { %v2162_v47 = vsub.f32 %v4981_v57, %v2158_v40 }
 0xdf7   : > { %v5141_v15 = vpop.eup %3684  ;;  %v2164_v10 = vmul.f32 1.442695, %v2162_v47 }
 0xdf8   : > { %v2034_v18 = vsel %vm490_vm2, %v5141_v15, 0.0 }
 0xdf9   : > { %3686 = vpow2.f32 %v2164_v10  ;;  %2035 = vadd.xlane.f32.xlu0 %v2034_v18 }
 0xdfa   : > { %2389 = vrot.lane.b32.xlu1 %v4264_v51, %s3975_s18 }
 0xdfc   : > { %v2161_v19 = vpop.xlane.xlu2 %2160 }
 0xdfd   : > { %v2163_v26 = vsub.f32 %v4989_v59, %v2161_v19  ;;  %v2506_v59 = vsub.f32 %v4778_v2, %v4929_v5 }
 0xdff   : > { %v5148_v20 = vpop.eup %3686  ;;  %v2166_v58 = vmul.f32 1.442695, %v2163_v26  ;;  %v2508_v43 = vmul.f32 1.442695, %v2506_v59 }
 0xe00   : > { %v2168_v57 = vsel %vm490_vm2, %v5148_v20, 0.0 }
 0xe01   : > { %3688 = vpow2.f32 %v2166_v58  ;;  %2169 = vadd.xlane.f32.xlu2 %v2168_v57 }
 0xe02   : > { %3690 = vpow2.f32 %v2508_v43 }
 0xe04   : > { %v2298_v6 = vpop.xlane.xlu0 %2297 }
 0xe05   : > { %v2302_v7 = vsub.f32 %v4998_v31, %v2298_v6 }
 0xe07   : > { %v5152_v27 = vpop.eup %3688  ;;  %v2304_v40 = vmul.f32 1.442695, %v2302_v7 }
 0xe08   : > { %v2171_v61 = vsel %vm490_vm2, %v5152_v27, 0.0  ;;  %v5171_v23 = vpop.eup %3690 }
 0xe09   : > { %2172 = vadd.xlane.f32.xlu2 %v2171_v61  ;;  %v2512_v41 = vsel %vm490_vm2, %v5171_v23, 0.0 }
 0xe0a   : > { %v5156_v42 = vpop.f32.mrf.mxu3 }
 0xe0c   : > { %v2301_v51 = vpop.xlane.xlu2 %2300 }
 0xe0d   : > { %2319 = vrot.lane.b32.xlu0 %v4202_v62, %s3975_s18  ;;  %v2303_v58 = vsub.f32 %v5011_v0, %v2301_v51 }
 0xe0f   : > { %v2306_v57 = vmul.f32 1.442695, %v2303_v58 }
 0xe12   : > { %v5162_v30 = vpop.f32.mrf.mxu3 }
 0xe13   : > { %v3472_v54 = vpack.i.bf16 %v5162_v30, %v5156_v42 }
 0xe14   : > { %v5166_v1 = vpop.xlane.xlu2 %2382  ;;  %v2435_v35 = vpop.xlane.xlu0 %2434 }
 0xe1a   : > { %v5168_v17 = vpop.f32.mrf.mxu3 }
 0xe1c   : > { %v2438_v12 = vpop.xlane.xlu2 %2437 }
 0xe1d   : > { %v2440_v39 = vsub.f32 %v5035_v55, %v2438_v12 }
 0xe1f   : > { %v2443_v62 = vmul.f32 1.442695, %v2440_v39 }
 0xe21   : > { %3692 = vpow2.f32 %v2443_v62 }
 0xe22   : > { %v5173_v2 = vpop.f32.mrf.mxu3  ;;  %v1354_v5 = vpop.xlane.xlu0 %1353 }
 0xe23   : > { %3694 = vrcp.f32 %v1354_v5  ;;  %v1351_v8 = vpop.xlane.xlu1 %1350  ;;  %v2640_v5 = vsub.f32 %v4851_v22, %v4973_v29 }
 0xe24   : > { %3696 = vrcp.f32 %v1351_v8  ;;  %2513 = vadd.xlane.f32.xlu1 %v2512_v41 }
 0xe25   : > { %3698 = vpow2.f32 %v2304_v40  ;;  %v2642_v8 = vmul.f32 1.442695, %v2640_v5 }
 0xe26   : > { %3700 = vpow2.f32 %v2306_v57 }
 0xe27   : > { %v5178_v28 = vpop.eup %3692 }
 0xe28   : > { %v2448_v55 = vsel %vm490_vm2, %v5178_v28, 0.0 }
 0xe29   : > { %v3695_v63 = vpop.eup %3694  ;;  %2449 = vadd.xlane.f32.xlu2 %v2448_v55 }
 0xe2a   : > { %v3697_v47 = vpop.eup %3696  ;;  %v1358_v10 = vmul.f32 %v3695_v63, %v5042_v52  ;;  %v5183_v18 = vpop.f32.mrf.mxu3 }
 0xe2b   : > { %v1357_v19 = vmul.f32 %v3697_v47, %v5044_v34  ;;  %v1485_v26 = vpop.xlane.xlu1 %1484  ;;  %v5191_v6 = vpop.eup %3698  ;;  %v2439_v34 = vsub.f32 %v5023_v21, %v2435_v35 }
 0xe2c   : > { %v2572_v61 = vpop.xlane.xlu2 %2571  ;;  %v2308_v0 = vsel %vm490_vm2, %v5191_v6, 0.0  ;;  %3702 = vrcp.f32 %v1485_v26  ;;  %v5200_v12 = vpop.eup %3700 }
 0xe2d   : > { %v1359_v31 = vpack.c.bf16 %v1358_v10, %v1357_v19  ;;  %v2441_v51 = vmul.f32 1.442695, %v2439_v34  ;;  %v2311_v21 = vsel %vm490_vm2, %v5200_v12, 0.0  ;;  %v2574_v63 = vsub.f32 %v5061_v9, %v2572_v61  ;;  %v2380_v26 = vpop.xlane.xlu0 %2379 }
 0xe2f   : > { %3211 = vmatmul.msk.bf16.vlgmr.msrb.gmra.mxu0 %vm490_vm2, %v1359_v31 }
 0xe30   : > { %1644 = vmatpush.bf16.msrb.mxu0 %v4840_v44 }
 0xe32   : > { %v5189_v59 = vpop.f32.mrf.mxu3  ;;  %v3703_v35 = vpop.eup %3702 }
 0xe33   : > { %v3452_v52 = vpack.i.bf16 %v5189_v59, %v5183_v18  ;;  %v2569_v43 = vpop.xlane.xlu1 %2568  ;;  %v1491_v22 = vmul.f32 %v3703_v35, %v5057_v56  ;;  %v5550_v56 = vld [vmem:[#allocation37_spill] sm:$0xff] }
 0xe34   : > { %v1622_v39 = vpop.xlane.xlu2 %1621 }
 0xe37   : > { %2309 = vadd.xlane.f32.xlu0 %v2308_v0 }
 0xe3a   : > { %v5198_v44 = vpop.f32.mrf.mxu3 }
 0xe3b   : > { %v1488_v62 = vpop.xlane.xlu1 %1487 }
 0xe3c   : > { %3704 = vrcp.f32 %v1488_v62  ;;  %v1625_v47 = vpop.xlane.xlu2 %1624 }
 0xe3d   : > { %3706 = vpow2.f32 %v2441_v51  ;;  %2456 = vrot.lane.b32.xlu1 %v4262_v50, %s3975_s18 }
 0xe3e   : > { %3708 = vpow2.f32 %v2642_v8  ;;  %v5553_v8 = vld [vmem:[#allocation39_spill] sm:$0xff] }
 0xe3f   : > { %2312 = vadd.xlane.f32.xlu0 %v2311_v21  ;;  %3710 = vrcp.f32 %v1625_v47  ;;  %v5551_v21 = vld [vmem:[#allocation36_spill] sm:$0xff] }
 0xe40   : > { %3712 = vrcp.f32 %v1622_v39 }
 0xe41   : > { %2523 = vrot.lane.b32.xlu2 %v4317_v13, %s3975_s18 }
 0xe42   : > { %v3705_v41 = vpop.eup %3704  ;;  %v5210_v7 = vpop.f32.mrf.mxu3 }
 0xe43   : > { %v5212_v55 = vpop.eup %3706  ;;  %v1492_v29 = vmul.f32 %v3705_v41, %v5088_v25  ;;  %v3417_v50 = vpack.i.bf16 %v5210_v7, %v5198_v44  ;;  %v2577_v25 = vmul.f32 1.442695, %v2574_v63 }
 0xe44   : > { %v2445_v13 = vsel %vm490_vm2, %v5212_v55, 0.0  ;;  %v5227_v19 = vpop.eup %3708  ;;  %v1762_v5 = vpop.xlane.xlu0 %1761 }
 0xe45   : > { %v1493_v40 = vpack.c.bf16 %v1492_v29, %v1491_v22  ;;  %2590 = vrot.lane.b32.xlu1 %v4305_v37, %s3975_s18  ;;  %3714 = vpow2.f32 %v2577_v25  ;;  %v3711_v9 = vpop.eup %3710  ;;  %v2646_v37 = vsel %vm490_vm2, %v5227_v19, 0.0 }
 0xe46   : > { %v3713_v58 = vpop.eup %3712  ;;  %v1629_v31 = vmul.f32 %v3711_v9, %v5091_v33  ;;  %v2573_v33 = vsub.f32 %v5077_v16, %v2569_v43  ;;  %v5554_v9 = vld [vmem:[#allocation38_spill] sm:$0xff] }
 0xe47   : > { %2446 = vadd.xlane.f32.xlu0 %v2445_v13  ;;  %3215 = vmatmul.msk.bf16.vlgmr.msra.gmra.mxu0 %vm490_vm2, %v1493_v40  ;;  %v1628_v34 = vmul.f32 %v3713_v58, %v5080_v46  ;;  %v5552_v46 = vld [vmem:[#allocation43_spill] sm:$0xff]  ;;  %v5555_v58 = vld [vmem:[#allocation25_spill] sm:$0xff] }
 0xe48   : > { %1784 = vmatpush.bf16.msra.mxu0 %v5550_v56  ;;  %v2575_v35 = vmul.f32 1.442695, %v2573_v33  ;;  %v2641_v41 = vsub.f32 %v5553_v8, %v5552_v46 }
 0xe49   : > { %v1630_v51 = vpack.c.bf16 %v1629_v31, %v1628_v34  ;;  %v5556_v31 = vld [vmem:[#allocation44_spill] sm:$0xff] }
 0xe4a   : > { %v5225_v10 = vpop.f32.mrf.mxu3  ;;  %v2644_v63 = vmul.f32 1.442695, %v2641_v41 }
 0xe4b   : > { %v5234_v61 = vpop.eup %3714 }
 0xe4c   : > { %v1765_v39 = vpop.xlane.xlu2 %1764  ;;  %v2582_v62 = vsel %vm490_vm2, %v5234_v61, 0.0 }
 0xe4d   : > { %3716 = vrcp.f32 %v1765_v39 }
 0xe4e   : > { %3718 = vrcp.f32 %v1762_v5 }
 0xe4f   : > { %2647 = vadd.xlane.f32.xlu0 %v2646_v37  ;;  %3720 = vpow2.f32 %v2575_v35 }
 0xe50   : > { %3722 = vrcp.f32 %v2380_v26 }
 0xe51   : > { %3724 = vrcp.f32 %v5166_v1 }
 0xe52   : > { %v5232_v57 = vpop.f32.mrf.mxu3  ;;  %3726 = vpow2.f32 %v2644_v63  ;;  %v5559_v63 = vld [vmem:[#allocation41_spill] sm:$0xff] }
 0xe53   : > { %v3477_v0 = vpack.i.bf16 %v5232_v57, %v5225_v10  ;;  %v3717_v22 = vpop.eup %3716 }
 0xe54   : > { %v3719_v29 = vpop.eup %3718  ;;  %v1769_v40 = vmul.f32 %v3717_v22, %v5114_v53  ;;  %v1899_v16 = vpop.xlane.xlu1 %1898 }
 0xe55   : > { %v1768_v47 = vmul.f32 %v3719_v29, %v5103_v38  ;;  %v5249_v56 = vpop.eup %3720 }
 0xe56   : > { %v3723_v25 = vpop.eup %3722  ;;  %v2579_v53 = vsel %vm490_vm2, %v5249_v56, 0.0 }
 0xe57   : > { %2583 = vadd.xlane.f32.xlu0 %v2582_v62  ;;  %3219 = vmatmul.msk.bf16.vlgmr.msrb.gmra.mxu0 %vm490_vm2, %v1630_v51  ;;  %v1770_v43 = vpack.c.bf16 %v1769_v40, %v1768_v47  ;;  %v3725_v37 = vpop.eup %3724  ;;  %v2386_v1 = vmul.f32 %v3723_v25, %v5053_v14  ;;  %v5557_v14 = vld [vmem:[#allocation32_spill] sm:$0xff]  ;;  %v3402_v25 = vpack.i.bf16 %v5173_v2, %v5168_v17 }
 0xe58   : > { %1921 = vmatpush.bf16.msrb.mxu0 %v5551_v21  ;;  %v5256_v38 = vpop.eup %3726  ;;  %v2387_v34 = vmul.f32 %v3725_v37, %v5556_v31  ;;  %v5558_v21 = vld [vmem:[#allocation33_spill] sm:$0xff] }
 0xe59   : > { %v2649_v5 = vsel %vm490_vm2, %v5256_v38, 0.0  ;;  %v3382_v35 = vpack.i.bf16 %v5558_v21, %v5557_v14 }
 0xe5a   : > { %v2388_v62 = vpack.c.bf16 %v2387_v34, %v2386_v1 }
 0xe5c   : > { %v1902_v13 = vpop.xlane.xlu2 %1901 }
 0xe5d   : > { %3728 = vrcp.f32 %v1902_v13 }
 0xe5e   : > { %3730 = vrcp.f32 %v1899_v16 }
 0xe63   : > { %v3729_v39 = vpop.eup %3728 }
 0xe64   : > { %v2033_v26 = vpop.xlane.xlu0 %2032  ;;  %v3731_v33 = vpop.eup %3730  ;;  %v1906_v46 = vmul.f32 %v3729_v39, %v5127_v36 }
 0xe65   : > { %v1905_v8 = vmul.f32 %v3731_v33, %v5120_v3  ;;  %v2517_v41 = vpop.xlane.xlu2 %2516 }
 0xe67   : > { %3223 = vmatmul.msk.bf16.vlgmr.msra.gmra.mxu0 %vm490_vm2, %v1770_v43  ;;  %v1907_v22 = vpack.c.bf16 %v1906_v46, %v1905_v8 }
 0xe68   : > { %2055 = vmatpush.bf16.msra.mxu0 %v5554_v9 }
 0xe6a   : > { %2580 = vadd.xlane.f32.xlu2 %v2579_v53 }
 0xe6b   : > { %2657 = vrot.lane.b32.xlu0 %v5555_v58, %s3975_s18  ;;  %s3898_s18 = scalar_lea.hbm %s3897_s9, 128 }
 0xe6c   : > { %v2390_v51 = vpop.permute.xlu1 %2389  ;;  %v2036_v29 = vpop.xlane.xlu0 %2035  ;;  %p3899_p1 = scmp.ne.s32.totalorder %s3897_s9, %s3898_s18  ;;  %p3904_p9 = scmp.lt.s32.totalorder %s3902_s30, %s3898_s18 }
 0xe6d   : > { %2402 = vmatpush.bf16.msra.mxu3 %v2390_v51  ;;  %3732 = vrcp.f32 %v2036_v29 }
 0xe6e   : > { %3734 = vrcp.f32 %v2033_v26  ;;  %p3900_p4 = pnand %p3899_p1, %p4100_p3  ;;  %p3905_p2 = por %p3904_p9, %p3903_p11 }
 0xe6f   : > { %2650 = vadd.xlane.f32.xlu1 %v2649_v5 }
 0xe70   : > { %3241 = vmatmul.msk.bf16.vlgmr.msra.gmra.mxu3 %vm490_vm2, %v2388_v62  ;;  %p3901_p8 = pneg %p3900_p4 }
 0xe72   : > { %p3906_p10 = pnand %p3905_p2, %p3901_p8 }
 0xe73   : > { %3383 = vrot.lane.b32.xlu0 %v3382_v35, %s3976_s27  ;;  %v3733_v47 = vpop.eup %3732 }
 0xe74   : > { %v2170_v40 = vpop.xlane.xlu2 %2169  ;;  %v3735_v16 = vpop.eup %3734  ;;  %v2040_v43 = vmul.f32 %v3733_v47, %v5141_v15 }
 0xe75   : > { %v2039_v36 = vmul.f32 %v3735_v16, %v5134_v4 }
 0xe77   : > { %3227 = vmatmul.msk.bf16.vlgmr.msrb.gmra.mxu0 %vm490_vm2, %v1907_v22  ;;  %v2041_v3 = vpack.c.bf16 %v2040_v43, %v2039_v36 }
 0xe78   : > { %2192 = vmatpush.bf16.msrb.mxu0 %v5559_v63 }
 0xe7c   : > { %v2173_v13 = vpop.xlane.xlu2 %2172 }
 0xe7d   : > { %3736 = vrcp.f32 %v2173_v13 }
 0xe7e   : > { %3738 = vrcp.f32 %v2170_v40 }
 0xe7f   : > { %v2320_v9 = vpop.permute.xlu0 %2319 }
 0xe83   : > { %v3737_v37 = vpop.eup %3736 }
 0xe84   : > { %v3739_v53 = vpop.eup %3738  ;;  %v2177_v15 = vmul.f32 %v3737_v37, %v5152_v27 }
 0xe85   : > { %v2176_v4 = vmul.f32 %v3739_v53, %v5148_v20 }
 0xe87   : > { %3231 = vmatmul.msk.bf16.vlgmr.msra.gmra.mxu0 %vm490_vm2, %v2041_v3  ;;  %v2178_v1 = vpack.c.bf16 %v2177_v15, %v2176_v4 }
 0xe88   : > { %2332 = vmatpush.bf16.msra.mxu0 %v2320_v9  ;;  %3403 = vrot.lane.b32.xlu1 %v3402_v25, %s3977_s8 }
 0xe97   : > { %v2514_v26 = vpop.xlane.xlu1 %2513  ;;  %3235 = vmatmul.msk.bf16.vlgmr.msrb.gmra.mxu0 %vm490_vm2, %v2178_v1 }
 0xe98   : > { %3740 = vrcp.f32 %v2514_v26 }
 0xe99   : > { %3742 = vrcp.f32 %v2517_v41 }
 0xe9c   : > { %v2450_v17 = vpop.xlane.xlu2 %2449 }
 0xe9e   : > { %v3741_v2 = vpop.eup %3740 }
 0xe9f   : > { %v3743_v58 = vpop.eup %3742  ;;  %v2520_v31 = vmul.f32 %v3741_v2, %v5171_v23 }
 0xea0   : > { %v2521_v34 = vmul.f32 %v3743_v58, %v5131_v11 }
 0xea2   : > { %v2522_v39 = vpack.c.bf16 %v2521_v34, %v2520_v31 }
 0xea4   : > { %v2524_v51 = vpop.permute.xlu2 %2523 }
 0xea5   : > { %2536 = vmatpush.bf16.msrb.mxu3 %v2524_v51 }
 0xea8   : > { %3245 = vmatmul.msk.bf16.vlgmr.msrb.gmra.mxu3 %vm490_vm2, %v2522_v39 }
 0xeaa   : > { %v2310_v27 = vpop.xlane.xlu0 %2309 }
 0xeab   : > { %3744 = vrcp.f32 %v2310_v27 }
 0xeac   : > { %v5283_v62 = vpop.f32.mrf.mxu0 }
 0xeaf   : > { %v2457_v20 = vpop.permute.xlu1 %2456 }
 0xeb0   : > { %2469 = vmatpush.bf16.msrb.mxu0 %v2457_v20 }
 0xeb1   : > { %v3745_v33 = vpop.eup %3744 }
 0xeb2   : > { %v2313_v5 = vpop.xlane.xlu0 %2312  ;;  %v2316_v21 = vmul.f32 %v3745_v33, %v5191_v6 }
 0xeb3   : > { %3746 = vrcp.f32 %v2313_v5 }
 0xeb4   : > { %v5287_v35 = vpop.f32.mrf.mxu0 }
 0xeb5   : > { %v3487_v18 = vpack.i.bf16 %v5287_v35, %v5283_v62 }
 0xeb7   : > { %v2591_v8 = vpop.permute.xlu1 %2590 }
 0xeb9   : > { %v3747_v14 = vpop.eup %3746 }
 0xeba   : > { %v2317_v23 = vmul.f32 %v3747_v14, %v5200_v12  ;;  %v2447_v46 = vpop.xlane.xlu0 %2446 }
 0xebb   : > { %3748 = vrcp.f32 %v2447_v46 }
 0xebc   : > { %v2318_v11 = vpack.c.bf16 %v2317_v23, %v2316_v21  ;;  %3750 = vrcp.f32 %v2450_v17 }
 0xebe   : > { %3239 = vmatmul.msk.bf16.vlgmr.msra.gmra.mxu0 %vm490_vm2, %v2318_v11 }
 0xebf   : > { %2603 = vmatpush.bf16.msra.mxu0 %v2591_v8 }
 0xec1   : > { %v3749_v22 = vpop.eup %3748 }
 0xec2   : > { %v3751_v29 = vpop.eup %3750  ;;  %v2453_v63 = vmul.f32 %v3749_v22, %v5212_v55  ;;  %v2648_v40 = vpop.xlane.xlu0 %2647 }
 0xec3   : > { %v2454_v6 = vmul.f32 %v3751_v29, %v5178_v28  ;;  %v2264_v55 = vpop.f32.mrf.mxu3 }
 0xec4   : > { %v5290_v41 = vpop.f32.mrf.mxu0 }
 0xec5   : > { %v2455_v12 = vpack.c.bf16 %v2454_v6, %v2453_v63  ;;  %v5563_v63 = vld [vmem:[#allocation40_spill] sm:$0xff]  ;;  %v5564_v6 = vld [vmem:[#allocation42_spill] sm:$0xff] }
 0xeca   : > { %v2584_v43 = vpop.xlane.xlu0 %2583 }
 0xecb   : > { %3752 = vrcp.f32 %v2584_v43  ;;  %v2266_v31 = vpop.f32.mrf.mxu3 }
 0xecc   : > { %v5294_v47 = vpop.f32.mrf.mxu0  ;;  %v3407_v46 = vpack.i.bf16 %v2266_v31, %v2264_v55 }
 0xece   : > { %3243 = vmatmul.msk.bf16.vlgmr.msrb.gmra.mxu0 %vm490_vm2, %v2455_v12 }
 0xed1   : > { %v3753_v28 = vpop.eup %3752 }
 0xed2   : > { %v2588_v15 = vmul.f32 %v3753_v28, %v5234_v61 }
 0xed4   : > { %v1646_v16 = vpop.f32.mrf.mxu0 }
 0xedc   : > { %v1648_v36 = vpop.f32.mrf.mxu0 }
 0xedd   : > { %v3387_v3 = vpack.i.bf16 %v1648_v36, %v1646_v16  ;;  %v2581_v13 = vpop.xlane.xlu2 %2580  ;;  %v2658_v25 = vpop.permute.xlu0 %2657  ;;  %v3437_v36 = vpack.i.bf16 %v5294_v47, %v5290_v41 }
 0xede   : > { %3754 = vrcp.f32 %v2581_v13  ;;  %2670 = vmatpush.bf16.msra.mxu3 %v2658_v25  ;;  %v5566_v25 = vld [vmem:[#allocation15_spill] sm:$0xff] }
 0xedf   : > { %3388 = vrot.lane.b32.xlu2 %v3387_v3, %s3977_s8  ;;  %3756 = vrcp.f32 %v2648_v40  ;;  %v3427_v40 = vpack.i.bf16 %v5564_v6, %v5563_v63  ;;  %v5565_v3 = vld [vmem:[#allocation16_spill] sm:$0xff]  ;;  %v5570_v63 = vld [vmem:[#allocation26_spill] sm:$0xff] }
 0xee2   : > { %v2651_v9 = vpop.xlane.xlu1 %2650 }
 0xee3   : > { %3758 = vrcp.f32 %v2651_v9 }
 0xee4   : > { %v3755_v37 = vpop.eup %3754  ;;  %v1786_v53 = vpop.f32.mrf.mxu0 }
 0xee5   : > { %v2587_v4 = vmul.f32 %v3755_v37, %v5249_v56  ;;  %v3757_v1 = vpop.eup %3756  ;;  %v3384_v10 = vpop.permute.xlu0 %3383 }
 0xee6   : > { %v2654_v2 = vmul.f32 %v3757_v1, %v5227_v19  ;;  %v5560_v19 = vld [vmem:[#allocation35_spill] sm:$0xff]  ;;  %v3385_v62 = vunpack.i.l.bf16 %v3384_v10 }
 0xee7   : > { %v2589_v26 = vpack.c.bf16 %v2588_v15, %v2587_v4  ;;  %3413 = vrot.lane.b32.xlu2 %v3412_v49, %s3976_s27 }
 0xee8   : > { %v2869_v55 = vsel %vm469_vm1, %v5566_v25, %v3385_v62 }
 0xee9   : > { %v3759_v17 = vpop.eup %3758  ;;  %3247 = vmatmul.msk.bf16.vlgmr.msra.gmra.mxu0 %vm490_vm2, %v2589_v26 }
 0xeea   : > { %v2655_v58 = vmul.f32 %v3759_v17, %v5256_v38  ;;  %v5561_v38 = vld [vmem:[#allocation34_spill] sm:$0xff] }
 0xeeb   : > { %v5562_v23 = vpack.i.bf16 %v5560_v19, %v5561_v38 }
 0xeec   : > { %v2656_v34 = vpack.c.bf16 %v2655_v58, %v2654_v2  ;;  %v1788_v51 = vpop.f32.mrf.mxu0 }
 0xeed   : > { %v3432_v61 = vpack.i.bf16 %v1788_v51, %v1786_v53 }
 0xeee   : > { %3249 = vmatmul.msk.bf16.vlgmr.msra.gmra.mxu3 %vm490_vm2, %v2656_v34  ;;  %v5567_v34 = vld [vmem:[#allocation18_spill] sm:$0xff] }
 0xef3   : > { %v2404_v56 = vpop.f32.mrf.mxu3 }
 0xef4   : > { %v1923_v39 = vpop.f32.mrf.mxu0 }
 0xefa   : > { %v3404_v58 = vpop.permute.xlu1 %3403 }
 0xefb   : > { %v2406_v27 = vpop.f32.mrf.mxu3 }
 0xefc   : > { %v3467_v20 = vpack.i.bf16 %v2406_v27, %v2404_v56  ;;  %v1925_v5 = vpop.f32.mrf.mxu0  ;;  %v3405_v27 = vunpack.i.l.bf16 %v3404_v58 }
 0xefd   : > { %v3492_v45 = vpack.i.bf16 %v1925_v5, %v1923_v39  ;;  %v3406_v39 = vunpack.i.h.bf16 %v3404_v58 }
 0xf04   : > { %v2057_v24 = vpop.f32.mrf.mxu0 }
 0xf0c   : > { %v2059_v49 = vpop.f32.mrf.mxu0 }
 0xf0d   : > { %v3442_v16 = vpack.i.bf16 %v2059_v49, %v2057_v24 }
 0xf14   : > { %v2194_v33 = vpop.f32.mrf.mxu0 }
 0xf1c   : > { %v2196_v14 = vpop.f32.mrf.mxu0 }
 0xf1d   : > { %v3392_v21 = vpack.i.bf16 %v2196_v14, %v2194_v33 }
 0xf1f   : > { %3393 = vrot.lane.b32.xlu0 %v3392_v21, %s3978_s26 }
 0xf27   : > { %3398 = vrot.lane.b32.xlu0 %v5562_v23, %s3976_s27 }
 0xf2b   : > { %v2538_v11 = vpop.f32.mrf.mxu3 }
 0xf2f   : > { %3408 = vrot.lane.b32.xlu0 %v3407_v46, %s3978_s26 }
 0xf33   : > { %v2540_v8 = vpop.f32.mrf.mxu3 }
 0xf34   : > { %v3422_v22 = vpack.i.bf16 %v2540_v8, %v2538_v11 }
 0xf36   : > { %3423 = vrot.lane.b32.xlu2 %v3422_v22, %s3978_s26  ;;  %v5569_v22 = vld [vmem:[#allocation27_spill] sm:$0xff] }
 0xf37   : > { %3418 = vrot.lane.b32.xlu0 %v3417_v50, %s3977_s8  ;;  %v3276_v50 = vld [vmem:[#allocation7] sm:$0xff] }
 0xf39   : > { %v3389_v57 = vpop.permute.xlu2 %3388 }
 0xf3a   : > { %v3391_v35 = vunpack.i.h.bf16 %v3389_v57  ;;  %v3390_v41 = vunpack.i.l.bf16 %v3389_v57 }
 0xf3b   : > { %v2334_v29 = vpop.f32.mrf.mxu0 }
 0xf3c   : > { %v2885_v37 = vsel %vm490_vm2, %v2869_v55, %v3390_v41 }
 0xf3e   : > { %3433 = vrot.lane.b32.xlu2 %v3432_v61, %s3977_s8  ;;  %v5568_v61 = vld [vmem:[#allocation17_spill] sm:$0xff] }
 0xf3f   : > { %3428 = vrot.lane.b32.xlu0 %v3427_v40, %s3976_s27 }
 0xf41   : > { %v3414_v31 = vpop.permute.xlu2 %3413 }
 0xf42   : > { %v3416_v19 = vunpack.i.h.bf16 %v3414_v31  ;;  %v3415_v38 = vunpack.i.l.bf16 %v3414_v31 }
 0xf43   : > { %v2336_v12 = vpop.f32.mrf.mxu0 }
 0xf44   : > { %v3457_v43 = vpack.i.bf16 %v2336_v12, %v2334_v29  ;;  %v2880_v29 = vsel %vm469_vm1, %v5569_v22, %v3416_v19  ;;  %v2879_v6 = vsel %vm469_vm1, %v5570_v63, %v3415_v38 }
 0xf46   : > { %3443 = vrot.lane.b32.xlu2 %v3442_v16, %s3977_s8  ;;  %3458 = vrot.lane.b32.xlu1 %v3457_v43, %s3978_s26 }
 0xf47   : > { %3438 = vrot.lane.b32.xlu0 %v3437_v36, %s3976_s27 }
 0xf4b   : > { %v2471_v44 = vpop.f32.mrf.mxu0 }
 0xf4e   : > { %3453 = vrot.lane.b32.xlu2 %v3452_v52, %s3977_s8  ;;  %v3277_v52 = vld [vmem:[#allocation7 + $0x8] sm:$0xff] }
 0xf4f   : > { %3448 = vrot.lane.b32.xlu0 %v3447_v60, %s3976_s27  ;;  %2976 = vmatpush.bf16.msrb.mxu0 %v3277_v52 }
 0xf50   : > { %3284 = vmatpush.bf16.msrb.mxu2 %v3277_v52  ;;  %v5571_v52 = vld [vmem:[#allocation20_spill] sm:$0xff] }
 0xf53   : > { %v2473_v59 = vpop.f32.mrf.mxu0  ;;  %2977 = vmatpush.bf16.msrb.mxu0 %v3276_v50 }
 0xf54   : > { %3285 = vmatpush.bf16.msrb.mxu2 %v3276_v50  ;;  %v5572_v50 = vld [vmem:[#allocation19_spill] sm:$0xff] }
 0xf56   : > { %3478 = vrot.lane.b32.xlu2 %v3477_v0, %s3977_s8  ;;  %v3386_v0 = vunpack.i.h.bf16 %v3384_v10 }
 0xf57   : > { %3473 = vrot.lane.b32.xlu0 %v3472_v54, %s3976_s27  ;;  %v3497_v54 = vpack.i.bf16 %v2473_v59, %v2471_v44 }
 0xf58   : > { %v2870_v13 = vsel %vm469_vm1, %v5565_v3, %v3386_v0 }
 0xf59   : > { %v2886_v53 = vsel %vm490_vm2, %v2870_v13, %v3391_v35 }
 0xf5e   : > { %3493 = vrot.lane.b32.xlu2 %v3492_v45, %s3977_s8 }
 0xf5f   : > { %3488 = vrot.lane.b32.xlu0 %v3487_v18, %s3976_s27 }
 0xf66   : > { %v2605_v32 = vpop.f32.mrf.mxu0 }
 0xf6e   : > { %v2607_v48 = vpop.f32.mrf.mxu0 }
 0xf6f   : > { %v3462_v60 = vpack.i.bf16 %v2607_v48, %v2605_v32 }
 0xf71   : > { %3463 = vrot.lane.b32.xlu1 %v3462_v60, %s3978_s26  ;;  %v2672_v7 = vpop.f32.mrf.mxu3 }
 0xf79   : > { %3468 = vrot.lane.b32.xlu1 %v3467_v20, %s3978_s26  ;;  %v2674_v42 = vpop.f32.mrf.mxu3 }
 0xf7a   : > { %v3482_v30 = vpack.i.bf16 %v2674_v42, %v2672_v7 }
 0xf81   : > { %3483 = vrot.lane.b32.xlu1 %v3482_v30, %s3978_s26 }
 0xf89   : > { %3498 = vrot.lane.b32.xlu1 %v3497_v54, %s3978_s26 }
 0xf90   : > { %v3424_v23 = vpop.permute.xlu2 %3423 }
 0xf91   : > { %v3394_v47 = vpop.permute.xlu0 %3393  ;;  %v3426_v40 = vunpack.i.h.bf16 %v3424_v23  ;;  %v3425_v12 = vunpack.i.l.bf16 %v3424_v23 }
 0xf92   : > { %v3396_v28 = vunpack.i.h.bf16 %v3394_v47  ;;  %v3395_v9 = vunpack.i.l.bf16 %v3394_v47 }
 0xf94   : > { %v2902_v15 = vsel %vm2901_vm3, %v2885_v37, %v3395_v9  ;;  %v2903_v4 = vsel %vm2901_vm3, %v2886_v53, %v3396_v28  ;;  %v5573_v37 = vld [vmem:[#allocation29_spill] sm:$0xff] }
 0xf95   : > { %v2918_v1 = vpack.c.bf16 %v2903_v4, %v2902_v15  ;;  %v5574_v15 = vld [vmem:[#allocation28_spill] sm:$0xff] }
 0xf97   : > { %3258 = vmatmul.msk.bf16.vlgmr.msrb.gmra.mxu0 %vm370_vm0, %v2918_v1 }
 0xf98   : > { %v3434_v60 = vpop.permute.xlu2 %3433 }
 0xf99   : > { %v3399_v26 = vpop.permute.xlu0 %3398  ;;  %v3436_v30 = vunpack.i.h.bf16 %v3434_v60  ;;  %v3435_v54 = vunpack.i.l.bf16 %v3434_v60 }
 0xf9a   : > { %v3401_v17 = vunpack.i.h.bf16 %v3399_v26  ;;  %v3400_v2 = vunpack.i.l.bf16 %v3399_v26 }
 0xf9c   : > { %v2872_v51 = vsel %vm469_vm1, %v5567_v34, %v3401_v17  ;;  %v2871_v56 = vsel %vm469_vm1, %v5568_v61, %v3400_v2 }
 0xf9d   : > { %v2887_v24 = vsel %vm490_vm2, %v2871_v56, %v3405_v27  ;;  %v2888_v49 = vsel %vm490_vm2, %v2872_v51, %v3406_v39 }
 0xfa0   : > { %v3444_v25 = vpop.permute.xlu2 %3443 }
 0xfa1   : > { %v3409_v20 = vpop.permute.xlu0 %3408  ;;  %v3446_v1 = vunpack.i.h.bf16 %v3444_v25  ;;  %v3445_v26 = vunpack.i.l.bf16 %v3444_v25 }
 0xfa2   : > { %v3411_v5 = vunpack.i.h.bf16 %v3409_v20  ;;  %v3410_v45 = vunpack.i.l.bf16 %v3409_v20 }
 0xfa4   : > { %v2904_v33 = vsel %vm2901_vm3, %v2887_v24, %v3410_v45  ;;  %v2905_v14 = vsel %vm2901_vm3, %v2888_v49, %v3411_v5  ;;  %v5575_v45 = vld [vmem:[#allocation22_spill] sm:$0xff]  ;;  %v5576_v49 = vld [vmem:[#allocation21_spill] sm:$0xff] }
 0xfa5   : > { %v2919_v21 = vpack.c.bf16 %v2905_v14, %v2904_v33 }
 0xfa7   : > { %3259 = vmatmul.msk.bf16.gmra.mxu0 %vm370_vm0, %v2919_v21 }
 0xfa8   : > { %v3454_v2 = vpop.permute.xlu2 %3453 }
 0xfa9   : > { %v3419_v11 = vpop.permute.xlu0 %3418  ;;  %v3456_v14 = vunpack.i.h.bf16 %v3454_v2  ;;  %v3455_v21 = vunpack.i.l.bf16 %v3454_v2 }
 0xfaa   : > { %v3421_v46 = vunpack.i.h.bf16 %v3419_v11  ;;  %v3420_v8 = vunpack.i.l.bf16 %v3419_v11 }
 0xfac   : > { %v2896_v16 = vsel %vm490_vm2, %v2880_v29, %v3421_v46  ;;  %v2895_v43 = vsel %vm490_vm2, %v2879_v6, %v3420_v8 }
 0xfad   : > { %v2913_v36 = vsel %vm2901_vm3, %v2896_v16, %v3426_v40  ;;  %v2912_v44 = vsel %vm2901_vm3, %v2895_v43, %v3425_v12  ;;  %v5577_v12 = vld [vmem:[#allocation31_spill] sm:$0xff]  ;;  %v5578_v43 = vld [vmem:[#allocation30_spill] sm:$0xff] }
 0xfae   : > { %v2923_v18 = vpack.c.bf16 %v2913_v36, %v2912_v44 }
 0xfb0   : > { %3263 = vmatmul.msk.bf16.vlgmr.msrb.gmra.mxu2 %vm370_vm0, %v2923_v18  ;;  %v3479_v8 = vpop.permute.xlu2 %3478 }
 0xfb1   : > { %v3429_v59 = vpop.permute.xlu0 %3428  ;;  %v3481_v44 = vunpack.i.h.bf16 %v3479_v8  ;;  %v3480_v18 = vunpack.i.l.bf16 %v3479_v8 }
 0xfb2   : > { %v3431_v32 = vunpack.i.h.bf16 %v3429_v59  ;;  %v3430_v48 = vunpack.i.l.bf16 %v3429_v59 }
 0xfb4   : > { %v2874_v7 = vsel %vm469_vm1, %v5571_v52, %v3431_v32  ;;  %v2873_v42 = vsel %vm469_vm1, %v5572_v50, %v3430_v48 }
 0xfb5   : > { %v2889_v62 = vsel %vm490_vm2, %v2873_v42, %v3435_v54  ;;  %v2890_v35 = vsel %vm490_vm2, %v2874_v7, %v3436_v30 }
 0xfb8   : > { %v3459_v10 = vpop.permute.xlu1 %3458 }
 0xfb9   : > { %v3461_v57 = vunpack.i.h.bf16 %v3459_v10  ;;  %v3460_v0 = vunpack.i.l.bf16 %v3459_v10  ;;  %v3439_v13 = vpop.permute.xlu0 %3438 }
 0xfba   : > { %v3441_v55 = vunpack.i.h.bf16 %v3439_v13  ;;  %v3440_v28 = vunpack.i.l.bf16 %v3439_v13 }
 0xfbb   : > { %v2906_v41 = vsel %vm2901_vm3, %v2889_v62, %v3460_v0  ;;  %v2907_v47 = vsel %vm2901_vm3, %v2890_v35, %v3461_v57  ;;  %v3494_v57 = vpop.permute.xlu2 %3493  ;;  %v5579_v0 = vld [vmem:[#allocation24_spill] sm:$0xff]  ;;  %v5580_v35 = vld [vmem:[#allocation23_spill] sm:$0xff] }
 0xfbc   : > { %v2920_v3 = vpack.c.bf16 %v2907_v47, %v2906_v41  ;;  %v2882_v53 = vsel %vm469_vm1, %v5573_v37, %v3441_v55  ;;  %v2881_v4 = vsel %vm469_vm1, %v5574_v15, %v3440_v28  ;;  %v3496_v47 = vunpack.i.h.bf16 %v3494_v57 }
 0xfbd   : > { %v2897_v34 = vsel %vm490_vm2, %v2881_v4, %v3445_v26  ;;  %v2898_v51 = vsel %vm490_vm2, %v2882_v53, %v3446_v1  ;;  %v3503_v4 = vld [vmem:[%s5502_s4] ss:$0 sm:$0xff] }
 0xfbe   : > { %3260 = vmatmul.msk.bf16.gmra.mxu0 %vm370_vm0, %v2920_v3  ;;  %v3495_v3 = vunpack.i.l.bf16 %v3494_v57 }
 0xfc1   : > { %v3449_v9 = vpop.permute.xlu0 %3448 }
 0xfc2   : > { %v3451_v61 = vunpack.i.h.bf16 %v3449_v9  ;;  %v3450_v56 = vunpack.i.l.bf16 %v3449_v9 }
 0xfc4   : > { %v2876_v24 = vsel %vm469_vm1, %v5575_v45, %v3451_v61  ;;  %v2875_v33 = vsel %vm469_vm1, %v5576_v49, %v3450_v56 }
 0xfc5   : > { %v2891_v11 = vsel %vm490_vm2, %v2875_v33, %v3455_v21  ;;  %v2892_v46 = vsel %vm490_vm2, %v2876_v24, %v3456_v14 }
 0xfc9   : > { %v3474_v5 = vpop.permute.xlu0 %3473 }
 0xfca   : > { %v3476_v22 = vunpack.i.h.bf16 %v3474_v5  ;;  %v3475_v29 = vunpack.i.l.bf16 %v3474_v5 }
 0xfcc   : > { %v2884_v16 = vsel %vm469_vm1, %v5577_v12, %v3476_v22  ;;  %v2883_v36 = vsel %vm469_vm1, %v5578_v43, %v3475_v29 }
 0xfcd   : > { %v2899_v52 = vsel %vm490_vm2, %v2883_v36, %v3480_v18  ;;  %v2900_v7 = vsel %vm490_vm2, %v2884_v16, %v3481_v44 }
 0xfd1   : > { %v3489_v59 = vpop.permute.xlu0 %3488 }
 0xfd2   : > { %v3491_v50 = vunpack.i.h.bf16 %v3489_v59  ;;  %v3490_v42 = vunpack.i.l.bf16 %v3489_v59 }
 0xfd4   : > { %v2878_v62 = vsel %vm469_vm1, %v5579_v0, %v3491_v50  ;;  %v2877_v41 = vsel %vm469_vm1, %v5580_v35, %v3490_v42 }
 0xfd5   : > { %v2893_v28 = vsel %vm490_vm2, %v2877_v41, %v3495_v3  ;;  %v2894_v9 = vsel %vm490_vm2, %v2878_v62, %v3496_v47 }
 0xfe3   : > { %v3464_v17 = vpop.permute.xlu1 %3463 }
 0xfe4   : > { %v3466_v58 = vunpack.i.h.bf16 %v3464_v17  ;;  %v3465_v31 = vunpack.i.l.bf16 %v3464_v17 }
 0xfe6   : > { %v2914_v39 = vsel %vm2901_vm3, %v2897_v34, %v3465_v31  ;;  %v2915_v27 = vsel %vm2901_vm3, %v2898_v51, %v3466_v58 }
 0xfe7   : > { %v2924_v20 = vpack.c.bf16 %v2915_v27, %v2914_v39 }
 0xfe9   : > { %3264 = vmatmul.msk.bf16.gmra.mxu2 %vm370_vm0, %v2924_v20 }
 0xfeb   : > { %v3469_v19 = vpop.permute.xlu1 %3468 }
 0xfec   : > { %v3471_v38 = vunpack.i.h.bf16 %v3469_v19  ;;  %v3470_v23 = vunpack.i.l.bf16 %v3469_v19 }
 0xfee   : > { %v2908_v63 = vsel %vm2901_vm3, %v2891_v11, %v3470_v23  ;;  %v2909_v6 = vsel %vm2901_vm3, %v2892_v46, %v3471_v38 }
 0xfef   : > { %v2921_v40 = vpack.c.bf16 %v2909_v6, %v2908_v63 }
 0xff1   : > { %3261 = vmatmul.msk.bf16.gmra.mxu0 %vm370_vm0, %v2921_v40 }
 0xff3   : > { %v3484_v32 = vpop.permute.xlu1 %3483 }
 0xff4   : > { %v3486_v48 = vunpack.i.h.bf16 %v3484_v32  ;;  %v3485_v60 = vunpack.i.l.bf16 %v3484_v32 }
 0xff6   : > { %v2916_v30 = vsel %vm2901_vm3, %v2899_v52, %v3485_v60  ;;  %v2917_v54 = vsel %vm2901_vm3, %v2900_v7, %v3486_v48 }
 0xff7   : > { %v2925_v10 = vpack.c.bf16 %v2917_v54, %v2916_v30 }
 0xff9   : > { %3265 = vmatmul.msk.bf16.gmra.mxu2 %vm370_vm0, %v2925_v10 }
 0xffb   : > { %v3499_v13 = vpop.permute.xlu1 %3498 }
 0xffc   : > { %v3501_v25 = vunpack.i.h.bf16 %v3499_v13  ;;  %v3500_v55 = vunpack.i.l.bf16 %v3499_v13 }
 0xffe   : > { %v2910_v37 = vsel %vm2901_vm3, %v2893_v28, %v3500_v55  ;;  %v2911_v53 = vsel %vm2901_vm3, %v2894_v9, %v3501_v25 }
 0xfff   : > { %v2922_v15 = vpack.c.bf16 %v2911_v53, %v2910_v37 }
0x1001   : > { %3262 = vmatmul.msk.bf16.gmra.mxu0 %vm370_vm0, %v2922_v15 }
0x1014   : > { %v2979_v1 = vpop.f32.mrf.mxu0 }
0x1015   : > { %v2980_v26 = vadd.f32 %v3503_v4, %v2979_v1 }
0x1017   : > { %3019 = vst.msk [vmem:[%s5429_s13] sm:$0xff] %vm370_vm0, %v2980_v26 }
0x101c   : > { %v2981_v17 = vpop.f32.mrf.mxu0 }
0x101d   : > { %v2982_v2 = vadd.f32 %v3503_v4, %v2981_v17 }
0x101f   : > { %3020 = vst.msk [vmem:[%s5429_s13 + $0x8] sm:$0xff] %vm370_vm0, %v2982_v2 }
0x1024   : > { %v2984_v58 = vpop.f32.mrf.mxu0 }
0x1025   : > { %v2985_v31 = vadd.f32 %v3503_v4, %v2984_v58 }
0x1027   : > { %3021 = vst.msk [vmem:[%s5429_s13 + $0x10] sm:$0xff] %vm370_vm0, %v2985_v31 }
0x102c   : > { %v2986_v34 = vpop.f32.mrf.mxu0 }
0x102d   : > { %v2987_v51 = vadd.f32 %v3503_v4, %v2986_v34 }
0x102f   : > { %3022 = vst.msk [vmem:[%s5429_s13 + $0x18] sm:$0xff] %vm370_vm0, %v2987_v51 }
0x1033   : > { %v3004_v61 = vpop.f32.mrf.mxu2 }
0x1034   : > { %v3005_v56 = vadd.f32 %v3503_v4, %v3004_v61 }
0x1036   : > { %3029 = vst.msk [vmem:[%s5429_s13 + $0x50] sm:$0xff] %vm370_vm0, %v3005_v56 }
0x103b   : > { %v2989_v39 = vpop.f32.mrf.mxu0  ;;  %v3006_v27 = vpop.f32.mrf.mxu2 }
0x103c   : > { %v2990_v20 = vadd.f32 %v3503_v4, %v2989_v39  ;;  %v3007_v5 = vadd.f32 %v3503_v4, %v3006_v27 }
0x103e   : > { %3023 = vst.msk [vmem:[%s5429_s13 + $0x20] sm:$0xff] %vm370_vm0, %v2990_v20 }
0x103f   : > { %3030 = vst.msk [vmem:[%s5429_s13 + $0x58] sm:$0xff] %vm370_vm0, %v3007_v5 }
0x1043   : > { %v2991_v45 = vpop.f32.mrf.mxu0 }
0x1044   : > { %v2992_v24 = vadd.f32 %v3503_v4, %v2991_v45 }
0x1046   : > { %3024 = vst.msk [vmem:[%s5429_s13 + $0x28] sm:$0xff] %vm370_vm0, %v2992_v24 }
0x106c   : > { %v3009_v49 = vpop.f32.mrf.mxu2 }
0x106d   : > { %v3010_v33 = vadd.f32 %v3503_v4, %v3009_v49 }
0x106e   : > { %v2994_v14 = vpop.f32.mrf.mxu0 }
0x106f   : > { %3031 = vst.msk [vmem:[%s5429_s13 + $0x60] sm:$0xff] %vm370_vm0, %v3010_v33  ;;  %v2995_v21 = vadd.f32 %v3503_v4, %v2994_v14 }
0x1071   : > { %3025 = vst.msk [vmem:[%s5429_s13 + $0x30] sm:$0xff] %vm370_vm0, %v2995_v21 }
0x1074   : > { %v3011_v19 = vpop.f32.mrf.mxu2 }
0x1075   : > { %v3012_v38 = vadd.f32 %v3503_v4, %v3011_v19 }
0x1076   : > { %v2996_v23 = vpop.f32.mrf.mxu0 }
0x1077   : > { %3032 = vst.msk [vmem:[%s5429_s13 + $0x68] sm:$0xff] %vm370_vm0, %v3012_v38  ;;  %v2997_v11 = vadd.f32 %v3503_v4, %v2996_v23 }
0x1079   : > { %3026 = vst.msk [vmem:[%s5429_s13 + $0x38] sm:$0xff] %vm370_vm0, %v2997_v11 }
0x107c   : > { %v3014_v46 = vpop.f32.mrf.mxu2 }
0x107d   : > { %v3015_v8 = vadd.f32 %v3503_v4, %v3014_v46 }
0x107e   : > { %v2999_v22 = vpop.f32.mrf.mxu0 }
0x107f   : > { %3033 = vst.msk [vmem:[%s5429_s13 + $0x70] sm:$0xff] %vm370_vm0, %v3015_v8  ;;  %v3000_v29 = vadd.f32 %v3503_v4, %v2999_v22 }
0x1081   : > { %3027 = vst.msk [vmem:[%s5429_s13 + $0x40] sm:$0xff] %vm370_vm0, %v3000_v29 }
0x1084   : > { %v3016_v63 = vpop.f32.mrf.mxu2 }
0x1085   : > { %v3017_v6 = vadd.f32 %v3503_v4, %v3016_v63 }
0x1086   : > { %v3001_v40 = vpop.f32.mrf.mxu0 }
0x1087   : > { %3034 = vst.msk [vmem:[%s5429_s13 + $0x78] sm:$0xff] %vm370_vm0, %v3017_v6  ;;  %v3002_v12 = vadd.f32 %v3503_v4, %v3001_v40 }
0x1089   : > { %3028 = vst.msk [vmem:[%s5429_s13 + $0x48] sm:$0xff] %vm370_vm0, %v3002_v12 }
0x108a   : > { %3909 = shalt.err (!%p3906_p10)
}
0x108b   : > { %s3979_s16 = smov 128  }
0x108c   : > { %3300 = dma.vmem_to_hbm [thread:$0]  (%p4100_p3), %s3050_s11, 2048, %s3052_s29, %s3036_s25, %s3979_s16, %s3979_s16, %s3976_s27  }
0x108d PF: > { %s3066_s13 = sand.u32 1, %s3944_s21   ;;  %p5581_p12 = scmp.ge.s32.totalorder %s3956_s24, 2 }
0x108e   : > { %s3067_s17 = scalar_lea.sflag [#allocation4], %s3066_s13 }
0x108f   : > { %p3317_p13 = pnand %p5581_p12, %p4050_p6 }
0x1091   : > { %p3318_p0 = pneg %p3317_p13 }
0x1093   : > { %3939 = dma.done.wait (%p3318_p0), %s3067_s17, 2048  }
0x1094   : > { %3941 = vsyncadd (%p3318_p0), %s3067_s17, 4294965248  ;;  %p21_p5 = scmp.ge.s32.totalorder %s4087_s10, 4   ;;  %s5582_s21 = smov %s3948_s22 }
0x1095   : > { %s5583_s22 = smov %s3952_s23  ;;  %s5584_s23 = smov %s4096_s14 }
0x1096   : > { %s5585_s24 = smov %s4087_s10  ;;  %23 = sbr.rel (!%p21_p5) target bundleno = 7 (0x7), region = 116 }
0x109b   :  { %3073 = vsyncpa [#allocation3], 1 }
0x109c   :  { %3075 = vsyncpa [#allocation3 + $0x1], 1 }
0x109d   :  { %3076 = vsyncpa [#allocation6], 1 }
0x109e   :  { %3077 = vsyncpa [#allocation9], 1 }
0x109f   :  { %3078 = vsyncpa [#allocation4], 1 }
0x10a0   :  { %3080 = vsyncpa [#allocation4 + $0x1], 1 }

</bundles_post_ra>
